<compile_context>
chip_gen: v7x
topology: tpu7x:2x2x1
jax: 0.10.0
libtpu: 0.0.40
codegen_flags: <defaults>
</compile_context>

<pallas_src>
import numpy as np
import jax
import jax.numpy as jnp
from jax.experimental import pallas as pl
from jax.experimental.pallas import tpu as pltpu

SELU_ALPHA = 1.6732632423543772
SELU_SCALE = 1.0507009873554805

# (kernel, stride, padding) and out-channels of the 4 conv layers,
# exactly as hard-coded in the PyTorch __init__.
LAYER_SPECS = ((3, 1, 1), (3, 2, 1), (2, 2, 0), (2, 2, 0))
LAYER_COUT = (32, 64, 128, 256)


def _selu(x):
    # exp(min(x,0)) - 1 == expm1(x) on the selected (x <= 0) branch, and the
    # clamp prevents overflow on the unselected branch.
    neg = SELU_ALPHA * (jnp.exp(jnp.minimum(x, 0.0)) - 1.0)
    return SELU_SCALE * jnp.where(x > 0.0, x, neg)


def _conv_out(size, k, stride, pad):
    return (size + 2 * pad - k) // stride + 1


def _gather_matrices(ih, iw, oh, ow, k, stride, pad):
    """0/1 selection tensors (k*k, oh*ow, ih*iw); tap order (ki, kj) row-major.

    Row m of G[t] selects the input pixel read by output pixel m for kernel
    tap t; taps that land in the zero padding become all-zero rows."""
    g = np.zeros((k * k, oh * ow, ih * iw), np.float32)
    for i in range(k):
        for j in range(k):
            t = i * k + j
            for oy in range(oh):
                y = stride * oy + i - pad
                if not 0 <= y < ih:
                    continue
                for ox in range(ow):
                    x = stride * ox + j - pad
                    if 0 <= x < iw:
                        g[t, oy * ow + ox, y * iw + x] = 1.0
    return g


def _encoder_kernel(p1_ref, w1_ref, b1_ref,
                    g2_ref, w2_ref, b2_ref,
                    g3_ref, w3_ref, b3_ref,
                    g4_ref, w4_ref, b4_ref,
                    o1_ref, o2_ref, o3_ref, o4_ref):
    f32 = jnp.float32

    # ---- layer 1: pre-built patches -> one MXU matmul + bias + SELU ----
    z = _selu(jnp.dot(p1_ref[...], w1_ref[...], preferred_element_type=f32)
              + b1_ref[...])
    o1_ref[...] = z

    # ---- layers 2-4: in-VMEM im2col via gather-as-matmul, per-tap accumulate ----
    for g_ref, w_ref, b_ref, o_ref in (
            (g2_ref, w2_ref, b2_ref, o2_ref),
            (g3_ref, w3_ref, b3_ref, o3_ref),
            (g4_ref, w4_ref, b4_ref, o4_ref)):
        acc = jnp.zeros(o_ref.shape, f32)
        for t in range(g_ref.shape[0]):          # static unroll over kernel taps
            patch = jnp.dot(g_ref[t], z, preferred_element_type=f32)
            acc = acc + jnp.dot(patch, w_ref[t], preferred_element_type=f32)
        z = _selu(acc + b_ref[...])
        o_ref[...] = z


def _full_spec(arr):
    nd = arr.ndim
    return pl.BlockSpec(tuple(arr.shape), lambda n: (0,) * nd)


def _batched_spec(rows, cols):
    # one sample per grid step; batch dim squeezed away inside the kernel
    return pl.BlockSpec((None, rows, cols), lambda n: (n, 0, 0))


@jax.jit
def cnn_encoder_forward(params, x):
    """x: NCHW float32.  Returns (conv1_out, ..., conv4_out), each NCHW."""
    n, cin, h, w = x.shape
    (k1, s1, pd1), (k2, s2, pd2), (k3, s3, pd3), (k4, s4, pd4) = LAYER_SPECS
    oh1, ow1 = _conv_out(h, k1, s1, pd1), _conv_out(w, k1, s1, pd1)
    oh2, ow2 = _conv_out(oh1, k2, s2, pd2), _conv_out(ow1, k2, s2, pd2)
    oh3, ow3 = _conv_out(oh2, k3, s3, pd3), _conv_out(ow2, k3, s3, pd3)
    oh4, ow4 = _conv_out(oh3, k4, s4, pd4), _conv_out(ow3, k4, s4, pd4)
    c1, c2, c3, c4 = (params[i]["w"].shape[0] for i in range(4))

    # Layer-1 im2col outside the kernel (its input is external): channels-last
    # shifted slices, no 5-D transpose; K columns ordered (tap, cin).
    x_nhwc = jnp.transpose(x, (0, 2, 3, 1))
    xp = jnp.pad(x_nhwc, ((0, 0), (pd1, pd1), (pd1, pd1), (0, 0)))
    cols = [xp[:, i:i + (oh1 - 1) * s1 + 1:s1, j:j + (ow1 - 1) * s1 + 1:s1, :]
            for i in range(k1) for j in range(k1)]
    patches1 = jnp.concatenate(cols, axis=-1).reshape(n, oh1 * ow1, k1 * k1 * cin)

    # Weights: OIHW -> tap-major (kh, kw, cin, cout) layouts matching the G taps.
    w1m = params[0]["w"].transpose(2, 3, 1, 0).reshape(k1 * k1 * cin, c1)
    w2s = params[1]["w"].transpose(2, 3, 1, 0).reshape(k2 * k2, c1, c2)
    w3s = params[2]["w"].transpose(2, 3, 1, 0).reshape(k3 * k3, c2, c3)
    w4s = params[3]["w"].transpose(2, 3, 1, 0).reshape(k4 * k4, c3, c4)
    b1m = params[0]["b"].reshape(1, c1)
    b2m = params[1]["b"].reshape(1, c2)
    b3m = params[2]["b"].reshape(1, c3)
    b4m = params[3]["b"].reshape(1, c4)

    # Constant gather tables (trace-time numpy) for the in-kernel strided im2col.
    g2 = jnp.asarray(_gather_matrices(oh1, ow1, oh2, ow2, k2, s2, pd2))
    g3 = jnp.asarray(_gather_matrices(oh2, ow2, oh3, ow3, k3, s3, pd3))
    g4 = jnp.asarray(_gather_matrices(oh3, ow3, oh4, ow4, k4, s4, pd4))

    o1, o2, o3, o4 = pl.pallas_call(
        _encoder_kernel,
        grid=(n,),
        in_specs=[
            _batched_spec(oh1 * ow1, k1 * k1 * cin),
            _full_spec(w1m), _full_spec(b1m),
            _full_spec(g2), _full_spec(w2s), _full_spec(b2m),
            _full_spec(g3), _full_spec(w3s), _full_spec(b3m),
            _full_spec(g4), _full_spec(w4s), _full_spec(b4m),
        ],
        out_specs=[
            _batched_spec(oh1 * ow1, c1),
            _batched_spec(oh2 * ow2, c2),
            _batched_spec(oh3 * ow3, c3),
            _batched_spec(oh4 * ow4, c4),
        ],
        out_shape=[
            jax.ShapeDtypeStruct((n, oh1 * ow1, c1), jnp.float32),
            jax.ShapeDtypeStruct((n, oh2 * ow2, c2), jnp.float32),
            jax.ShapeDtypeStruct((n, oh3 * ow3, c3), jnp.float32),
            jax.ShapeDtypeStruct((n, oh4 * ow4, c4), jnp.float32),
        ],
        compiler_params=pltpu.CompilerParams(
            dimension_semantics=("parallel",)),
    )(patches1, w1m, b1m, g2, w2s, b2m, g3, w3s, b3m, g4, w4s, b4m)

    # Module boundary only: channels-last -> NCHW (PyTorch convention).
    def to_nchw(o, oh, ow):
        return o.reshape(n, oh, ow, -1).transpose(0, 3, 1, 2)

    return (to_nchw(o1, oh1, ow1), to_nchw(o2, oh2, ow2),
            to_nchw(o3, oh3, ow3), to_nchw(o4, oh4, ow4))


def init_cnn_encoder_params(key, in_channels_encoder):
    params = []
    cin = in_channels_encoder
    for (k, stride, pad), cout in zip(LAYER_SPECS, LAYER_COUT):
        key, wk, bk = jax.random.split(key, 3)
        fan_in = cin * k * k
        bound = 1.0 / (fan_in ** 0.5)  # PyTorch Conv2d default uniform bound
        wgt = jax.random.uniform(wk, (cout, cin, k, k), jnp.float32, -bound, bound)
        b = jax.random.uniform(bk, (cout,), jnp.float32, -bound, bound)
        params.append({"w": wgt, "b": b})
        cin = cout
    return params


def _ref_conv_selu(x, w, b, stride, padding):
    out = jax.lax.conv_general_dilated(
        x, w, window_strides=(stride, stride),
        padding=[(padding, padding), (padding, padding)],
        dimension_numbers=("NCHW", "OIHW", "NCHW"))
    return _selu(out + b[None, :, None, None])


if __name__ == "__main__":
    key = jax.random.PRNGKey(0)
    key, xk = jax.random.split(key)

    in_channels = 4
    x = jax.random.normal(xk, (2, in_channels, 16, 16), jnp.float32)  # NCHW

    params = init_cnn_encoder_params(key, in_channels)
    outs = jax.block_until_ready(cnn_encoder_forward(params, x))

    # Shapes match the PyTorch module's forward.
    expected_shapes = [(2, 32, 16, 16), (2, 64, 8, 8), (2, 128, 4, 4), (2, 256, 2, 2)]
    for o, s in zip(outs, expected_shapes):
        assert o.shape == s, (o.shape, s)

    # Numerics check against an XLA conv reference.
    h = x
    for p, (k, stride, pad), o in zip(params, LAYER_SPECS, outs):
        h = _ref_conv_selu(h, p["w"], p["b"], stride, pad)
        assert jnp.allclose(h, o, atol=1e-4, rtol=1e-4), "mismatch vs reference"

    print("KERNEL_OK")
</pallas_src>

<mosaic_0001>
module attributes {stable_mosaic.version = 11 : i64} {
  func.func @_encoder_kernel(%arg0: i32, %arg1: memref<1x256x36xf32, #tpu.memory_space<vmem>>, %arg2: memref<36x32xf32, #tpu.memory_space<vmem>>, %arg3: memref<1x32xf32, #tpu.memory_space<vmem>>, %arg4: memref<9x64x256xf32, #tpu.memory_space<vmem>>, %arg5: memref<9x32x64xf32, #tpu.memory_space<vmem>>, %arg6: memref<1x64xf32, #tpu.memory_space<vmem>>, %arg7: memref<4x16x64xf32, #tpu.memory_space<vmem>>, %arg8: memref<4x64x128xf32, #tpu.memory_space<vmem>>, %arg9: memref<1x128xf32, #tpu.memory_space<vmem>>, %arg10: memref<4x4x16xf32, #tpu.memory_space<vmem>>, %arg11: memref<4x128x256xf32, #tpu.memory_space<vmem>>, %arg12: memref<1x256xf32, #tpu.memory_space<vmem>>, %arg13: memref<1x256x32xf32, #tpu.memory_space<vmem>>, %arg14: memref<1x64x64xf32, #tpu.memory_space<vmem>>, %arg15: memref<1x16x128xf32, #tpu.memory_space<vmem>>, %arg16: memref<1x4x256xf32, #tpu.memory_space<vmem>>) attributes {dimension_semantics = [#tpu.dimension_semantics<parallel>], iteration_bounds = array<i64: 2>, scalar_prefetch = 0 : i64, scratch_operands = 0 : i64, tpu.core_type = #tpu.core_type<tc>, window_params = [{transform_indices = @transform_0, window_bounds = array<i64: 1, 256, 36>}, {pipeline_mode = #tpu.pipeline_mode<synchronous>, transform_indices = @transform_1, window_bounds = array<i64: 36, 32>}, {pipeline_mode = #tpu.pipeline_mode<synchronous>, transform_indices = @transform_2, window_bounds = array<i64: 1, 32>}, {pipeline_mode = #tpu.pipeline_mode<synchronous>, transform_indices = @transform_3, window_bounds = array<i64: 9, 64, 256>}, {pipeline_mode = #tpu.pipeline_mode<synchronous>, transform_indices = @transform_4, window_bounds = array<i64: 9, 32, 64>}, {pipeline_mode = #tpu.pipeline_mode<synchronous>, transform_indices = @transform_5, window_bounds = array<i64: 1, 64>}, {pipeline_mode = #tpu.pipeline_mode<synchronous>, transform_indices = @transform_6, window_bounds = array<i64: 4, 16, 64>}, {pipeline_mode = #tpu.pipeline_mode<synchronous>, transform_indices = @transform_7, window_bounds = array<i64: 4, 64, 128>}, {pipeline_mode = #tpu.pipeline_mode<synchronous>, transform_indices = @transform_8, window_bounds = array<i64: 1, 128>}, {pipeline_mode = #tpu.pipeline_mode<synchronous>, transform_indices = @transform_9, window_bounds = array<i64: 4, 4, 16>}, {pipeline_mode = #tpu.pipeline_mode<synchronous>, transform_indices = @transform_10, window_bounds = array<i64: 4, 128, 256>}, {pipeline_mode = #tpu.pipeline_mode<synchronous>, transform_indices = @transform_11, window_bounds = array<i64: 1, 256>}, {transform_indices = @transform_12, window_bounds = array<i64: 1, 256, 32>}, {transform_indices = @transform_13, window_bounds = array<i64: 1, 64, 64>}, {transform_indices = @transform_14, window_bounds = array<i64: 1, 16, 128>}, {transform_indices = @transform_15, window_bounds = array<i64: 1, 4, 256>}]} {
    %c0 = arith.constant 0 : index
    %c0_0 = arith.constant 0 : index
    %c0_1 = arith.constant 0 : index
    %0 = vector.load %arg1[%c0, %c0_0, %c0_1] : memref<1x256x36xf32, #tpu.memory_space<vmem>>, vector<1x256x36xf32>
    %1 = vector.shape_cast %0 : vector<1x256x36xf32> to vector<256x36xf32>
    %c0_2 = arith.constant 0 : index
    %c0_3 = arith.constant 0 : index
    %2 = vector.load %arg2[%c0_2, %c0_3] : memref<36x32xf32, #tpu.memory_space<vmem>>, vector<36x32xf32>
    %cst = arith.constant dense<0.000000e+00> : vector<256x32xf32>
    %3 = tpu.matmul %1, %2, %cst {dimension_numbers = #tpu.dot_dimension_numbers<[1], [0], [0], [1], [0, 0, 1, 1], [], []>} : vector<256x36xf32>, vector<36x32xf32>, vector<256x32xf32> -> vector<256x32xf32>
    %c0_4 = arith.constant 0 : index
    %c0_5 = arith.constant 0 : index
    %4 = vector.load %arg3[%c0_4, %c0_5] : memref<1x32xf32, #tpu.memory_space<vmem>>, vector<1x32xf32>
    %5 = vector.broadcast %4 : vector<1x32xf32> to vector<256x32xf32>
    %6 = arith.addf %3, %5 : vector<256x32xf32>
    %cst_6 = arith.constant 0.000000e+00 : f32
    %7 = vector.broadcast %cst_6 : f32 to vector<256x32xf32>
    %8 = arith.minimumf %6, %7 : vector<256x32xf32>
    %9 = math.exp %8 : vector<256x32xf32>
    %cst_7 = arith.constant 1.000000e+00 : f32
    %10 = vector.broadcast %cst_7 : f32 to vector<256x32xf32>
    %11 = arith.subf %9, %10 : vector<256x32xf32>
    %cst_8 = arith.constant 1.67326319 : f32
    %12 = vector.broadcast %cst_8 : f32 to vector<256x32xf32>
    %13 = arith.mulf %12, %11 : vector<256x32xf32>
    %cst_9 = arith.constant 0.000000e+00 : f32
    %14 = vector.broadcast %cst_9 : f32 to vector<256x32xf32>
    %15 = arith.cmpf ogt, %6, %14 : vector<256x32xf32>
    %16 = arith.select %15, %6, %13 : vector<256x32xi1>, vector<256x32xf32>
    %cst_10 = arith.constant 1.05070102 : f32
    %17 = vector.broadcast %cst_10 : f32 to vector<256x32xf32>
    %18 = arith.mulf %17, %16 : vector<256x32xf32>
    %c0_11 = arith.constant 0 : index
    %c0_12 = arith.constant 0 : index
    %c0_13 = arith.constant 0 : index
    %19 = vector.load %arg13[%c0_11, %c0_12, %c0_13] : memref<1x256x32xf32, #tpu.memory_space<vmem>>, vector<1x256x32xf32>
    %20 = vector.shape_cast %19 : vector<1x256x32xf32> to vector<256x32xf32>
    %21 = vector.shape_cast %18 : vector<256x32xf32> to vector<1x256x32xf32>
    tpu.vector_store %arg13[%c0_11, %c0_12, %c0_13], %21 {strides = array<i32>} : memref<1x256x32xf32, #tpu.memory_space<vmem>>, vector<1x256x32xf32>,
    %cst_14 = arith.constant 0.000000e+00 : f32
    %22 = vector.broadcast %cst_14 : f32 to vector<64x64xf32>
    %c0_15 = arith.constant 0 : index
    %c0_16 = arith.constant 0 : index
    %c0_17 = arith.constant 0 : index
    %23 = vector.load %arg4[%c0_15, %c0_16, %c0_17] : memref<9x64x256xf32, #tpu.memory_space<vmem>>, vector<1x64x256xf32>
    %24 = vector.shape_cast %23 : vector<1x64x256xf32> to vector<64x256xf32>
    %cst_18 = arith.constant dense<0.000000e+00> : vector<64x32xf32>
    %25 = tpu.matmul %24, %18, %cst_18 {dimension_numbers = #tpu.dot_dimension_numbers<[1], [0], [0], [1], [0, 0, 1, 1], [], []>} : vector<64x256xf32>, vector<256x32xf32>, vector<64x32xf32> -> vector<64x32xf32>
    %c0_19 = arith.constant 0 : index
    %c0_20 = arith.constant 0 : index
    %c0_21 = arith.constant 0 : index
    %26 = vector.load %arg5[%c0_19, %c0_20, %c0_21] : memref<9x32x64xf32, #tpu.memory_space<vmem>>, vector<1x32x64xf32>
    %27 = vector.shape_cast %26 : vector<1x32x64xf32> to vector<32x64xf32>
    %cst_22 = arith.constant dense<0.000000e+00> : vector<64x64xf32>
    %28 = tpu.matmul %25, %27, %cst_22 {dimension_numbers = #tpu.dot_dimension_numbers<[1], [0], [0], [1], [0, 0, 1, 1], [], []>} : vector<64x32xf32>, vector<32x64xf32>, vector<64x64xf32> -> vector<64x64xf32>
    %29 = arith.addf %22, %28 : vector<64x64xf32>
    %c1 = arith.constant 1 : index
    %c0_23 = arith.constant 0 : index
    %c0_24 = arith.constant 0 : index
    %30 = vector.load %arg4[%c1, %c0_23, %c0_24] : memref<9x64x256xf32, #tpu.memory_space<vmem>>, vector<1x64x256xf32>
    %31 = vector.shape_cast %30 : vector<1x64x256xf32> to vector<64x256xf32>
    %cst_25 = arith.constant dense<0.000000e+00> : vector<64x32xf32>
    %32 = tpu.matmul %31, %18, %cst_25 {dimension_numbers = #tpu.dot_dimension_numbers<[1], [0], [0], [1], [0, 0, 1, 1], [], []>} : vector<64x256xf32>, vector<256x32xf32>, vector<64x32xf32> -> vector<64x32xf32>
    %c1_26 = arith.constant 1 : index
    %c0_27 = arith.constant 0 : index
    %c0_28 = arith.constant 0 : index
    %33 = vector.load %arg5[%c1_26, %c0_27, %c0_28] : memref<9x32x64xf32, #tpu.memory_space<vmem>>, vector<1x32x64xf32>
    %34 = vector.shape_cast %33 : vector<1x32x64xf32> to vector<32x64xf32>
    %cst_29 = arith.constant dense<0.000000e+00> : vector<64x64xf32>
    %35 = tpu.matmul %32, %34, %cst_29 {dimension_numbers = #tpu.dot_dimension_numbers<[1], [0], [0], [1], [0, 0, 1, 1], [], []>} : vector<64x32xf32>, vector<32x64xf32>, vector<64x64xf32> -> vector<64x64xf32>
    %36 = arith.addf %29, %35 : vector<64x64xf32>
    %c2 = arith.constant 2 : index
    %c0_30 = arith.constant 0 : index
    %c0_31 = arith.constant 0 : index
    %37 = vector.load %arg4[%c2, %c0_30, %c0_31] : memref<9x64x256xf32, #tpu.memory_space<vmem>>, vector<1x64x256xf32>
    %38 = vector.shape_cast %37 : vector<1x64x256xf32> to vector<64x256xf32>
    %cst_32 = arith.constant dense<0.000000e+00> : vector<64x32xf32>
    %39 = tpu.matmul %38, %18, %cst_32 {dimension_numbers = #tpu.dot_dimension_numbers<[1], [0], [0], [1], [0, 0, 1, 1], [], []>} : vector<64x256xf32>, vector<256x32xf32>, vector<64x32xf32> -> vector<64x32xf32>
    %c2_33 = arith.constant 2 : index
    %c0_34 = arith.constant 0 : index
    %c0_35 = arith.constant 0 : index
    %40 = vector.load %arg5[%c2_33, %c0_34, %c0_35] : memref<9x32x64xf32, #tpu.memory_space<vmem>>, vector<1x32x64xf32>
    %41 = vector.shape_cast %40 : vector<1x32x64xf32> to vector<32x64xf32>
    %cst_36 = arith.constant dense<0.000000e+00> : vector<64x64xf32>
    %42 = tpu.matmul %39, %41, %cst_36 {dimension_numbers = #tpu.dot_dimension_numbers<[1], [0], [0], [1], [0, 0, 1, 1], [], []>} : vector<64x32xf32>, vector<32x64xf32>, vector<64x64xf32> -> vector<64x64xf32>
    %43 = arith.addf %36, %42 : vector<64x64xf32>
    %c3 = arith.constant 3 : index
    %c0_37 = arith.constant 0 : index
    %c0_38 = arith.constant 0 : index
    %44 = vector.load %arg4[%c3, %c0_37, %c0_38] : memref<9x64x256xf32, #tpu.memory_space<vmem>>, vector<1x64x256xf32>
    %45 = vector.shape_cast %44 : vector<1x64x256xf32> to vector<64x256xf32>
    %cst_39 = arith.constant dense<0.000000e+00> : vector<64x32xf32>
    %46 = tpu.matmul %45, %18, %cst_39 {dimension_numbers = #tpu.dot_dimension_numbers<[1], [0], [0], [1], [0, 0, 1, 1], [], []>} : vector<64x256xf32>, vector<256x32xf32>, vector<64x32xf32> -> vector<64x32xf32>
    %c3_40 = arith.constant 3 : index
    %c0_41 = arith.constant 0 : index
    %c0_42 = arith.constant 0 : index
    %47 = vector.load %arg5[%c3_40, %c0_41, %c0_42] : memref<9x32x64xf32, #tpu.memory_space<vmem>>, vector<1x32x64xf32>
    %48 = vector.shape_cast %47 : vector<1x32x64xf32> to vector<32x64xf32>
    %cst_43 = arith.constant dense<0.000000e+00> : vector<64x64xf32>
    %49 = tpu.matmul %46, %48, %cst_43 {dimension_numbers = #tpu.dot_dimension_numbers<[1], [0], [0], [1], [0, 0, 1, 1], [], []>} : vector<64x32xf32>, vector<32x64xf32>, vector<64x64xf32> -> vector<64x64xf32>
    %50 = arith.addf %43, %49 : vector<64x64xf32>
    %c4 = arith.constant 4 : index
    %c0_44 = arith.constant 0 : index
    %c0_45 = arith.constant 0 : index
    %51 = vector.load %arg4[%c4, %c0_44, %c0_45] : memref<9x64x256xf32, #tpu.memory_space<vmem>>, vector<1x64x256xf32>
    %52 = vector.shape_cast %51 : vector<1x64x256xf32> to vector<64x256xf32>
    %cst_46 = arith.constant dense<0.000000e+00> : vector<64x32xf32>
    %53 = tpu.matmul %52, %18, %cst_46 {dimension_numbers = #tpu.dot_dimension_numbers<[1], [0], [0], [1], [0, 0, 1, 1], [], []>} : vector<64x256xf32>, vector<256x32xf32>, vector<64x32xf32> -> vector<64x32xf32>
    %c4_47 = arith.constant 4 : index
    %c0_48 = arith.constant 0 : index
    %c0_49 = arith.constant 0 : index
    %54 = vector.load %arg5[%c4_47, %c0_48, %c0_49] : memref<9x32x64xf32, #tpu.memory_space<vmem>>, vector<1x32x64xf32>
    %55 = vector.shape_cast %54 : vector<1x32x64xf32> to vector<32x64xf32>
    %cst_50 = arith.constant dense<0.000000e+00> : vector<64x64xf32>
    %56 = tpu.matmul %53, %55, %cst_50 {dimension_numbers = #tpu.dot_dimension_numbers<[1], [0], [0], [1], [0, 0, 1, 1], [], []>} : vector<64x32xf32>, vector<32x64xf32>, vector<64x64xf32> -> vector<64x64xf32>
    %57 = arith.addf %50, %56 : vector<64x64xf32>
    %c5 = arith.constant 5 : index
    %c0_51 = arith.constant 0 : index
    %c0_52 = arith.constant 0 : index
    %58 = vector.load %arg4[%c5, %c0_51, %c0_52] : memref<9x64x256xf32, #tpu.memory_space<vmem>>, vector<1x64x256xf32>
    %59 = vector.shape_cast %58 : vector<1x64x256xf32> to vector<64x256xf32>
    %cst_53 = arith.constant dense<0.000000e+00> : vector<64x32xf32>
    %60 = tpu.matmul %59, %18, %cst_53 {dimension_numbers = #tpu.dot_dimension_numbers<[1], [0], [0], [1], [0, 0, 1, 1], [], []>} : vector<64x256xf32>, vector<256x32xf32>, vector<64x32xf32> -> vector<64x32xf32>
    %c5_54 = arith.constant 5 : index
    %c0_55 = arith.constant 0 : index
    %c0_56 = arith.constant 0 : index
    %61 = vector.load %arg5[%c5_54, %c0_55, %c0_56] : memref<9x32x64xf32, #tpu.memory_space<vmem>>, vector<1x32x64xf32>
    %62 = vector.shape_cast %61 : vector<1x32x64xf32> to vector<32x64xf32>
    %cst_57 = arith.constant dense<0.000000e+00> : vector<64x64xf32>
    %63 = tpu.matmul %60, %62, %cst_57 {dimension_numbers = #tpu.dot_dimension_numbers<[1], [0], [0], [1], [0, 0, 1, 1], [], []>} : vector<64x32xf32>, vector<32x64xf32>, vector<64x64xf32> -> vector<64x64xf32>
    %64 = arith.addf %57, %63 : vector<64x64xf32>
    %c6 = arith.constant 6 : index
    %c0_58 = arith.constant 0 : index
    %c0_59 = arith.constant 0 : index
    %65 = vector.load %arg4[%c6, %c0_58, %c0_59] : memref<9x64x256xf32, #tpu.memory_space<vmem>>, vector<1x64x256xf32>
    %66 = vector.shape_cast %65 : vector<1x64x256xf32> to vector<64x256xf32>
    %cst_60 = arith.constant dense<0.000000e+00> : vector<64x32xf32>
    %67 = tpu.matmul %66, %18, %cst_60 {dimension_numbers = #tpu.dot_dimension_numbers<[1], [0], [0], [1], [0, 0, 1, 1], [], []>} : vector<64x256xf32>, vector<256x32xf32>, vector<64x32xf32> -> vector<64x32xf32>
    %c6_61 = arith.constant 6 : index
    %c0_62 = arith.constant 0 : index
    %c0_63 = arith.constant 0 : index
    %68 = vector.load %arg5[%c6_61, %c0_62, %c0_63] : memref<9x32x64xf32, #tpu.memory_space<vmem>>, vector<1x32x64xf32>
    %69 = vector.shape_cast %68 : vector<1x32x64xf32> to vector<32x64xf32>
    %cst_64 = arith.constant dense<0.000000e+00> : vector<64x64xf32>
    %70 = tpu.matmul %67, %69, %cst_64 {dimension_numbers = #tpu.dot_dimension_numbers<[1], [0], [0], [1], [0, 0, 1, 1], [], []>} : vector<64x32xf32>, vector<32x64xf32>, vector<64x64xf32> -> vector<64x64xf32>
    %71 = arith.addf %64, %70 : vector<64x64xf32>
    %c7 = arith.constant 7 : index
    %c0_65 = arith.constant 0 : index
    %c0_66 = arith.constant 0 : index
    %72 = vector.load %arg4[%c7, %c0_65, %c0_66] : memref<9x64x256xf32, #tpu.memory_space<vmem>>, vector<1x64x256xf32>
    %73 = vector.shape_cast %72 : vector<1x64x256xf32> to vector<64x256xf32>
    %cst_67 = arith.constant dense<0.000000e+00> : vector<64x32xf32>
    %74 = tpu.matmul %73, %18, %cst_67 {dimension_numbers = #tpu.dot_dimension_numbers<[1], [0], [0], [1], [0, 0, 1, 1], [], []>} : vector<64x256xf32>, vector<256x32xf32>, vector<64x32xf32> -> vector<64x32xf32>
    %c7_68 = arith.constant 7 : index
    %c0_69 = arith.constant 0 : index
    %c0_70 = arith.constant 0 : index
    %75 = vector.load %arg5[%c7_68, %c0_69, %c0_70] : memref<9x32x64xf32, #tpu.memory_space<vmem>>, vector<1x32x64xf32>
    %76 = vector.shape_cast %75 : vector<1x32x64xf32> to vector<32x64xf32>
    %cst_71 = arith.constant dense<0.000000e+00> : vector<64x64xf32>
    %77 = tpu.matmul %74, %76, %cst_71 {dimension_numbers = #tpu.dot_dimension_numbers<[1], [0], [0], [1], [0, 0, 1, 1], [], []>} : vector<64x32xf32>, vector<32x64xf32>, vector<64x64xf32> -> vector<64x64xf32>
    %78 = arith.addf %71, %77 : vector<64x64xf32>
    %c8 = arith.constant 8 : index
    %c0_72 = arith.constant 0 : index
    %c0_73 = arith.constant 0 : index
    %79 = vector.load %arg4[%c8, %c0_72, %c0_73] : memref<9x64x256xf32, #tpu.memory_space<vmem>>, vector<1x64x256xf32>
    %80 = vector.shape_cast %79 : vector<1x64x256xf32> to vector<64x256xf32>
    %cst_74 = arith.constant dense<0.000000e+00> : vector<64x32xf32>
    %81 = tpu.matmul %80, %18, %cst_74 {dimension_numbers = #tpu.dot_dimension_numbers<[1], [0], [0], [1], [0, 0, 1, 1], [], []>} : vector<64x256xf32>, vector<256x32xf32>, vector<64x32xf32> -> vector<64x32xf32>
    %c8_75 = arith.constant 8 : index
    %c0_76 = arith.constant 0 : index
    %c0_77 = arith.constant 0 : index
    %82 = vector.load %arg5[%c8_75, %c0_76, %c0_77] : memref<9x32x64xf32, #tpu.memory_space<vmem>>, vector<1x32x64xf32>
    %83 = vector.shape_cast %82 : vector<1x32x64xf32> to vector<32x64xf32>
    %cst_78 = arith.constant dense<0.000000e+00> : vector<64x64xf32>
    %84 = tpu.matmul %81, %83, %cst_78 {dimension_numbers = #tpu.dot_dimension_numbers<[1], [0], [0], [1], [0, 0, 1, 1], [], []>} : vector<64x32xf32>, vector<32x64xf32>, vector<64x64xf32> -> vector<64x64xf32>
    %85 = arith.addf %78, %84 : vector<64x64xf32>
    %c0_79 = arith.constant 0 : index
    %c0_80 = arith.constant 0 : index
    %86 = vector.load %arg6[%c0_79, %c0_80] : memref<1x64xf32, #tpu.memory_space<vmem>>, vector<1x64xf32>
    %87 = vector.broadcast %86 : vector<1x64xf32> to vector<64x64xf32>
    %88 = arith.addf %85, %87 : vector<64x64xf32>
    %cst_81 = arith.constant 0.000000e+00 : f32
    %89 = vector.broadcast %cst_81 : f32 to vector<64x64xf32>
    %90 = arith.minimumf %88, %89 : vector<64x64xf32>
    %91 = math.exp %90 : vector<64x64xf32>
    %cst_82 = arith.constant 1.000000e+00 : f32
    %92 = vector.broadcast %cst_82 : f32 to vector<64x64xf32>
    %93 = arith.subf %91, %92 : vector<64x64xf32>
    %cst_83 = arith.constant 1.67326319 : f32
    %94 = vector.broadcast %cst_83 : f32 to vector<64x64xf32>
    %95 = arith.mulf %94, %93 : vector<64x64xf32>
    %cst_84 = arith.constant 0.000000e+00 : f32
    %96 = vector.broadcast %cst_84 : f32 to vector<64x64xf32>
    %97 = arith.cmpf ogt, %88, %96 : vector<64x64xf32>
    %98 = arith.select %97, %88, %95 : vector<64x64xi1>, vector<64x64xf32>
    %cst_85 = arith.constant 1.05070102 : f32
    %99 = vector.broadcast %cst_85 : f32 to vector<64x64xf32>
    %100 = arith.mulf %99, %98 : vector<64x64xf32>
    %c0_86 = arith.constant 0 : index
    %c0_87 = arith.constant 0 : index
    %c0_88 = arith.constant 0 : index
    %101 = vector.load %arg14[%c0_86, %c0_87, %c0_88] : memref<1x64x64xf32, #tpu.memory_space<vmem>>, vector<1x64x64xf32>
    %102 = vector.shape_cast %101 : vector<1x64x64xf32> to vector<64x64xf32>
    %103 = vector.shape_cast %100 : vector<64x64xf32> to vector<1x64x64xf32>
    tpu.vector_store %arg14[%c0_86, %c0_87, %c0_88], %103 {strides = array<i32>} : memref<1x64x64xf32, #tpu.memory_space<vmem>>, vector<1x64x64xf32>,
    %cst_89 = arith.constant 0.000000e+00 : f32
    %104 = vector.broadcast %cst_89 : f32 to vector<16x128xf32>
    %c0_90 = arith.constant 0 : index
    %c0_91 = arith.constant 0 : index
    %c0_92 = arith.constant 0 : index
    %105 = vector.load %arg7[%c0_90, %c0_91, %c0_92] : memref<4x16x64xf32, #tpu.memory_space<vmem>>, vector<1x16x64xf32>
    %106 = vector.shape_cast %105 : vector<1x16x64xf32> to vector<16x64xf32>
    %cst_93 = arith.constant dense<0.000000e+00> : vector<16x64xf32>
    %107 = tpu.matmul %106, %100, %cst_93 {dimension_numbers = #tpu.dot_dimension_numbers<[1], [0], [0], [1], [0, 0, 1, 1], [], []>} : vector<16x64xf32>, vector<64x64xf32>, vector<16x64xf32> -> vector<16x64xf32>
    %c0_94 = arith.constant 0 : index
    %c0_95 = arith.constant 0 : index
    %c0_96 = arith.constant 0 : index
    %108 = vector.load %arg8[%c0_94, %c0_95, %c0_96] : memref<4x64x128xf32, #tpu.memory_space<vmem>>, vector<1x64x128xf32>
    %109 = vector.shape_cast %108 : vector<1x64x128xf32> to vector<64x128xf32>
    %cst_97 = arith.constant dense<0.000000e+00> : vector<16x128xf32>
    %110 = tpu.matmul %107, %109, %cst_97 {dimension_numbers = #tpu.dot_dimension_numbers<[1], [0], [0], [1], [0, 0, 1, 1], [], []>} : vector<16x64xf32>, vector<64x128xf32>, vector<16x128xf32> -> vector<16x128xf32>
    %111 = arith.addf %104, %110 : vector<16x128xf32>
    %c1_98 = arith.constant 1 : index
    %c0_99 = arith.constant 0 : index
    %c0_100 = arith.constant 0 : index
    %112 = vector.load %arg7[%c1_98, %c0_99, %c0_100] : memref<4x16x64xf32, #tpu.memory_space<vmem>>, vector<1x16x64xf32>
    %113 = vector.shape_cast %112 : vector<1x16x64xf32> to vector<16x64xf32>
    %cst_101 = arith.constant dense<0.000000e+00> : vector<16x64xf32>
    %114 = tpu.matmul %113, %100, %cst_101 {dimension_numbers = #tpu.dot_dimension_numbers<[1], [0], [0], [1], [0, 0, 1, 1], [], []>} : vector<16x64xf32>, vector<64x64xf32>, vector<16x64xf32> -> vector<16x64xf32>
    %c1_102 = arith.constant 1 : index
    %c0_103 = arith.constant 0 : index
    %c0_104 = arith.constant 0 : index
    %115 = vector.load %arg8[%c1_102, %c0_103, %c0_104] : memref<4x64x128xf32, #tpu.memory_space<vmem>>, vector<1x64x128xf32>
    %116 = vector.shape_cast %115 : vector<1x64x128xf32> to vector<64x128xf32>
    %cst_105 = arith.constant dense<0.000000e+00> : vector<16x128xf32>
    %117 = tpu.matmul %114, %116, %cst_105 {dimension_numbers = #tpu.dot_dimension_numbers<[1], [0], [0], [1], [0, 0, 1, 1], [], []>} : vector<16x64xf32>, vector<64x128xf32>, vector<16x128xf32> -> vector<16x128xf32>
    %118 = arith.addf %111, %117 : vector<16x128xf32>
    %c2_106 = arith.constant 2 : index
    %c0_107 = arith.constant 0 : index
    %c0_108 = arith.constant 0 : index
    %119 = vector.load %arg7[%c2_106, %c0_107, %c0_108] : memref<4x16x64xf32, #tpu.memory_space<vmem>>, vector<1x16x64xf32>
    %120 = vector.shape_cast %119 : vector<1x16x64xf32> to vector<16x64xf32>
    %cst_109 = arith.constant dense<0.000000e+00> : vector<16x64xf32>
    %121 = tpu.matmul %120, %100, %cst_109 {dimension_numbers = #tpu.dot_dimension_numbers<[1], [0], [0], [1], [0, 0, 1, 1], [], []>} : vector<16x64xf32>, vector<64x64xf32>, vector<16x64xf32> -> vector<16x64xf32>
    %c2_110 = arith.constant 2 : index
    %c0_111 = arith.constant 0 : index
    %c0_112 = arith.constant 0 : index
    %122 = vector.load %arg8[%c2_110, %c0_111, %c0_112] : memref<4x64x128xf32, #tpu.memory_space<vmem>>, vector<1x64x128xf32>
    %123 = vector.shape_cast %122 : vector<1x64x128xf32> to vector<64x128xf32>
    %cst_113 = arith.constant dense<0.000000e+00> : vector<16x128xf32>
    %124 = tpu.matmul %121, %123, %cst_113 {dimension_numbers = #tpu.dot_dimension_numbers<[1], [0], [0], [1], [0, 0, 1, 1], [], []>} : vector<16x64xf32>, vector<64x128xf32>, vector<16x128xf32> -> vector<16x128xf32>
    %125 = arith.addf %118, %124 : vector<16x128xf32>
    %c3_114 = arith.constant 3 : index
    %c0_115 = arith.constant 0 : index
    %c0_116 = arith.constant 0 : index
    %126 = vector.load %arg7[%c3_114, %c0_115, %c0_116] : memref<4x16x64xf32, #tpu.memory_space<vmem>>, vector<1x16x64xf32>
    %127 = vector.shape_cast %126 : vector<1x16x64xf32> to vector<16x64xf32>
    %cst_117 = arith.constant dense<0.000000e+00> : vector<16x64xf32>
    %128 = tpu.matmul %127, %100, %cst_117 {dimension_numbers = #tpu.dot_dimension_numbers<[1], [0], [0], [1], [0, 0, 1, 1], [], []>} : vector<16x64xf32>, vector<64x64xf32>, vector<16x64xf32> -> vector<16x64xf32>
    %c3_118 = arith.constant 3 : index
    %c0_119 = arith.constant 0 : index
    %c0_120 = arith.constant 0 : index
    %129 = vector.load %arg8[%c3_118, %c0_119, %c0_120] : memref<4x64x128xf32, #tpu.memory_space<vmem>>, vector<1x64x128xf32>
    %130 = vector.shape_cast %129 : vector<1x64x128xf32> to vector<64x128xf32>
    %cst_121 = arith.constant dense<0.000000e+00> : vector<16x128xf32>
    %131 = tpu.matmul %128, %130, %cst_121 {dimension_numbers = #tpu.dot_dimension_numbers<[1], [0], [0], [1], [0, 0, 1, 1], [], []>} : vector<16x64xf32>, vector<64x128xf32>, vector<16x128xf32> -> vector<16x128xf32>
    %132 = arith.addf %125, %131 : vector<16x128xf32>
    %c0_122 = arith.constant 0 : index
    %c0_123 = arith.constant 0 : index
    %133 = vector.load %arg9[%c0_122, %c0_123] : memref<1x128xf32, #tpu.memory_space<vmem>>, vector<1x128xf32>
    %134 = vector.broadcast %133 : vector<1x128xf32> to vector<16x128xf32>
    %135 = arith.addf %132, %134 : vector<16x128xf32>
    %cst_124 = arith.constant 0.000000e+00 : f32
    %136 = vector.broadcast %cst_124 : f32 to vector<16x128xf32>
    %137 = arith.minimumf %135, %136 : vector<16x128xf32>
    %138 = math.exp %137 : vector<16x128xf32>
    %cst_125 = arith.constant 1.000000e+00 : f32
    %139 = vector.broadcast %cst_125 : f32 to vector<16x128xf32>
    %140 = arith.subf %138, %139 : vector<16x128xf32>
    %cst_126 = arith.constant 1.67326319 : f32
    %141 = vector.broadcast %cst_126 : f32 to vector<16x128xf32>
    %142 = arith.mulf %141, %140 : vector<16x128xf32>
    %cst_127 = arith.constant 0.000000e+00 : f32
    %143 = vector.broadcast %cst_127 : f32 to vector<16x128xf32>
    %144 = arith.cmpf ogt, %135, %143 : vector<16x128xf32>
    %145 = arith.select %144, %135, %142 : vector<16x128xi1>, vector<16x128xf32>
    %cst_128 = arith.constant 1.05070102 : f32
    %146 = vector.broadcast %cst_128 : f32 to vector<16x128xf32>
    %147 = arith.mulf %146, %145 : vector<16x128xf32>
    %c0_129 = arith.constant 0 : index
    %c0_130 = arith.constant 0 : index
    %c0_131 = arith.constant 0 : index
    %148 = vector.load %arg15[%c0_129, %c0_130, %c0_131] : memref<1x16x128xf32, #tpu.memory_space<vmem>>, vector<1x16x128xf32>
    %149 = vector.shape_cast %148 : vector<1x16x128xf32> to vector<16x128xf32>
    %150 = vector.shape_cast %147 : vector<16x128xf32> to vector<1x16x128xf32>
    tpu.vector_store %arg15[%c0_129, %c0_130, %c0_131], %150 {strides = array<i32>} : memref<1x16x128xf32, #tpu.memory_space<vmem>>, vector<1x16x128xf32>,
    %cst_132 = arith.constant 0.000000e+00 : f32
    %151 = vector.broadcast %cst_132 : f32 to vector<4x256xf32>
    %c0_133 = arith.constant 0 : index
    %c0_134 = arith.constant 0 : index
    %c0_135 = arith.constant 0 : index
    %152 = vector.load %arg10[%c0_133, %c0_134, %c0_135] : memref<4x4x16xf32, #tpu.memory_space<vmem>>, vector<1x4x16xf32>
    %153 = vector.shape_cast %152 : vector<1x4x16xf32> to vector<4x16xf32>
    %cst_136 = arith.constant dense<0.000000e+00> : vector<4x128xf32>
    %154 = tpu.matmul %153, %147, %cst_136 {dimension_numbers = #tpu.dot_dimension_numbers<[1], [0], [0], [1], [0, 0, 1, 1], [], []>} : vector<4x16xf32>, vector<16x128xf32>, vector<4x128xf32> -> vector<4x128xf32>
    %c0_137 = arith.constant 0 : index
    %c0_138 = arith.constant 0 : index
    %c0_139 = arith.constant 0 : index
    %155 = vector.load %arg11[%c0_137, %c0_138, %c0_139] : memref<4x128x256xf32, #tpu.memory_space<vmem>>, vector<1x128x256xf32>
    %156 = vector.shape_cast %155 : vector<1x128x256xf32> to vector<128x256xf32>
    %cst_140 = arith.constant dense<0.000000e+00> : vector<4x256xf32>
    %157 = tpu.matmul %154, %156, %cst_140 {dimension_numbers = #tpu.dot_dimension_numbers<[1], [0], [0], [1], [0, 0, 1, 1], [], []>} : vector<4x128xf32>, vector<128x256xf32>, vector<4x256xf32> -> vector<4x256xf32>
    %158 = arith.addf %151, %157 : vector<4x256xf32>
    %c1_141 = arith.constant 1 : index
    %c0_142 = arith.constant 0 : index
    %c0_143 = arith.constant 0 : index
    %159 = vector.load %arg10[%c1_141, %c0_142, %c0_143] : memref<4x4x16xf32, #tpu.memory_space<vmem>>, vector<1x4x16xf32>
    %160 = vector.shape_cast %159 : vector<1x4x16xf32> to vector<4x16xf32>
    %cst_144 = arith.constant dense<0.000000e+00> : vector<4x128xf32>
    %161 = tpu.matmul %160, %147, %cst_144 {dimension_numbers = #tpu.dot_dimension_numbers<[1], [0], [0], [1], [0, 0, 1, 1], [], []>} : vector<4x16xf32>, vector<16x128xf32>, vector<4x128xf32> -> vector<4x128xf32>
    %c1_145 = arith.constant 1 : index
    %c0_146 = arith.constant 0 : index
    %c0_147 = arith.constant 0 : index
    %162 = vector.load %arg11[%c1_145, %c0_146, %c0_147] : memref<4x128x256xf32, #tpu.memory_space<vmem>>, vector<1x128x256xf32>
    %163 = vector.shape_cast %162 : vector<1x128x256xf32> to vector<128x256xf32>
    %cst_148 = arith.constant dense<0.000000e+00> : vector<4x256xf32>
    %164 = tpu.matmul %161, %163, %cst_148 {dimension_numbers = #tpu.dot_dimension_numbers<[1], [0], [0], [1], [0, 0, 1, 1], [], []>} : vector<4x128xf32>, vector<128x256xf32>, vector<4x256xf32> -> vector<4x256xf32>
    %165 = arith.addf %158, %164 : vector<4x256xf32>
    %c2_149 = arith.constant 2 : index
    %c0_150 = arith.constant 0 : index
    %c0_151 = arith.constant 0 : index
    %166 = vector.load %arg10[%c2_149, %c0_150, %c0_151] : memref<4x4x16xf32, #tpu.memory_space<vmem>>, vector<1x4x16xf32>
    %167 = vector.shape_cast %166 : vector<1x4x16xf32> to vector<4x16xf32>
    %cst_152 = arith.constant dense<0.000000e+00> : vector<4x128xf32>
    %168 = tpu.matmul %167, %147, %cst_152 {dimension_numbers = #tpu.dot_dimension_numbers<[1], [0], [0], [1], [0, 0, 1, 1], [], []>} : vector<4x16xf32>, vector<16x128xf32>, vector<4x128xf32> -> vector<4x128xf32>
    %c2_153 = arith.constant 2 : index
    %c0_154 = arith.constant 0 : index
    %c0_155 = arith.constant 0 : index
    %169 = vector.load %arg11[%c2_153, %c0_154, %c0_155] : memref<4x128x256xf32, #tpu.memory_space<vmem>>, vector<1x128x256xf32>
    %170 = vector.shape_cast %169 : vector<1x128x256xf32> to vector<128x256xf32>
    %cst_156 = arith.constant dense<0.000000e+00> : vector<4x256xf32>
    %171 = tpu.matmul %168, %170, %cst_156 {dimension_numbers = #tpu.dot_dimension_numbers<[1], [0], [0], [1], [0, 0, 1, 1], [], []>} : vector<4x128xf32>, vector<128x256xf32>, vector<4x256xf32> -> vector<4x256xf32>
    %172 = arith.addf %165, %171 : vector<4x256xf32>
    %c3_157 = arith.constant 3 : index
    %c0_158 = arith.constant 0 : index
    %c0_159 = arith.constant 0 : index
    %173 = vector.load %arg10[%c3_157, %c0_158, %c0_159] : memref<4x4x16xf32, #tpu.memory_space<vmem>>, vector<1x4x16xf32>
    %174 = vector.shape_cast %173 : vector<1x4x16xf32> to vector<4x16xf32>
    %cst_160 = arith.constant dense<0.000000e+00> : vector<4x128xf32>
    %175 = tpu.matmul %174, %147, %cst_160 {dimension_numbers = #tpu.dot_dimension_numbers<[1], [0], [0], [1], [0, 0, 1, 1], [], []>} : vector<4x16xf32>, vector<16x128xf32>, vector<4x128xf32> -> vector<4x128xf32>
    %c3_161 = arith.constant 3 : index
    %c0_162 = arith.constant 0 : index
    %c0_163 = arith.constant 0 : index
    %176 = vector.load %arg11[%c3_161, %c0_162, %c0_163] : memref<4x128x256xf32, #tpu.memory_space<vmem>>, vector<1x128x256xf32>
    %177 = vector.shape_cast %176 : vector<1x128x256xf32> to vector<128x256xf32>
    %cst_164 = arith.constant dense<0.000000e+00> : vector<4x256xf32>
    %178 = tpu.matmul %175, %177, %cst_164 {dimension_numbers = #tpu.dot_dimension_numbers<[1], [0], [0], [1], [0, 0, 1, 1], [], []>} : vector<4x128xf32>, vector<128x256xf32>, vector<4x256xf32> -> vector<4x256xf32>
    %179 = arith.addf %172, %178 : vector<4x256xf32>
    %c0_165 = arith.constant 0 : index
    %c0_166 = arith.constant 0 : index
    %180 = vector.load %arg12[%c0_165, %c0_166] : memref<1x256xf32, #tpu.memory_space<vmem>>, vector<1x256xf32>
    %181 = vector.broadcast %180 : vector<1x256xf32> to vector<4x256xf32>
    %182 = arith.addf %179, %181 : vector<4x256xf32>
    %cst_167 = arith.constant 0.000000e+00 : f32
    %183 = vector.broadcast %cst_167 : f32 to vector<4x256xf32>
    %184 = arith.minimumf %182, %183 : vector<4x256xf32>
    %185 = math.exp %184 : vector<4x256xf32>
    %cst_168 = arith.constant 1.000000e+00 : f32
    %186 = vector.broadcast %cst_168 : f32 to vector<4x256xf32>
    %187 = arith.subf %185, %186 : vector<4x256xf32>
    %cst_169 = arith.constant 1.67326319 : f32
    %188 = vector.broadcast %cst_169 : f32 to vector<4x256xf32>
    %189 = arith.mulf %188, %187 : vector<4x256xf32>
    %cst_170 = arith.constant 0.000000e+00 : f32
    %190 = vector.broadcast %cst_170 : f32 to vector<4x256xf32>
    %191 = arith.cmpf ogt, %182, %190 : vector<4x256xf32>
    %192 = arith.select %191, %182, %189 : vector<4x256xi1>, vector<4x256xf32>
    %cst_171 = arith.constant 1.05070102 : f32
    %193 = vector.broadcast %cst_171 : f32 to vector<4x256xf32>
    %194 = arith.mulf %193, %192 : vector<4x256xf32>
    %c0_172 = arith.constant 0 : index
    %c0_173 = arith.constant 0 : index
    %c0_174 = arith.constant 0 : index
    %195 = vector.load %arg16[%c0_172, %c0_173, %c0_174] : memref<1x4x256xf32, #tpu.memory_space<vmem>>, vector<1x4x256xf32>
    %196 = vector.shape_cast %195 : vector<1x4x256xf32> to vector<4x256xf32>
    %197 = vector.shape_cast %194 : vector<4x256xf32> to vector<1x4x256xf32>
    tpu.vector_store %arg16[%c0_172, %c0_173, %c0_174], %197 {strides = array<i32>} : memref<1x4x256xf32, #tpu.memory_space<vmem>>, vector<1x4x256xf32>,
    return
  }
  func.func @transform_0(%arg0: i32) -> (i32, i32, i32) {
    %c0_i32 = arith.constant 0 : i32
    %c0_i32_0 = arith.constant 0 : i32
    %c0_i32_1 = arith.constant 0 : i32
    return %arg0, %c0_i32, %c0_i32_0 : i32, i32, i32
  }
  func.func @transform_1(%arg0: i32) -> (i32, i32) {
    %c0_i32 = arith.constant 0 : i32
    %c0_i32_0 = arith.constant 0 : i32
    %c0_i32_1 = arith.constant 0 : i32
    return %c0_i32, %c0_i32_0 : i32, i32
  }
  func.func @transform_2(%arg0: i32) -> (i32, i32) {
    %c0_i32 = arith.constant 0 : i32
    %c0_i32_0 = arith.constant 0 : i32
    %c0_i32_1 = arith.constant 0 : i32
    return %c0_i32, %c0_i32_0 : i32, i32
  }
  func.func @transform_3(%arg0: i32) -> (i32, i32, i32) {
    %c0_i32 = arith.constant 0 : i32
    %c0_i32_0 = arith.constant 0 : i32
    %c0_i32_1 = arith.constant 0 : i32
    %c0_i32_2 = arith.constant 0 : i32
    return %c0_i32, %c0_i32_0, %c0_i32_1 : i32, i32, i32
  }
  func.func @transform_4(%arg0: i32) -> (i32, i32, i32) {
    %c0_i32 = arith.constant 0 : i32
    %c0_i32_0 = arith.constant 0 : i32
    %c0_i32_1 = arith.constant 0 : i32
    %c0_i32_2 = arith.constant 0 : i32
    return %c0_i32, %c0_i32_0, %c0_i32_1 : i32, i32, i32
  }
  func.func @transform_5(%arg0: i32) -> (i32, i32) {
    %c0_i32 = arith.constant 0 : i32
    %c0_i32_0 = arith.constant 0 : i32
    %c0_i32_1 = arith.constant 0 : i32
    return %c0_i32, %c0_i32_0 : i32, i32
  }
  func.func @transform_6(%arg0: i32) -> (i32, i32, i32) {
    %c0_i32 = arith.constant 0 : i32
    %c0_i32_0 = arith.constant 0 : i32
    %c0_i32_1 = arith.constant 0 : i32
    %c0_i32_2 = arith.constant 0 : i32
    return %c0_i32, %c0_i32_0, %c0_i32_1 : i32, i32, i32
  }
  func.func @transform_7(%arg0: i32) -> (i32, i32, i32) {
    %c0_i32 = arith.constant 0 : i32
    %c0_i32_0 = arith.constant 0 : i32
    %c0_i32_1 = arith.constant 0 : i32
    %c0_i32_2 = arith.constant 0 : i32
    return %c0_i32, %c0_i32_0, %c0_i32_1 : i32, i32, i32
  }
  func.func @transform_8(%arg0: i32) -> (i32, i32) {
    %c0_i32 = arith.constant 0 : i32
    %c0_i32_0 = arith.constant 0 : i32
    %c0_i32_1 = arith.constant 0 : i32
    return %c0_i32, %c0_i32_0 : i32, i32
  }
  func.func @transform_9(%arg0: i32) -> (i32, i32, i32) {
    %c0_i32 = arith.constant 0 : i32
    %c0_i32_0 = arith.constant 0 : i32
    %c0_i32_1 = arith.constant 0 : i32
    %c0_i32_2 = arith.constant 0 : i32
    return %c0_i32, %c0_i32_0, %c0_i32_1 : i32, i32, i32
  }
  func.func @transform_10(%arg0: i32) -> (i32, i32, i32) {
    %c0_i32 = arith.constant 0 : i32
    %c0_i32_0 = arith.constant 0 : i32
    %c0_i32_1 = arith.constant 0 : i32
    %c0_i32_2 = arith.constant 0 : i32
    return %c0_i32, %c0_i32_0, %c0_i32_1 : i32, i32, i32
  }
  func.func @transform_11(%arg0: i32) -> (i32, i32) {
    %c0_i32 = arith.constant 0 : i32
    %c0_i32_0 = arith.constant 0 : i32
    %c0_i32_1 = arith.constant 0 : i32
    return %c0_i32, %c0_i32_0 : i32, i32
  }
  func.func @transform_12(%arg0: i32) -> (i32, i32, i32) {
    %c0_i32 = arith.constant 0 : i32
    %c0_i32_0 = arith.constant 0 : i32
    %c0_i32_1 = arith.constant 0 : i32
    return %arg0, %c0_i32, %c0_i32_0 : i32, i32, i32
  }
  func.func @transform_13(%arg0: i32) -> (i32, i32, i32) {
    %c0_i32 = arith.constant 0 : i32
    %c0_i32_0 = arith.constant 0 : i32
    %c0_i32_1 = arith.constant 0 : i32
    return %arg0, %c0_i32, %c0_i32_0 : i32, i32, i32
  }
  func.func @transform_14(%arg0: i32) -> (i32, i32, i32) {
    %c0_i32 = arith.constant 0 : i32
    %c0_i32_0 = arith.constant 0 : i32
    %c0_i32_1 = arith.constant 0 : i32
    return %arg0, %c0_i32, %c0_i32_0 : i32, i32, i32
  }
  func.func @transform_15(%arg0: i32) -> (i32, i32, i32) {
    %c0_i32 = arith.constant 0 : i32
    %c0_i32_0 = arith.constant 0 : i32
    %c0_i32_1 = arith.constant 0 : i32
    return %arg0, %c0_i32, %c0_i32_0 : i32, i32, i32
  }
}

</mosaic_0001>

<bundles_post_ra>
// kernel: cnn_encoder_forward.1
= control target key start
LH: loop header
LB: loop body
LE: loop exit
PB: predicated region body
PF: predicated region fallthrough
CT: control target
= control target key end

     0   :  { %s10144_s0 = inlined_call_operand.vmem [shape: f32[2,256,36], index: 0, kind: input, shape index: {}]   ;;  %s10145_s1 = inlined_call_operand.vmem [shape: f32[36,32], index: 1, kind: input, shape index: {}]   ;;  %s10146_s2 = inlined_call_operand.vmem [shape: f32[1,32], index: 2, kind: input, shape index: {}]   ;;  %s10147_s3 = inlined_call_operand.vmem [shape: f32[9,64,256], index: 3, kind: input, shape index: {}]   ;;  %s10148_s4 = inlined_call_operand.vmem [shape: f32[9,32,64], index: 4, kind: input, shape index: {}]   ;;  %s10149_s5 = inlined_call_operand.vmem [shape: f32[1,64], index: 5, kind: input, shape index: {}]   ;;  %s10150_s6 = inlined_call_operand.vmem [shape: f32[4,16,64], index: 6, kind: input, shape index: {}]   ;;  %s10151_s7 = inlined_call_operand.vmem [shape: f32[4,64,128], index: 7, kind: input, shape index: {}]   ;;  %s10152_s8 = inlined_call_operand.vmem [shape: f32[1,128], index: 8, kind: input, shape index: {}]   ;;  %s10153_s9 = inlined_call_operand.vmem [shape: f32[4,4,16], index: 9, kind: input, shape index: {}]   ;;  %s10154_s10 = inlined_call_operand.vmem [shape: f32[4,128,256], index: 10, kind: input, shape index: {}]   ;;  %s10155_s11 = inlined_call_operand.vmem [shape: f32[1,256], index: 11, kind: input, shape index: {}]   ;;  %s10156_s12 = inlined_call_operand.hbm [shape: f32[2,256,32], index: 12, kind: output, shape index: {0}]   ;;  %s10157_s13 = inlined_call_operand.hbm [shape: f32[2,64,64], index: 13, kind: output, shape index: {1}]   ;;  %s10158_s14 = inlined_call_operand.hbm [shape: f32[2,16,128], index: 14, kind: output, shape index: {2}]   ;;  %s10159_s15 = inlined_call_operand.vmem [shape: f32[2,4,256], index: 15, kind: output, shape index: {3}]  }
   0x1   :  { %10165 = sst [smem:[#allocation13_spill]] %s10144_s0 }
   0x2   :  { %10166 = sst [smem:[#allocation14_spill]] %s10145_s1 }
   0x3   :  { %10167 = sst [smem:[#allocation15_spill]] %s10146_s2 }
   0x4   :  { %10168 = sst [smem:[#allocation16_spill]] %s10147_s3 }
   0x5   :  { %10169 = sst [smem:[#allocation17_spill]] %s10148_s4 }
   0x6   :  { %10170 = sst [smem:[#allocation18_spill]] %s10149_s5 }
   0x7   :  { %10171 = sst [smem:[#allocation19_spill]] %s10150_s6 }
   0x8   :  { %10172 = sst [smem:[#allocation20_spill]] %s10151_s7 }
   0x9   :  { %21 = vsyncpa [#allocation3], 0 }
   0xa   :  { %23 = vsyncpa [#allocation3 + $0x1], 0 }
   0xb   :  { %24 = vsyncpa [#allocation5], 0 }
   0xc   :  { %26 = vsyncpa [#allocation5 + $0x1], 0  ;;  %s8032_s18 = smov 0   ;;  %s8034_s19 = smov 0  }
   0xd   :  { %s8036_s20 = smov 0   ;;  %s8038_s21 = smov 0  }
   0xe LB: > { %10173 = sst [smem:[#allocation9_spill]] %s7934_s19  ;;  %s8053_s22 = sadd.s32 4294967295, %s7942_s21   ;;  %s7942_s21 = sphi %s8038_s21, %s10188_s21   ;;  %s7938_s20 = sphi %s8036_s20, %s10191_s20   ;;  %s7934_s19 = sphi %s8034_s19, %s10190_s19   ;;  %s7930_s18 = sphi %s8032_s18, %s10189_s18  }
   0xf   : > { %10174 = sst [smem:[#allocation10_spill]] %s7938_s20  ;;  %s10160_s23 = sadd.s32 4294967294, %s7942_s21  }
  0x10   : > { %s8057_s24 = sadd.s32 1, %s7942_s21   ;;  %s296_s25 = sadd.s32 1, %s7938_s20 }
  0x11   : > { %10175 = sst [smem:[#allocation11_spill]] %s8057_s24  ;;  %s293_s26 = ssub.s32 %s7942_s21, %s8057_s24 }
  0x12   : > { %p306_p0 = scmp.ne.s32.totalorder %s7938_s20, %s7934_s19  ;;  %p294_p1 = scmp.eq.s32.totalorder %s293_s26, 0 }
  0x13   : > { %p307_p2 = scmp.eq.s32.totalorder %s8053_s22, 1  ;;  %p312_p3 = scmp.ne.s32.totalorder %s7934_s19, %s7930_s18 }
  0x14   : > { %p313_p4 = scmp.eq.s32.totalorder %s10160_s23, 1  ;;  %p5322_p7 = scmp.ge.s32.totalorder %s7942_s21, 1 }
  0x15   : > { %s8070_s27 = scalar_select %p294_p1, %s7938_s20, %s296_s25  }
  0x16   : > { %p8072_p5 = por %p307_p2, %p306_p0  ;;  %p8076_p6 = por %p313_p4, %p312_p3 }
  0x17   : > { %10176 = sst [smem:[#allocation12_spill]] %s8070_s27  ;;  %p450_p8 = scmp.lt.s32.totalorder %s7942_s21, 3 }
  0x19   : > { %p451_p9 = pnand %p5322_p7, %p450_p8 }
  0x1a   : > { %s10179_s1 = sld [smem:[#allocation14_spill]] (!%p451_p9)  ;;  %p513_p10 = scmp.lt.s32.totalorder (!%p451_p9), %s8053_s22, 1  ;;  %vm567_vm0 = vcmask (!%p451_p9), 293888   ;;  %vm664_vm1 = vcmask (!%p451_p9), 1043456   ;;  %vm1149_vm3 = vcmask (!%p451_p9), 261120  }
  0x1b   : > { %454 = sbr.rel (%p451_p9) target bundleno = 2325 (0x915), region = 68  ;;  %s10180_s0 = sld [smem:[#allocation13_spill]] (!%p451_p9) }
  0x1c   : > { %s10181_s3 = sld [smem:[#allocation16_spill]] (!%p451_p9)  ;;  %s10182_s2 = sld [smem:[#allocation15_spill]] (!%p451_p9) }
  0x1d   : > { %s8211_s17 = sand.u32 (!%p451_p9), 1, %s7934_s19   ;;  %s10183_s4 = sld [smem:[#allocation17_spill]] (!%p451_p9) }
  0x1e   : > { %s10184_s6 = sld [smem:[#allocation19_spill]] (!%p451_p9)  ;;  %s10185_s7 = sld [smem:[#allocation20_spill]] (!%p451_p9) }
  0x1f   : > { %s10186_s5 = sld [smem:[#allocation18_spill]] (!%p451_p9)  ;;  %s5112_s20 = sand.u32 (!%p451_p9), 1, %s8053_s22  }
  0x20   : > { %v555_v0 = vld [vmem:[%s10179_s1] sm:$0xff] (!%p451_p9)  ;;  %v556_v1 = vld [vmem:[%s10179_s1 + $0x8] sm:$0xff] (!%p451_p9)  ;;  %v557_v2 = vld [vmem:[%s10179_s1 + $0x10] sm:$0xff] (!%p451_p9) }
  0x21   : > { %v6966_v3 = vpack.c.bf16 (!%p451_p9), %v556_v1, %v555_v0  ;;  %v558_v4 = vld [vmem:[%s10179_s1 + $0x18] sm:$0xff] (!%p451_p9)  ;;  %v559_v6 = vld [vmem:[%s10179_s1 + $0x20] sm:$0xf] (!%p451_p9) }
  0x22   : > { %v6970_v5 = vpack.c.bf16 %v558_v4, %v557_v2  ;;  %s8096_s24 = scalar_select %p513_p10, %s8053_s22, 1  ;;  %v1183_v39 = vld [vmem:[%s10181_s3 + $0x8] sm:$0xff]  ;;  %v8177_v40 = vld [vmem:[%s10182_s2] ss:$0 sm:$0xff] }
  0x23   : > { %6967 = vmatprep.subr.bf16.mxu1 %v6966_v3 }
  0x24   : > { %6969 = vmatpush3.bf16.msra.mxu1 %v6966_v3  ;;  %s5802_s30 = sshll.u32 %s8096_s24, 8 }
  0x25   : > { %6971 = vmatprep.subr.bf16.mxu1 %v6970_v5  ;;  %s8102_s23 = scalar_lea.vmem %s10180_s0, %s5802_s30  ;;  %s5324_s0 = sshll.u32 %s8211_s17, 6 }
  0x26   : > { %v523_v7 = vld [vmem:[%s8102_s23] sm:$0xff]  ;;  %v524_v8 = vld [vmem:[%s8102_s23 + $0x8] sm:$0xff]  ;;  %v525_v9 = vld [vmem:[%s8102_s23 + $0x10] sm:$0xff]  ;;  %s9432_s1 = scalar_lea.vmem [#allocation4], %s5324_s0  ;;  %s5325_s30 = sshll.u32 %s8211_s17, 4 }
  0x27   : > { %6558 = vmatprep.mubr.msk.f32.mxu1 %vm567_vm0, %v523_v7  ;;  %v526_v10 = vld [vmem:[%s8102_s23 + $0x18] sm:$0xff]  ;;  %v527_v11 = vld [vmem:[%s8102_s23 + $0x20] sm:$0xff]  ;;  %v528_v12 = vld [vmem:[%s8102_s23 + $0x28] sm:$0xff]  ;;  %s9590_s2 = scalar_lea.vmem [#allocation6], %s5325_s30  ;;  %s5804_s0 = sshll.u32 %s8053_s22, 12 }
  0x28   : > { %6973 = vmatpush3.bf16.msra.mxu1 %v6970_v5  ;;  %v529_v13 = vld [vmem:[%s8102_s23 + $0x30] sm:$0xff]  ;;  %v530_v14 = vld [vmem:[%s8102_s23 + $0x38] sm:$0xff]  ;;  %v531_v15 = vld [vmem:[%s8102_s23 + $0x40] sm:$0xff]  ;;  %s5168_s26 = sshll.u32 %s9590_s2, 4  ;;  %s10012_s26 = int_to_ptr.vmem [resolvable:$true] %s5168_s26 }
  0x29   : > { %6556 = vmatprep.subr.msk.mxu1 %vm664_vm1, %v559_v6  ;;  %v532_v16 = vld [vmem:[%s8102_s23 + $0x48] sm:$0xff]  ;;  %v533_v17 = vld [vmem:[%s8102_s23 + $0x50] sm:$0xff]  ;;  %v534_v18 = vld [vmem:[%s8102_s23 + $0x58] sm:$0xff] }
  0x2a   : > { %v535_v19 = vld [vmem:[%s8102_s23 + $0x60] sm:$0xff]  ;;  %v536_v20 = vld [vmem:[%s8102_s23 + $0x68] sm:$0xff]  ;;  %v537_v21 = vld [vmem:[%s8102_s23 + $0x70] sm:$0xff] }
  0x2b   : > { %v538_v22 = vld [vmem:[%s8102_s23 + $0x78] sm:$0xff]  ;;  %v539_v23 = vld [vmem:[%s8102_s23 + $0x80] sm:$0xff]  ;;  %v540_v24 = vld [vmem:[%s8102_s23 + $0x88] sm:$0xff] }
  0x2c   : > { %6557 = vmatpush3.msk.msra.mxu1 %vm664_vm1, %v559_v6  ;;  %v541_v25 = vld [vmem:[%s8102_s23 + $0x90] sm:$0xff]  ;;  %v542_v26 = vld [vmem:[%s8102_s23 + $0x98] sm:$0xff]  ;;  %v543_v27 = vld [vmem:[%s8102_s23 + $0xa0] sm:$0xff] }
  0x2d   : > { %6559 = vmatmul.mubr.msk.f32.vlgmr.msra.gmra.mrb[0].mxu1 %vm567_vm0, %v524_v8  ;;  %v544_v28 = vld [vmem:[%s8102_s23 + $0xa8] sm:$0xff]  ;;  %v545_v29 = vld [vmem:[%s8102_s23 + $0xb0] sm:$0xff]  ;;  %v546_v30 = vld [vmem:[%s8102_s23 + $0xb8] sm:$0xff] }
  0x2e   : > { %6561 = vmatprep.mubr.msk.f32.mxu1 %vm567_vm0, %v525_v9  ;;  %v547_v31 = vld [vmem:[%s8102_s23 + $0xc0] sm:$0xff]  ;;  %v548_v32 = vld [vmem:[%s8102_s23 + $0xc8] sm:$0xff]  ;;  %v549_v33 = vld [vmem:[%s8102_s23 + $0xd0] sm:$0xff] }
  0x2f   : > { %v550_v34 = vld [vmem:[%s8102_s23 + $0xd8] sm:$0xff]  ;;  %v551_v35 = vld [vmem:[%s8102_s23 + $0xe0] sm:$0xff]  ;;  %v552_v36 = vld [vmem:[%s8102_s23 + $0xe8] sm:$0xff] }
  0x30   : > { %v553_v37 = vld [vmem:[%s8102_s23 + $0xf0] sm:$0xff]  ;;  %v554_v38 = vld [vmem:[%s8102_s23 + $0xf8] sm:$0xff]  ;;  %s5323_s23 = sshll.u32 %s8211_s17, 8 }
  0x31   : > { %6562 = vmatmul.mubr.msk.f32.gmra.mrb[2].mxu1 %vm567_vm0, %v526_v10  ;;  %s8243_s25 = scalar_lea.vmem [#allocation2], %s5323_s23 }
  0x32   : > { %6564 = vmatprep.mubr.msk.f32.mxu1 %vm567_vm0, %v527_v11 }
  0x35   : > { %6565 = vmatmul.mubr.msk.f32.gmra.mrb[4].mxu1 %vm567_vm0, %v528_v12 }
  0x36   : > { %6567 = vmatprep.mubr.msk.f32.mxu1 %vm567_vm0, %v529_v13 }
  0x39   : > { %6568 = vmatmul.mubr.msk.f32.gmra.mrb[6].mxu1 %vm567_vm0, %v530_v14 }
  0x3a   : > { %6570 = vmatprep.mubr.msk.f32.mxu1 %vm567_vm0, %v531_v15 }
  0x3d   : > { %6571 = vmatmul.mubr.msk.f32.gmra.mrb[8].mxu1 %vm567_vm0, %v532_v16 }
  0x3e   : > { %6573 = vmatprep.mubr.msk.f32.mxu1 %vm567_vm0, %v533_v17 }
  0x41   : > { %6574 = vmatmul.mubr.msk.f32.gmra.mrb[10].mxu1 %vm567_vm0, %v534_v18 }
  0x42   : > { %6576 = vmatprep.mubr.msk.f32.mxu1 %vm567_vm0, %v535_v19 }
  0x45   : > { %6577 = vmatmul.mubr.msk.f32.gmra.mrb[12].mxu1 %vm567_vm0, %v536_v20 }
  0x46   : > { %6579 = vmatprep.mubr.msk.f32.mxu1 %vm567_vm0, %v537_v21 }
  0x49   : > { %6580 = vmatmul.mubr.msk.f32.gmra.mrb[14].mxu1 %vm567_vm0, %v538_v22 }
  0x4a   : > { %6582 = vmatprep.mubr.msk.f32.mxu1 %vm567_vm0, %v539_v23 }
  0x4d   : > { %6583 = vmatmul.mubr.msk.f32.gmra.mrb[16].mxu1 %vm567_vm0, %v540_v24 }
  0x4e   : > { %6585 = vmatprep.mubr.msk.f32.mxu1 %vm567_vm0, %v541_v25 }
  0x51   : > { %6586 = vmatmul.mubr.msk.f32.gmra.mrb[18].mxu1 %vm567_vm0, %v542_v26 }
  0x52   : > { %6588 = vmatprep.mubr.msk.f32.mxu1 %vm567_vm0, %v543_v27 }
  0x55   : > { %6589 = vmatmul.mubr.msk.f32.gmra.mrb[20].mxu1 %vm567_vm0, %v544_v28 }
  0x56   : > { %6591 = vmatprep.mubr.msk.f32.mxu1 %vm567_vm0, %v545_v29 }
  0x59   : > { %6592 = vmatmul.mubr.msk.f32.gmra.mrb[22].mxu1 %vm567_vm0, %v546_v30 }
  0x5a   : > { %6594 = vmatprep.mubr.msk.f32.mxu1 %vm567_vm0, %v547_v31 }
  0x5d   : > { %6595 = vmatmul.mubr.msk.f32.gmra.mrb[24].mxu1 %vm567_vm0, %v548_v32 }
  0x5e   : > { %6597 = vmatprep.mubr.msk.f32.mxu1 %vm567_vm0, %v549_v33 }
  0x61   : > { %6598 = vmatmul.mubr.msk.f32.gmra.mrb[26].mxu1 %vm567_vm0, %v550_v34 }
  0x62   : > { %6600 = vmatprep.mubr.msk.f32.mxu1 %vm567_vm0, %v551_v35 }
  0x65   : > { %6601 = vmatmul.mubr.msk.f32.gmra.mrb[28].mxu1 %vm567_vm0, %v552_v36 }
  0x66   : > { %6603 = vmatprep.mubr.msk.f32.mxu1 %vm567_vm0, %v553_v37 }
  0x69   : > { %6604 = vmatmul.mubr.msk.f32.gmra.mrb[30].mxu1 %vm567_vm0, %v554_v38 }
  0x6a   : > { %1262 = vmatprep.mubr.f32.mxu1 %v1183_v39 }
 0x100   : > { %v6560_v41 = vpop.f32.mrb[0].mxu1 }
 0x101   : > { %v8180_v42 = vadd.f32 %v6560_v41, %v8177_v40  ;;  %v734_v43 = vpop.f32.mrb[1].mxu1 }
 0x102   : > { %v8183_v44 = vadd.f32 %v8177_v40, %v734_v43 }
 0x103   : > { %v894_v45 = vmin.f32 %v8180_v42, 0.0  ;;  %vm1054_vm2 = vcmp.gt.f32.partialorder %v8180_v42, 0.0 }
 0x104   : > { %v893_v46 = vmin.f32 %v8183_v44, 0.0  ;;  %v6563_v47 = vpop.f32.mrb[2].mxu1  ;;  %vm1053_vm4 = vcmp.gt.f32.partialorder %v8183_v44, 0.0 }
 0x105   : > { %v927_v48 = vmul.f32 1.442695, %v894_v45  ;;  %v8188_v49 = vadd.f32 %v6563_v47, %v8177_v40  ;;  %v744_v50 = vpop.f32.mrb[3].mxu1 }
 0x106   : > { %v925_v51 = vmul.f32 1.442695, %v893_v46  ;;  %v8191_v52 = vadd.f32 %v8177_v40, %v744_v50 }
 0x107   : > { %7732 = vpow2.f32 %v927_v48  ;;  %v896_v53 = vmin.f32 %v8188_v49, 0.0  ;;  %vm1056_vm5 = vcmp.gt.f32.partialorder %v8188_v49, 0.0 }
 0x108   : > { %7734 = vpow2.f32 %v925_v51  ;;  %v895_v54 = vmin.f32 %v8191_v52, 0.0  ;;  %v6566_v55 = vpop.f32.mrb[4].mxu1  ;;  %vm1055_vm6 = vcmp.gt.f32.partialorder %v8191_v52, 0.0 }
 0x109   : > { %v931_v56 = vmul.f32 1.442695, %v896_v53  ;;  %v8196_v57 = vadd.f32 %v6566_v55, %v8177_v40  ;;  %v754_v58 = vpop.f32.mrb[5].mxu1 }
 0x10a   : > { %v929_v59 = vmul.f32 1.442695, %v895_v54  ;;  %v8199_v60 = vadd.f32 %v8177_v40, %v754_v58 }
 0x10b   : > { %7736 = vpow2.f32 %v931_v56  ;;  %v898_v61 = vmin.f32 %v8196_v57, 0.0  ;;  %vm1058_vm7 = vcmp.gt.f32.partialorder %v8196_v57, 0.0 }
 0x10c   : > { %7738 = vpow2.f32 %v929_v59  ;;  %v897_v62 = vmin.f32 %v8199_v60, 0.0  ;;  %v6569_v63 = vpop.f32.mrb[6].mxu1  ;;  %vm1057_vm8 = vcmp.gt.f32.partialorder %v8199_v60, 0.0 }
 0x10d   : > { %v935_v0 = vmul.f32 1.442695, %v898_v61  ;;  %v8204_v1 = vadd.f32 %v6569_v63, %v8177_v40  ;;  %v764_v2 = vpop.f32.mrb[7].mxu1 }
 0x10e   : > { %v933_v3 = vmul.f32 1.442695, %v897_v62  ;;  %v8207_v4 = vadd.f32 %v8177_v40, %v764_v2 }
 0x10f   : > { %7740 = vpow2.f32 %v935_v0  ;;  %v900_v5 = vmin.f32 %v8204_v1, 0.0  ;;  %vm1060_vm9 = vcmp.gt.f32.partialorder %v8204_v1, 0.0 }
 0x110   : > { %7742 = vpow2.f32 %v933_v3  ;;  %v899_v6 = vmin.f32 %v8207_v4, 0.0  ;;  %v6572_v7 = vpop.f32.mrb[8].mxu1  ;;  %vm1059_vm10 = vcmp.gt.f32.partialorder %v8207_v4, 0.0 }
 0x111   : > { %v7733_v8 = vpop.eup %7732  ;;  %v939_v9 = vmul.f32 1.442695, %v900_v5  ;;  %v8216_v10 = vadd.f32 %v6572_v7, %v8177_v40  ;;  %v774_v11 = vpop.f32.mrb[9].mxu1 }
 0x112   : > { %v7735_v12 = vpop.eup %7734  ;;  %v5365_v13 = vadd.f32 -1.0, %v7733_v8  ;;  %v937_v14 = vmul.f32 1.442695, %v899_v6  ;;  %v8220_v15 = vadd.f32 %v8177_v40, %v774_v11 }
 0x113   : > { %v5364_v16 = vadd.f32 -1.0, %v7735_v12  ;;  %7744 = vpow2.f32 %v939_v9  ;;  %v902_v17 = vmin.f32 %v8216_v10, 0.0  ;;  %vm1062_vm11 = vcmp.gt.f32.partialorder %v8216_v10, 0.0 }
 0x114   : > { %v1022_v18 = vmul.f32 1.6732632, %v5365_v13  ;;  %7746 = vpow2.f32 %v937_v14  ;;  %v901_v19 = vmin.f32 %v8220_v15, 0.0  ;;  %v6575_v20 = vpop.f32.mrb[10].mxu1  ;;  %vm1061_vm12 = vcmp.gt.f32.partialorder %v8220_v15, 0.0 }
 0x115   : > { %v7737_v21 = vpop.eup %7736  ;;  %v1021_v22 = vmul.f32 1.6732632, %v5364_v16  ;;  %v943_v23 = vmul.f32 1.442695, %v902_v17  ;;  %v8229_v24 = vadd.f32 %v6575_v20, %v8177_v40  ;;  %v784_v25 = vpop.f32.mrb[11].mxu1 }
 0x116   : > { %v7739_v26 = vpop.eup %7738  ;;  %v1086_v27 = vsel %vm1054_vm2, %v8180_v42, %v1022_v18  ;;  %v5367_v28 = vadd.f32 -1.0, %v7737_v21  ;;  %v941_v29 = vmul.f32 1.442695, %v901_v19  ;;  %v8235_v30 = vadd.f32 %v8177_v40, %v784_v25 }
 0x117   : > { %v1118_v31 = vmul.f32 1.050701, %v1086_v27  ;;  %v1085_v32 = vsel %vm1053_vm4, %v8183_v44, %v1021_v22  ;;  %v5366_v33 = vadd.f32 -1.0, %v7739_v26  ;;  %7748 = vpow2.f32 %v943_v23 }
 0x118   : > { %v1117_v34 = vmul.f32 1.050701, %v1085_v32  ;;  %v1024_v35 = vmul.f32 1.6732632, %v5367_v28  ;;  %7750 = vpow2.f32 %v941_v29  ;;  %v904_v36 = vmin.f32 %v8229_v24, 0.0  ;;  %v6578_v37 = vpop.f32.mrb[12].mxu1 }
 0x119   : > { %v7741_v38 = vpop.eup %7740  ;;  %1151 = vst.msk [vmem:[%s8243_s25 + $0x8] sm:$0xff] %vm1149_vm3, %v1118_v31  ;;  %v1023_v39 = vmul.f32 1.6732632, %v5366_v33  ;;  %v903_v41 = vmin.f32 %v8235_v30, 0.0  ;;  %v794_v42 = vpop.f32.mrb[13].mxu1  ;;  %v8261_v56 = vadd.f32 %v6578_v37, %v8177_v40  ;;  %vm1064_vm13 = vcmp.gt.f32.partialorder %v8229_v24, 0.0 }
 0x11a   : > { %v7743_v43 = vpop.eup %7742  ;;  %1150 = vst.msk [vmem:[%s8243_s25] sm:$0xff] %vm1149_vm3, %v1117_v34  ;;  %v8252_v44 = vpack.c.bf16 %v1118_v31, %v1117_v34  ;;  %v1088_v45 = vsel %vm1056_vm5, %v8188_v49, %v1024_v35  ;;  %v5369_v46 = vadd.f32 -1.0, %v7741_v38  ;;  %v947_v47 = vmul.f32 1.442695, %v904_v36 }
 0x11b   : > { %v1120_v48 = vmul.f32 1.050701, %v1088_v45  ;;  %v1087_v50 = vsel %vm1055_vm6, %v8191_v52, %v1023_v39  ;;  %v5368_v51 = vadd.f32 -1.0, %v7743_v43  ;;  %v945_v53 = vmul.f32 1.442695, %v903_v41 }
 0x11c   : > { %v1119_v54 = vmul.f32 1.050701, %v1087_v50  ;;  %v1026_v55 = vmul.f32 1.6732632, %v5369_v46  ;;  %7752 = vpow2.f32 %v947_v47  ;;  %v6581_v58 = vpop.f32.mrb[14].mxu1  ;;  %v8266_v61 = vadd.f32 %v8177_v40, %v794_v42 }
 0x11d   : > { %v7745_v59 = vpop.eup %7744  ;;  %1153 = vst.msk [vmem:[%s8243_s25 + $0x18] sm:$0xff] %vm1149_vm3, %v1120_v48  ;;  %v1025_v49 = vmul.f32 1.6732632, %v5368_v51  ;;  %7754 = vpow2.f32 %v945_v53  ;;  %v8269_v52 = vadd.f32 %v6581_v58, %v8177_v40  ;;  %v804_v62 = vpop.f32.mrb[15].mxu1  ;;  %v906_v5 = vmin.f32 %v8261_v56, 0.0 }
 0x11e   : > { %v7747_v63 = vpop.eup %7746  ;;  %1152 = vst.msk [vmem:[%s8243_s25 + $0x10] sm:$0xff] %vm1149_vm3, %v1119_v54  ;;  %v8273_v0 = vpack.c.bf16 %v1120_v48, %v1119_v54  ;;  %v1090_v2 = vsel %vm1058_vm7, %v8196_v57, %v1026_v55  ;;  %v5371_v3 = vadd.f32 -1.0, %v7745_v59  ;;  %v905_v57 = vmin.f32 %v8266_v61, 0.0 }
 0x11f   : > { %v1122_v6 = vmul.f32 1.050701, %v1090_v2  ;;  %v1089_v7 = vsel %vm1057_vm8, %v8199_v60, %v1025_v49  ;;  %v5370_v8 = vadd.f32 -1.0, %v7747_v63  ;;  %v951_v12 = vmul.f32 1.442695, %v906_v5 }
 0x120   : > { %v1121_v9 = vmul.f32 1.050701, %v1089_v7  ;;  %v1028_v11 = vmul.f32 1.6732632, %v5371_v3  ;;  %v908_v16 = vmin.f32 %v8269_v52, 0.0  ;;  %v8288_v17 = vadd.f32 %v8177_v40, %v804_v62  ;;  %v6584_v18 = vpop.f32.mrb[16].mxu1 }
 0x121   : > { %v7749_v13 = vpop.eup %7748  ;;  %1155 = vst.msk [vmem:[%s8243_s25 + $0x28] sm:$0xff] %vm1149_vm3, %v1122_v6  ;;  %v1027_v14 = vmul.f32 1.6732632, %v5370_v8  ;;  %7756 = vpow2.f32 %v951_v12  ;;  %v814_v22 = vpop.f32.mrb[17].mxu1  ;;  %v8301_v32 = vadd.f32 %v6584_v18, %v8177_v40  ;;  %vm1063_vm14 = vcmp.gt.f32.partialorder %v8235_v30, 0.0 }
 0x122   : > { %v7751_v60 = vpop.eup %7750  ;;  %1154 = vst.msk [vmem:[%s8243_s25 + $0x20] sm:$0xff] %vm1149_vm3, %v1121_v9  ;;  %v8292_v19 = vpack.c.bf16 %v1122_v6, %v1121_v9  ;;  %v1092_v20 = vsel %vm1060_vm9, %v8204_v1, %v1028_v11  ;;  %v5373_v21 = vadd.f32 -1.0, %v7749_v13  ;;  %v949_v27 = vmul.f32 1.442695, %v905_v57 }
 0x123   : > { %v1124_v23 = vmul.f32 1.050701, %v1092_v20  ;;  %v1091_v25 = vsel %vm1059_vm10, %v8207_v4, %v1027_v14  ;;  %v5372_v26 = vadd.f32 -1.0, %v7751_v60  ;;  %v955_v31 = vmul.f32 1.442695, %v908_v16 }
 0x124   : > { %v1123_v28 = vmul.f32 1.050701, %v1091_v25  ;;  %v1030_v29 = vmul.f32 1.6732632, %v5373_v21  ;;  %7758 = vpow2.f32 %v949_v27  ;;  %v907_v33 = vmin.f32 %v8288_v17, 0.0  ;;  %v6587_v34 = vpop.f32.mrb[18].mxu1 }
 0x125   : > { %1157 = vst.msk [vmem:[%s8243_s25 + $0x38] sm:$0xff] %vm1149_vm3, %v1124_v23  ;;  %v1029_v1 = vmul.f32 1.6732632, %v5372_v26  ;;  %7760 = vpow2.f32 %v955_v31  ;;  %v824_v37 = vpop.f32.mrb[19].mxu1  ;;  %v910_v47 = vmin.f32 %v8301_v32, 0.0  ;;  %v8319_v50 = vadd.f32 %v8177_v40, %v814_v22 }
 0x126   : > { %v7753_v35 = vpop.eup %7752  ;;  %1156 = vst.msk [vmem:[%s8243_s25 + $0x30] sm:$0xff] %vm1149_vm3, %v1123_v28  ;;  %v8309_v4 = vpack.c.bf16 %v1124_v23, %v1123_v28  ;;  %v1094_v36 = vsel %vm1062_vm11, %v8216_v10, %v1030_v29  ;;  %v953_v43 = vmul.f32 1.442695, %v907_v33  ;;  %v8322_v51 = vadd.f32 %v6587_v34, %v8177_v40 }
 0x127   : > { %v7755_v38 = vpop.eup %7754  ;;  %v1126_v39 = vmul.f32 1.050701, %v1094_v36  ;;  %v1093_v41 = vsel %vm1061_vm12, %v8220_v15, %v1029_v1  ;;  %v5375_v42 = vadd.f32 -1.0, %v7753_v35  ;;  %v959_v55 = vmul.f32 1.442695, %v910_v47 }
 0x128   : > { %v1125_v45 = vmul.f32 1.050701, %v1093_v41  ;;  %v5374_v46 = vadd.f32 -1.0, %v7755_v38  ;;  %v6590_v48 = vpop.f32.mrb[20].mxu1  ;;  %7762 = vpow2.f32 %v953_v43  ;;  %v8329_v58 = vadd.f32 %v8177_v40, %v824_v37 }
 0x129   : > { %1159 = vst.msk [vmem:[%s8243_s25 + $0x48] sm:$0xff] %vm1149_vm3, %v1126_v39  ;;  %v1032_v10 = vmul.f32 1.6732632, %v5375_v42  ;;  %v834_v15 = vpop.f32.mrb[21].mxu1  ;;  %v909_v49 = vmin.f32 %v8319_v50, 0.0  ;;  %v912_v62 = vmin.f32 %v8322_v51, 0.0  ;;  %7764 = vpow2.f32 %v959_v55 }
 0x12a   : > { %1158 = vst.msk [vmem:[%s8243_s25 + $0x40] sm:$0xff] %vm1149_vm3, %v1125_v45  ;;  %v8326_v53 = vpack.c.bf16 %v1126_v39, %v1125_v45  ;;  %v1031_v54 = vmul.f32 1.6732632, %v5374_v46  ;;  %vm1066_vm15 = vcmp.gt.f32.partialorder %v8261_v56, 0.0  ;;  %vm1065_vm0 = vcmp.gt.f32.partialorder %v8266_v61, 0.0 }
 0x12b   : > { %v1096_v59 = vsel %vm1064_vm13, %v8229_v24, %v1032_v10  ;;  %v7757_v63 = vpop.eup %7756  ;;  %v957_v8 = vmul.f32 1.442695, %v909_v49  ;;  %v911_v24 = vmin.f32 %v8329_v58, 0.0  ;;  %v963_v9 = vmul.f32 1.442695, %v912_v62 }
 0x12c   : > { %v1128_v2 = vmul.f32 1.050701, %v1096_v59  ;;  %v1095_v3 = vsel %vm1063_vm14, %v8235_v30, %v1031_v54  ;;  %v6593_v5 = vpop.f32.mrb[22].mxu1  ;;  %v5377_v7 = vadd.f32 -1.0, %v7757_v63  ;;  %v8342_v11 = vadd.f32 %v6590_v48, %v8177_v40 }
 0x12d   : > { %v1127_v6 = vmul.f32 1.050701, %v1095_v3  ;;  %v8345_v12 = vadd.f32 %v8177_v40, %v834_v15  ;;  %v844_v30 = vpop.f32.mrb[23].mxu1  ;;  %7766 = vpow2.f32 %v957_v8  ;;  %v961_v16 = vmul.f32 1.442695, %v911_v24 }
 0x12e   : > { %1161 = vst.msk [vmem:[%s8243_s25 + $0x58] sm:$0xff] %vm1149_vm3, %v1128_v2  ;;  %v7759_v13 = vpop.eup %7758  ;;  %v1034_v57 = vmul.f32 1.6732632, %v5377_v7  ;;  %vm1068_vm1 = vcmp.gt.f32.partialorder %v8269_v52, 0.0  ;;  %7768 = vpow2.f32 %v963_v9  ;;  %v914_v20 = vmin.f32 %v8342_v11, 0.0 }
 0x12f   : > { %1160 = vst.msk [vmem:[%s8243_s25 + $0x50] sm:$0xff] %vm1149_vm3, %v1127_v6  ;;  %v8349_v14 = vpack.c.bf16 %v1128_v2, %v1127_v6  ;;  %v7761_v18 = vpop.eup %7760  ;;  %v5376_v60 = vadd.f32 -1.0, %v7759_v13  ;;  %7770 = vpow2.f32 %v961_v16  ;;  %v913_v25 = vmin.f32 %v8345_v12, 0.0 }
 0x130   : > { %v6596_v21 = vpop.f32.mrb[24].mxu1  ;;  %v1098_v22 = vsel %vm1066_vm15, %v8261_v56, %v1034_v57  ;;  %v5379_v23 = vadd.f32 -1.0, %v7761_v18  ;;  %v967_v29 = vmul.f32 1.442695, %v914_v20  ;;  %v8358_v31 = vadd.f32 %v6593_v5, %v8177_v40 }
 0x131   : > { %v854_v26 = vpop.f32.mrb[25].mxu1  ;;  %v1130_v27 = vmul.f32 1.050701, %v1098_v22  ;;  %v1033_v28 = vmul.f32 1.6732632, %v5376_v60  ;;  %vm1067_vm2 = vcmp.gt.f32.partialorder %v8288_v17, 0.0  ;;  %v8362_v35 = vadd.f32 %v8177_v40, %v844_v30 }
 0x132   : > { %v7763_v1 = vpop.eup %7762  ;;  %v1036_v33 = vmul.f32 1.6732632, %v5379_v23  ;;  %v965_v34 = vmul.f32 1.442695, %v913_v25  ;;  %7772 = vpow2.f32 %v967_v29  ;;  %v916_v37 = vmin.f32 %v8358_v31, 0.0 }
 0x133   : > { %1163 = vst.msk [vmem:[%s8243_s25 + $0x68] sm:$0xff] %vm1149_vm3, %v1130_v27  ;;  %v1097_v56 = vsel %vm1065_vm0, %v8266_v61, %v1033_v28  ;;  %v5378_v36 = vadd.f32 -1.0, %v7763_v1  ;;  %vm1070_vm4 = vcmp.gt.f32.partialorder %v8301_v32, 0.0  ;;  %v7765_v43 = vpop.eup %7764  ;;  %v8375_v61 = vadd.f32 %v6596_v21, %v8177_v40 }
 0x134   : > { %v6599_v38 = vpop.f32.mrb[26].mxu1  ;;  %v1129_v39 = vmul.f32 1.050701, %v1097_v56  ;;  %v1100_v41 = vsel %vm1068_vm1, %v8269_v52, %v1036_v33  ;;  %7774 = vpow2.f32 %v965_v34  ;;  %v971_v47 = vmul.f32 1.442695, %v916_v37 }
 0x135   : > { %v864_v42 = vpop.f32.mrb[27].mxu1  ;;  %v1132_v45 = vmul.f32 1.050701, %v1100_v41  ;;  %v1035_v46 = vmul.f32 1.6732632, %v5378_v36  ;;  %v5381_v10 = vadd.f32 -1.0, %v7765_v43  ;;  %v8391_v2 = vadd.f32 %v8177_v40, %v854_v26 }
 0x136   : > { %1162 = vst.msk [vmem:[%s8243_s25 + $0x60] sm:$0xff] %vm1149_vm3, %v1129_v39  ;;  %v8379_v48 = vpack.c.bf16 %v1130_v27, %v1129_v39  ;;  %vm1069_vm5 = vcmp.gt.f32.partialorder %v8319_v50, 0.0  ;;  %v915_v52 = vmin.f32 %v8362_v35, 0.0  ;;  %vm1072_vm6 = vcmp.gt.f32.partialorder %v8322_v51, 0.0 }
 0x137   : > { %1165 = vst.msk [vmem:[%s8243_s25 + $0x78] sm:$0xff] %vm1149_vm3, %v1132_v45  ;;  %v1099_v15 = vsel %vm1067_vm2, %v8288_v17, %v1035_v46  ;;  %7776 = vpow2.f32 %v971_v47  ;;  %v918_v54 = vmin.f32 %v8375_v61, 0.0  ;;  %v7767_v59 = vpop.eup %7766  ;;  %v1038_v62 = vmul.f32 1.6732632, %v5381_v10 }
 0x138   : > { %v6602_v55 = vpop.f32.mrb[28].mxu1  ;;  %v1131_v49 = vmul.f32 1.050701, %v1099_v15  ;;  %v969_v63 = vmul.f32 1.442695, %v915_v52  ;;  %v7769_v3 = vpop.eup %7768  ;;  %v5380_v5 = vadd.f32 -1.0, %v7767_v59  ;;  %v8394_v7 = vadd.f32 %v6599_v38, %v8177_v40 }
 0x139   : > { %v975_v6 = vmul.f32 1.442695, %v918_v54  ;;  %v8397_v17 = vadd.f32 %v8177_v40, %v864_v42  ;;  %v874_v8 = vpop.f32.mrb[29].mxu1  ;;  %v7771_v24 = vpop.eup %7770  ;;  %v1102_v30 = vsel %vm1070_vm4, %v8301_v32, %v1038_v62  ;;  %v5383_v13 = vadd.f32 -1.0, %v7769_v3 }
 0x13a   : > { %1164 = vst.msk [vmem:[%s8243_s25 + $0x70] sm:$0xff] %vm1149_vm3, %v1131_v49  ;;  %v8401_v9 = vpack.c.bf16 %v1132_v45, %v1131_v49  ;;  %7778 = vpow2.f32 %v969_v63  ;;  %v1134_v57 = vmul.f32 1.050701, %v1102_v30  ;;  %v1037_v16 = vmul.f32 1.6732632, %v5380_v5 }
 0x13b   : > { %v5382_v18 = vadd.f32 -1.0, %v7771_v24  ;;  %7780 = vpow2.f32 %v975_v6  ;;  %v1040_v20 = vmul.f32 1.6732632, %v5383_v13  ;;  %vm1071_vm7 = vcmp.gt.f32.partialorder %v8329_v58, 0.0 }
 0x13c   : > { %v6605_v60 = vpop.f32.mrb[30].mxu1  ;;  %v917_v21 = vmin.f32 %v8391_v2, 0.0  ;;  %v920_v22 = vmin.f32 %v8394_v7, 0.0  ;;  %v7773_v25 = vpop.eup %7772  ;;  %1167 = vst.msk [vmem:[%s8243_s25 + $0x88] sm:$0xff] %vm1149_vm3, %v1134_v57  ;;  %v1101_v32 = vsel %vm1069_vm5, %v8319_v50, %v1037_v16  ;;  %vm1074_vm8 = vcmp.gt.f32.partialorder %v8342_v11, 0.0 }
 0x13d   : > { %v884_v23 = vpop.f32.mrb[31].mxu1  ;;  %v1039_v26 = vmul.f32 1.6732632, %v5382_v18  ;;  %v919_v27 = vmin.f32 %v8397_v17, 0.0  ;;  %v1133_v29 = vmul.f32 1.050701, %v1101_v32  ;;  %v1104_v1 = vsel %vm1072_vm6, %v8322_v51, %v1040_v20 }
 0x13e   : > { %v7775_v28 = vpop.eup %7774  ;;  %v5385_v33 = vadd.f32 -1.0, %v7773_v25  ;;  %v973_v34 = vmul.f32 1.442695, %v917_v21  ;;  %v1136_v56 = vmul.f32 1.050701, %v1104_v1  ;;  %vm1073_vm9 = vcmp.gt.f32.partialorder %v8345_v12, 0.0 }
 0x13f   : > { %v1103_v50 = vsel %vm1071_vm7, %v8329_v58, %v1039_v26  ;;  %v5384_v36 = vadd.f32 -1.0, %v7775_v28  ;;  %v979_v37 = vmul.f32 1.442695, %v920_v22  ;;  %1166 = vst.msk [vmem:[%s8243_s25 + $0x80] sm:$0xff] %vm1149_vm3, %v1133_v29  ;;  %v8424_v38 = vpack.c.bf16 %v1134_v57, %v1133_v29 }
 0x140   : > { %v1135_v39 = vmul.f32 1.050701, %v1103_v50  ;;  %v1042_v41 = vmul.f32 1.6732632, %v5385_v33  ;;  %7782 = vpow2.f32 %v973_v34  ;;  %1169 = vst.msk [vmem:[%s8243_s25 + $0x98] sm:$0xff] %vm1149_vm3, %v1136_v56  ;;  %v8437_v47 = vadd.f32 %v6602_v55, %v8177_v40 }
 0x141   : > { %v7777_v42 = vpop.eup %7776  ;;  %v1041_v51 = vmul.f32 1.6732632, %v5384_v36  ;;  %7784 = vpow2.f32 %v979_v37  ;;  %v977_v43 = vmul.f32 1.442695, %v919_v27  ;;  %6975 = vmatprep.subr.bf16.mxu1 %v8424_v38  ;;  %v8442_v15 = vadd.f32 %v8177_v40, %v874_v8 }
 0x142   : > { %1168 = vst.msk [vmem:[%s8243_s25 + $0x90] sm:$0xff] %vm1149_vm3, %v1135_v39  ;;  %v8431_v58 = vpack.c.bf16 %v1136_v56, %v1135_v39  ;;  %v1106_v45 = vsel %vm1074_vm8, %v8342_v11, %v1042_v41  ;;  %v5387_v46 = vadd.f32 -1.0, %v7777_v42  ;;  %6977 = vmatpush3.bf16.msra.mxu1 %v8252_v44  ;;  %v922_v11 = vmin.f32 %v8437_v47, 0.0 }
 0x143   : > { %v1138_v10 = vmul.f32 1.050701, %v1106_v45  ;;  %v1105_v52 = vsel %vm1073_vm9, %v8345_v12, %v1041_v51  ;;  %7786 = vpow2.f32 %v977_v43  ;;  %vm1076_vm10 = vcmp.gt.f32.partialorder %v8358_v31, 0.0 }
 0x144   : > { %v7779_v54 = vpop.eup %7778  ;;  %v1137_v59 = vmul.f32 1.050701, %v1105_v52  ;;  %v1044_v49 = vmul.f32 1.6732632, %v5387_v46  ;;  %6979 = vmatprep.subr.bf16.mxu1 %v8431_v58  ;;  %v921_v12 = vmin.f32 %v8442_v15, 0.0  ;;  %v8452_v63 = vadd.f32 %v6605_v60, %v8177_v40 }
 0x145   : > { %v7781_v55 = vpop.eup %7780  ;;  %1171 = vst.msk [vmem:[%s8243_s25 + $0xa8] sm:$0xff] %vm1149_vm3, %v1138_v10  ;;  %v5386_v62 = vadd.f32 -1.0, %v7779_v54  ;;  %v983_v8 = vmul.f32 1.442695, %v922_v11  ;;  %v8460_v57 = vadd.f32 %v8177_v40, %v884_v23  ;;  %vm1075_vm11 = vcmp.gt.f32.partialorder %v8362_v35, 0.0 }
 0x146   : > { %1170 = vst.msk [vmem:[%s8243_s25 + $0xa0] sm:$0xff] %vm1149_vm3, %v1137_v59  ;;  %v8456_v3 = vpack.c.bf16 %v1138_v10, %v1137_v59  ;;  %v1108_v5 = vsel %vm1076_vm10, %v8358_v31, %v1044_v49  ;;  %v5389_v6 = vadd.f32 -1.0, %v7781_v55  ;;  %v981_v13 = vmul.f32 1.442695, %v921_v12  ;;  %6981 = vmatpush3.bf16.msra.mxu1 %v8273_v0 }
 0x147   : > { %v1140_v24 = vmul.f32 1.050701, %v1108_v5  ;;  %v1043_v30 = vmul.f32 1.6732632, %v5386_v62  ;;  %7788 = vpow2.f32 %v983_v8  ;;  %v924_v18 = vmin.f32 %v8452_v63, 0.0 }
 0x148   : > { %v1046_v16 = vmul.f32 1.6732632, %v5389_v6  ;;  %6983 = vmatprep.subr.bf16.mxu1 %v8456_v3  ;;  %vm1078_vm12 = vcmp.gt.f32.partialorder %v8375_v61, 0.0  ;;  %7790 = vpow2.f32 %v981_v13  ;;  %v923_v40 = vmin.f32 %v8460_v57, 0.0  ;;  %v1184_v13 = vld [vmem:[%s10181_s3 + $0x10] sm:$0xff] }
 0x149   : > { %1173 = vst.msk [vmem:[%s8243_s25 + $0xb8] sm:$0xff] %vm1149_vm3, %v1140_v24  ;;  %v1107_v31 = vsel %vm1075_vm11, %v8362_v35, %v1043_v30  ;;  %v987_v22 = vmul.f32 1.442695, %v924_v18  ;;  %vm1077_vm13 = vcmp.gt.f32.partialorder %v8391_v2, 0.0  ;;  %vm1080_vm14 = vcmp.gt.f32.partialorder %v8394_v7, 0.0  ;;  %v1185_v30 = vld [vmem:[%s10181_s3 + $0x18] sm:$0xff] }
 0x14a   : > { %v7783_v60 = vpop.eup %7782  ;;  %v1139_v20 = vmul.f32 1.050701, %v1107_v31  ;;  %v1110_v21 = vsel %vm1078_vm12, %v8375_v61, %v1046_v16  ;;  %v985_v26 = vmul.f32 1.442695, %v923_v40  ;;  %6985 = vmatpush3.bf16.msra.mxu1 %v8292_v19  ;;  %vm1079_vm15 = vcmp.gt.f32.partialorder %v8397_v17, 0.0  ;;  %v1186_v16 = vld [vmem:[%s10181_s3 + $0x20] sm:$0xff] }
 0x14b   : > { %v7785_v23 = vpop.eup %7784  ;;  %v1142_v25 = vmul.f32 1.050701, %v1110_v21  ;;  %v5388_v32 = vadd.f32 -1.0, %v7783_v60  ;;  %7792 = vpow2.f32 %v987_v22  ;;  %vm1082_vm0 = vcmp.gt.f32.partialorder %v8437_v47, 0.0  ;;  %v1189_v18 = vld [vmem:[%s10181_s3 + $0x38] sm:$0xff]  ;;  %v1188_v31 = vld [vmem:[%s10181_s3 + $0x30] sm:$0xff] }
 0x14c   : > { %1172 = vst.msk [vmem:[%s8243_s25 + $0xb0] sm:$0xff] %vm1149_vm3, %v1139_v20  ;;  %v8475_v35 = vpack.c.bf16 %v1140_v24, %v1139_v20  ;;  %v5391_v27 = vadd.f32 -1.0, %v7785_v23  ;;  %7794 = vpow2.f32 %v985_v26  ;;  %vm1081_vm1 = vcmp.gt.f32.partialorder %v8442_v15, 0.0  ;;  %v1191_v40 = vld [vmem:[%s10181_s3 + $0x48] sm:$0xff]  ;;  %v1190_v60 = vld [vmem:[%s10181_s3 + $0x40] sm:$0xff]  ;;  %v1193_v20 = vld [vmem:[%s10181_s3 + $0x58] sm:$0xff] }
 0x14d   : > { %v7787_v28 = vpop.eup %7786  ;;  %1175 = vst.msk [vmem:[%s8243_s25 + $0xc8] sm:$0xff] %vm1149_vm3, %v1142_v25  ;;  %v1045_v29 = vmul.f32 1.6732632, %v5388_v32  ;;  %vm1084_vm2 = vcmp.gt.f32.partialorder %v8452_v63, 0.0  ;;  %vm1083_vm4 = vcmp.gt.f32.partialorder %v8460_v57, 0.0  ;;  %v1192_v21 = vld [vmem:[%s10181_s3 + $0x50] sm:$0xff] }
 0x14e   : > { %v1048_v61 = vmul.f32 1.6732632, %v5391_v27  ;;  %v5390_v1 = vadd.f32 -1.0, %v7787_v28  ;;  %6987 = vmatprep.subr.bf16.mxu1 %v8475_v35  ;;  %v1195_v22 = vld [vmem:[%s10181_s3 + $0x68] sm:$0xff]  ;;  %v1194_v23 = vld [vmem:[%s10181_s3 + $0x60] sm:$0xff]  ;;  %v1196_v32 = vld [vmem:[%s10181_s3 + $0x70] sm:$0xff] }
 0x14f   : > { %v1109_v33 = vsel %vm1077_vm13, %v8391_v2, %v1045_v29  ;;  %6989 = vmatpush3.bf16.msra.mxu1 %v8309_v4  ;;  %v5397_v26 = vld [vmem:[%s10181_s3 + $0x88] sm:$0xff]  ;;  %v5396_v27 = vld [vmem:[%s10181_s3 + $0x80] sm:$0xff]  ;;  %v5399_v28 = vld [vmem:[%s10181_s3 + $0x98] sm:$0xff]  ;;  %vm3619_vm5 = vcmask 523264   ;;  %vm7945_vm13 = vmmov 0  }
 0x150   : > { %v1141_v34 = vmul.f32 1.050701, %v1109_v33  ;;  %v1112_v56 = vsel %vm1080_vm14, %v8394_v7, %v1048_v61  ;;  %v1047_v50 = vmul.f32 1.6732632, %v5390_v1  ;;  %v5398_v29 = vld [vmem:[%s10181_s3 + $0x90] sm:$0xff]  ;;  %v5401_v61 = vld [vmem:[%s10181_s3 + $0xa8] sm:$0xff] }
 0x151   : > { %v1144_v36 = vmul.f32 1.050701, %v1112_v56  ;;  %v7789_v37 = vpop.eup %7788  ;;  %v5400_v1 = vld [vmem:[%s10181_s3 + $0xa0] sm:$0xff]  ;;  %v5403_v33 = vld [vmem:[%s10181_s3 + $0xb8] sm:$0xff]  ;;  %v5405_v56 = vld [vmem:[%s10181_s3 + $0xc8] sm:$0xff] }
 0x152   : > { %1174 = vst.msk [vmem:[%s8243_s25 + $0xc0] sm:$0xff] %vm1149_vm3, %v1141_v34  ;;  %v8488_v39 = vpack.c.bf16 %v1142_v25, %v1141_v34  ;;  %v1111_v41 = vsel %vm1079_vm15, %v8397_v17, %v1047_v50  ;;  %v7791_v2 = vpop.eup %7790  ;;  %v5393_v51 = vadd.f32 -1.0, %v7789_v37  ;;  %v1197_v25 = vld [vmem:[%s10181_s3 + $0x78] sm:$0xff]  ;;  %v5402_v34 = vld [vmem:[%s10181_s3 + $0xb0] sm:$0xff]  ;;  %v5404_v50 = vld [vmem:[%s10181_s3 + $0xc0] sm:$0xff] }
 0x153   : > { %1177 = vst.msk [vmem:[%s8243_s25 + $0xd8] sm:$0xff] %vm1149_vm3, %v1144_v36  ;;  %v1143_v42 = vmul.f32 1.050701, %v1111_v41  ;;  %v5392_v43 = vadd.f32 -1.0, %v7791_v2  ;;  %v5406_v37 = vld [vmem:[%s10181_s3 + $0xd0] sm:$0xff]  ;;  %v5409_v41 = vld [vmem:[%s10181_s3 + $0xe8] sm:$0xff] }
 0x154   : > { %6991 = vmatprep.subr.bf16.mxu1 %v8488_v39  ;;  %v1050_v45 = vmul.f32 1.6732632, %v5393_v51  ;;  %v5408_v2 = vld [vmem:[%s10181_s3 + $0xe0] sm:$0xff]  ;;  %v5410_v51 = vld [vmem:[%s10181_s3 + $0xf0] sm:$0xff] }
 0x155   : > { %1176 = vst.msk [vmem:[%s8243_s25 + $0xd0] sm:$0xff] %vm1149_vm3, %v1143_v42  ;;  %v8496_v7 = vpack.c.bf16 %v1144_v36, %v1143_v42  ;;  %6993 = vmatpush3.bf16.msra.mxu1 %v8326_v53  ;;  %v7793_v46 = vpop.eup %7792  ;;  %v1049_v17 = vmul.f32 1.6732632, %v5392_v43  ;;  %v5407_v36 = vld [vmem:[%s10181_s3 + $0xd8] sm:$0xff]  ;;  %v5433_v43 = vld [vmem:[%s10181_s3 + $0x108] sm:$0xff] }
 0x156   : > { %v7795_v10 = vpop.eup %7794  ;;  %v1114_v52 = vsel %vm1082_vm0, %v8437_v47, %v1050_v45  ;;  %v5395_v54 = vadd.f32 -1.0, %v7793_v46  ;;  %v5411_v42 = vld [vmem:[%s10181_s3 + $0xf8] sm:$0xff]  ;;  %v5432_v45 = vld [vmem:[%s10181_s3 + $0x100] sm:$0xff]  ;;  %vm4354_vm0 = vcmask 130048  }
 0x157   : > { %6995 = vmatprep.subr.bf16.mxu1 %v8496_v7  ;;  %v1146_v59 = vmul.f32 1.050701, %v1114_v52  ;;  %v1113_v49 = vsel %vm1081_vm1, %v8442_v15, %v1049_v17  ;;  %v5394_v11 = vadd.f32 -1.0, %v7795_v10  ;;  %v5435_v46 = vld [vmem:[%s10181_s3 + $0x118] sm:$0xff]  ;;  %v5434_v17 = vld [vmem:[%s10181_s3 + $0x110] sm:$0xff]  ;;  %v5437_v10 = vld [vmem:[%s10181_s3 + $0x128] sm:$0xff] }
 0x158   : > { %v1145_v55 = vmul.f32 1.050701, %v1113_v49  ;;  %v1052_v62 = vmul.f32 1.6732632, %v5395_v54  ;;  %v5436_v52 = vld [vmem:[%s10181_s3 + $0x120] sm:$0xff]  ;;  %v5439_v54 = vld [vmem:[%s10181_s3 + $0x138] sm:$0xff] }
 0x159   : > { %6997 = vmatpush3.bf16.msra.mxu1 %v8349_v14  ;;  %1179 = vst.msk [vmem:[%s8243_s25 + $0xe8] sm:$0xff] %vm1149_vm3, %v1146_v59  ;;  %v1051_v47 = vmul.f32 1.6732632, %v5394_v11  ;;  %v5441_v49 = vld [vmem:[%s10181_s3 + $0x148] sm:$0xff]  ;;  %v5440_v11 = vld [vmem:[%s10181_s3 + $0x140] sm:$0xff] }
 0x15a   : > { %1178 = vst.msk [vmem:[%s8243_s25 + $0xe0] sm:$0xff] %vm1149_vm3, %v1145_v55  ;;  %v8510_v12 = vpack.c.bf16 %v1146_v59, %v1145_v55  ;;  %v1116_v5 = vsel %vm1084_vm2, %v8452_v63, %v1052_v62  ;;  %v1182_v63 = vld [vmem:[%s10181_s3] sm:$0xff]  ;;  %v5438_v59 = vld [vmem:[%s10181_s3 + $0x130] sm:$0xff]  ;;  %v5443_v55 = vld [vmem:[%s10181_s3 + $0x158] sm:$0xff] }
 0x15b   : > { %v1148_v15 = vmul.f32 1.050701, %v1116_v5  ;;  %v1115_v6 = vsel %vm1083_vm4, %v8460_v57, %v1051_v47  ;;  %v1187_v57 = vld [vmem:[%s10181_s3 + $0x28] sm:$0xff]  ;;  %v5442_v62 = vld [vmem:[%s10181_s3 + $0x150] sm:$0xff]  ;;  %v5444_v5 = vld [vmem:[%s10181_s3 + $0x160] sm:$0xff] }
 0x15c   : > { %v1147_v8 = vmul.f32 1.050701, %v1115_v6  ;;  %6999 = vmatprep.subr.bf16.mxu1 %v8510_v12  ;;  %v5445_v47 = vld [vmem:[%s10181_s3 + $0x168] sm:$0xff]  ;;  %v5446_v6 = vld [vmem:[%s10181_s3 + $0x170] sm:$0xff] }
 0x15d   : > { %1181 = vst.msk [vmem:[%s8243_s25 + $0xf8] sm:$0xff] %vm1149_vm3, %v1148_v15  ;;  %7001 = vmatpush3.bf16.msra.mxu1 %v8379_v48 }
 0x15e   : > { %1180 = vst.msk [vmem:[%s8243_s25 + $0xf0] sm:$0xff] %vm1149_vm3, %v1147_v8  ;;  %v8521_v24 = vpack.c.bf16 %v1148_v15, %v1147_v8  ;;  %v5447_v15 = vld [vmem:[%s10181_s3 + $0x178] sm:$0xff]  ;;  %v5461_v8 = vld [vmem:[%s10181_s3 + $0x188] sm:$0xff] }
 0x160   : > { %7003 = vmatprep.subr.bf16.mxu1 %v8521_v24 }
 0x161   : > { %7005 = vmatpush3.bf16.msra.mxu1 %v8401_v9 }
 0x162   : > { %7007 = vmatprep.subr.bf16.mxu1 %v8424_v38 }
 0x164   : > { %1263 = vmatmul.mubr.f32.vlgmr.msra.gmra.mrb[32].mxu1 %v1182_v63  ;;  %v5460_v63 = vld [vmem:[%s10181_s3 + $0x180] sm:$0xff] }
 0x165   : > { %7009 = vmatpush3.bf16.msra.mxu1 %v8252_v44  ;;  %1267 = vmatprep.mubr.f32.mxu1 %v1185_v30  ;;  %v5463_v30 = vld [vmem:[%s10181_s3 + $0x198] sm:$0xff] }
 0x166   : > { %7011 = vmatprep.subr.bf16.mxu1 %v8431_v58 }
 0x168   : > { %1268 = vmatmul.mubr.f32.gmra.mrb[34].mxu1 %v1184_v13  ;;  %v5462_v13 = vld [vmem:[%s10181_s3 + $0x190] sm:$0xff] }
 0x169   : > { %7013 = vmatpush3.bf16.msra.mxu1 %v8273_v0  ;;  %1272 = vmatprep.mubr.f32.mxu1 %v1187_v57  ;;  %v5465_v57 = vld [vmem:[%s10181_s3 + $0x1a8] sm:$0xff] }
 0x16a   : > { %7015 = vmatprep.subr.bf16.mxu1 %v8456_v3 }
 0x16c   : > { %1273 = vmatmul.mubr.f32.gmra.mrb[36].mxu1 %v1186_v16  ;;  %v5464_v16 = vld [vmem:[%s10181_s3 + $0x1a0] sm:$0xff] }
 0x16d   : > { %7017 = vmatpush3.bf16.msra.mxu1 %v8292_v19  ;;  %1277 = vmatprep.mubr.f32.mxu1 %v1189_v18  ;;  %v5467_v18 = vld [vmem:[%s10181_s3 + $0x1b8] sm:$0xff] }
 0x16e   : > { %7019 = vmatprep.subr.bf16.mxu1 %v8475_v35 }
 0x170   : > { %1278 = vmatmul.mubr.f32.gmra.mrb[38].mxu1 %v1188_v31  ;;  %v5466_v31 = vld [vmem:[%s10181_s3 + $0x1b0] sm:$0xff] }
 0x171   : > { %7021 = vmatpush3.bf16.msra.mxu1 %v8309_v4  ;;  %1282 = vmatprep.mubr.f32.mxu1 %v1191_v40  ;;  %v5469_v40 = vld [vmem:[%s10181_s3 + $0x1c8] sm:$0xff] }
 0x172   : > { %7023 = vmatprep.subr.bf16.mxu1 %v8488_v39 }
 0x174   : > { %1283 = vmatmul.mubr.f32.gmra.mrb[40].mxu1 %v1190_v60  ;;  %v5468_v60 = vld [vmem:[%s10181_s3 + $0x1c0] sm:$0xff] }
 0x175   : > { %7025 = vmatpush3.bf16.msra.mxu1 %v8326_v53  ;;  %1287 = vmatprep.mubr.f32.mxu1 %v1193_v20  ;;  %v5471_v20 = vld [vmem:[%s10181_s3 + $0x1d8] sm:$0xff] }
 0x176   : > { %7027 = vmatprep.subr.bf16.mxu1 %v8496_v7 }
 0x178   : > { %1288 = vmatmul.mubr.f32.gmra.mrb[42].mxu1 %v1192_v21  ;;  %v5412_v21 = vld [vmem:[%s10183_s4 + $0x20] sm:$0xff] }
 0x179   : > { %7029 = vmatpush3.bf16.msra.mxu1 %v8349_v14  ;;  %1292 = vmatprep.mubr.f32.mxu1 %v1195_v22  ;;  %v5413_v22 = vld [vmem:[%s10183_s4 + $0x28] sm:$0xff] }
 0x17a   : > { %7031 = vmatprep.subr.bf16.mxu1 %v8510_v12 }
 0x17c   : > { %1293 = vmatmul.mubr.f32.gmra.mrb[44].mxu1 %v1194_v23  ;;  %v7038_v23 = vpack.c.bf16 %v5413_v22, %v5412_v21 }
 0x17d   : > { %7033 = vmatpush3.bf16.msra.mxu1 %v8379_v48  ;;  %1297 = vmatprep.mubr.f32.mxu1 %v1197_v25  ;;  %v5470_v25 = vld [vmem:[%s10181_s3 + $0x1d0] sm:$0xff] }
 0x17e   : > { %7035 = vmatprep.subr.bf16.mxu1 %v8521_v24  ;;  %7039 = vmatprep.subr.bf16.mxu0 %v7038_v23 }
 0x17f   : > { %7041 = vmatpush3.bf16.msra.mxu0 %v7038_v23 }
 0x180   : > { %1298 = vmatmul.mubr.f32.gmra.mrb[46].mxu1 %v1196_v32  ;;  %v5473_v32 = vld [vmem:[%s10181_s3 + $0x1e8] sm:$0xff] }
 0x181   : > { %7037 = vmatpush3.bf16.msra.mxu1 %v8401_v9  ;;  %1388 = vmatprep.mubr.f32.mxu1 %v5397_v26  ;;  %v5414_v26 = vld [vmem:[%s10183_s4 + $0x30] sm:$0xff] }
 0x182   : > { %7055 = vmatprep.subr.bf16.mxu1 %v8424_v38 }
 0x184   : > { %1389 = vmatmul.mubr.f32.vlgmr.msra.gmra.mrb[48].mxu1 %v5396_v27  ;;  %v5415_v27 = vld [vmem:[%s10183_s4 + $0x38] sm:$0xff] }
 0x185   : > { %7057 = vmatpush3.bf16.msra.mxu1 %v8252_v44  ;;  %1393 = vmatprep.mubr.f32.mxu1 %v5399_v28  ;;  %v5472_v28 = vld [vmem:[%s10181_s3 + $0x1e0] sm:$0xff] }
 0x186   : > { %7059 = vmatprep.subr.bf16.mxu1 %v8431_v58 }
 0x188   : > { %1394 = vmatmul.mubr.f32.gmra.mrb[50].mxu1 %v5398_v29  ;;  %v7042_v29 = vpack.c.bf16 %v5415_v27, %v5414_v26 }
 0x189   : > { %7061 = vmatpush3.bf16.msra.mxu1 %v8273_v0  ;;  %1398 = vmatprep.mubr.f32.mxu1 %v5401_v61  ;;  %v5475_v61 = vld [vmem:[%s10181_s3 + $0x1f8] sm:$0xff] }
 0x18a   : > { %7063 = vmatprep.subr.bf16.mxu1 %v8456_v3  ;;  %7043 = vmatprep.subr.bf16.mxu0 %v7042_v29 }
 0x18b   : > { %7045 = vmatpush3.bf16.msra.mxu0 %v7042_v29 }
 0x18c   : > { %1399 = vmatmul.mubr.f32.gmra.mrb[52].mxu1 %v5400_v1  ;;  %v5474_v1 = vld [vmem:[%s10181_s3 + $0x1f0] sm:$0xff] }
 0x18d   : > { %7065 = vmatpush3.bf16.msra.mxu1 %v8292_v19  ;;  %1403 = vmatprep.mubr.f32.mxu1 %v5403_v33  ;;  %v5517_v33 = vld [vmem:[%s10181_s3 + $0x288] sm:$0xff] }
 0x18e   : > { %7067 = vmatprep.subr.bf16.mxu1 %v8475_v35 }
 0x190   : > { %1404 = vmatmul.mubr.f32.gmra.mrb[54].mxu1 %v5402_v34  ;;  %v5516_v34 = vld [vmem:[%s10181_s3 + $0x280] sm:$0xff] }
 0x191   : > { %7069 = vmatpush3.bf16.msra.mxu1 %v8309_v4  ;;  %1408 = vmatprep.mubr.f32.mxu1 %v5405_v56  ;;  %v5519_v56 = vld [vmem:[%s10181_s3 + $0x298] sm:$0xff] }
 0x192   : > { %7071 = vmatprep.subr.bf16.mxu1 %v8488_v39 }
 0x194   : > { %1409 = vmatmul.mubr.f32.gmra.mrb[56].mxu1 %v5404_v50  ;;  %v5518_v50 = vld [vmem:[%s10181_s3 + $0x290] sm:$0xff] }
 0x195   : > { %7073 = vmatpush3.bf16.msra.mxu1 %v8326_v53  ;;  %1413 = vmatprep.mubr.f32.mxu1 %v5407_v36  ;;  %v5521_v36 = vld [vmem:[%s10181_s3 + $0x2a8] sm:$0xff] }
 0x196   : > { %7075 = vmatprep.subr.bf16.mxu1 %v8496_v7 }
 0x198   : > { %1414 = vmatmul.mubr.f32.gmra.mrb[58].mxu1 %v5406_v37  ;;  %v5520_v37 = vld [vmem:[%s10181_s3 + $0x2a0] sm:$0xff] }
 0x199   : > { %7077 = vmatpush3.bf16.msra.mxu1 %v8349_v14  ;;  %1418 = vmatprep.mubr.f32.mxu1 %v5409_v41  ;;  %v5523_v41 = vld [vmem:[%s10181_s3 + $0x2b8] sm:$0xff] }
 0x19a   : > { %7079 = vmatprep.subr.bf16.mxu1 %v8510_v12 }
 0x19c   : > { %1419 = vmatmul.mubr.f32.gmra.mrb[60].mxu1 %v5408_v2  ;;  %v5522_v2 = vld [vmem:[%s10181_s3 + $0x2b0] sm:$0xff] }
 0x19d   : > { %7081 = vmatpush3.bf16.msra.mxu1 %v8379_v48  ;;  %1423 = vmatprep.mubr.f32.mxu1 %v5411_v42  ;;  %v5525_v42 = vld [vmem:[%s10181_s3 + $0x2c8] sm:$0xff] }
 0x19e   : > { %7083 = vmatprep.subr.bf16.mxu1 %v8521_v24 }
 0x1a0   : > { %1424 = vmatmul.mubr.f32.gmra.mrb[62].mxu1 %v5410_v51  ;;  %v1303_v51 = vld [vmem:[%s10183_s4] sm:$0xff] }
 0x1a1   : > { %7085 = vmatpush3.bf16.msra.mxu1 %v8401_v9  ;;  %1773 = vmatprep.mubr.f32.mxu1 %v5433_v43  ;;  %v1304_v43 = vld [vmem:[%s10183_s4 + $0x8] sm:$0xff] }
 0x1a2   : > { %7095 = vmatprep.subr.bf16.mxu1 %v8424_v38 }
 0x1a4   : > { %1774 = vmatmul.mubr.f32.vlgmr.msra.gmra.mrb[64].mxu1 %v5432_v45  ;;  %v5524_v45 = vld [vmem:[%s10181_s3 + $0x2c0] sm:$0xff] }
 0x1a5   : > { %7097 = vmatpush3.bf16.msra.mxu1 %v8252_v44  ;;  %1778 = vmatprep.mubr.f32.mxu1 %v5435_v46  ;;  %v8834_v46 = vpack.c.bf16 %v1304_v43, %v1303_v51 }
 0x1a6   : > { %7099 = vmatprep.subr.bf16.mxu1 %v8431_v58 }
 0x1a7   : > { %7047 = vmatprep.subr.bf16.mxu0 %v8834_v46 }
 0x1a8   : > { %1779 = vmatmul.mubr.f32.gmra.mrb[66].mxu1 %v5434_v17  ;;  %v5527_v17 = vld [vmem:[%s10181_s3 + $0x2d8] sm:$0xff] }
 0x1a9   : > { %7101 = vmatpush3.bf16.msra.mxu1 %v8273_v0  ;;  %1783 = vmatprep.mubr.f32.mxu1 %v5437_v10  ;;  %v5526_v10 = vld [vmem:[%s10181_s3 + $0x2d0] sm:$0xff] }
 0x1aa   : > { %7103 = vmatprep.subr.bf16.mxu1 %v8456_v3 }
 0x1ac   : > { %1784 = vmatmul.mubr.f32.gmra.mrb[68].mxu1 %v5436_v52  ;;  %v5529_v52 = vld [vmem:[%s10181_s3 + $0x2e8] sm:$0xff] }
 0x1ad   : > { %7105 = vmatpush3.bf16.msra.mxu1 %v8292_v19  ;;  %1788 = vmatprep.mubr.f32.mxu1 %v5439_v54  ;;  %v5528_v54 = vld [vmem:[%s10181_s3 + $0x2e0] sm:$0xff] }
 0x1ae   : > { %7107 = vmatprep.subr.bf16.mxu1 %v8475_v35 }
 0x1b0   : > { %1789 = vmatmul.mubr.f32.gmra.mrb[70].mxu1 %v5438_v59  ;;  %v5531_v59 = vld [vmem:[%s10181_s3 + $0x2f8] sm:$0xff] }
 0x1b1   : > { %7109 = vmatpush3.bf16.msra.mxu1 %v8309_v4  ;;  %1793 = vmatprep.mubr.f32.mxu1 %v5441_v49  ;;  %v5530_v49 = vld [vmem:[%s10181_s3 + $0x2f0] sm:$0xff] }
 0x1b2   : > { %7111 = vmatprep.subr.bf16.mxu1 %v8488_v39 }
 0x1b4   : > { %1794 = vmatmul.mubr.f32.gmra.mrb[72].mxu1 %v5440_v11  ;;  %v5545_v11 = vld [vmem:[%s10181_s3 + $0x308] sm:$0xff] }
 0x1b5   : > { %7113 = vmatpush3.bf16.msra.mxu1 %v8326_v53  ;;  %1798 = vmatprep.mubr.f32.mxu1 %v5443_v55  ;;  %v5544_v55 = vld [vmem:[%s10181_s3 + $0x300] sm:$0xff] }
 0x1b6   : > { %7115 = vmatprep.subr.bf16.mxu1 %v8496_v7 }
 0x1b8   : > { %1799 = vmatmul.mubr.f32.gmra.mrb[74].mxu1 %v5442_v62  ;;  %v5547_v62 = vld [vmem:[%s10181_s3 + $0x318] sm:$0xff] }
 0x1b9   : > { %7117 = vmatpush3.bf16.msra.mxu1 %v8349_v14  ;;  %1803 = vmatprep.mubr.f32.mxu1 %v5445_v47  ;;  %v5546_v47 = vld [vmem:[%s10181_s3 + $0x310] sm:$0xff] }
 0x1ba   : > { %7119 = vmatprep.subr.bf16.mxu1 %v8510_v12 }
 0x1bc   : > { %1804 = vmatmul.mubr.f32.gmra.mrb[76].mxu1 %v5444_v5  ;;  %v5549_v5 = vld [vmem:[%s10181_s3 + $0x328] sm:$0xff] }
 0x1bd   : > { %7121 = vmatpush3.bf16.msra.mxu1 %v8379_v48  ;;  %1808 = vmatprep.mubr.f32.mxu1 %v5447_v15  ;;  %v5548_v15 = vld [vmem:[%s10181_s3 + $0x320] sm:$0xff] }
 0x1be   : > { %7123 = vmatprep.subr.bf16.mxu1 %v8521_v24 }
 0x1c0   : > { %1809 = vmatmul.mubr.f32.gmra.mrb[78].mxu1 %v5446_v6  ;;  %v5551_v6 = vld [vmem:[%s10181_s3 + $0x338] sm:$0xff] }
 0x1c1   : > { %7125 = vmatpush3.bf16.msra.mxu1 %v8401_v9  ;;  %2037 = vmatprep.mubr.f32.mxu1 %v5461_v8  ;;  %v5550_v8 = vld [vmem:[%s10181_s3 + $0x330] sm:$0xff] }
 0x1c2   : > { %7175 = vmatprep.subr.bf16.mxu1 %v8424_v38 }
 0x1c4   : > { %2038 = vmatmul.mubr.f32.vlgmr.msra.gmra.mrb[80].mxu1 %v5460_v63  ;;  %v5553_v63 = vld [vmem:[%s10181_s3 + $0x348] sm:$0xff] }
 0x1c5   : > { %7177 = vmatpush3.bf16.msra.mxu1 %v8252_v44  ;;  %2042 = vmatprep.mubr.f32.mxu1 %v5463_v30  ;;  %v5552_v30 = vld [vmem:[%s10181_s3 + $0x340] sm:$0xff] }
 0x1c6   : > { %7179 = vmatprep.subr.bf16.mxu1 %v8431_v58 }
 0x1c8   : > { %2043 = vmatmul.mubr.f32.gmra.mrb[82].mxu1 %v5462_v13  ;;  %v5555_v13 = vld [vmem:[%s10181_s3 + $0x358] sm:$0xff] }
 0x1c9   : > { %7181 = vmatpush3.bf16.msra.mxu1 %v8273_v0  ;;  %2047 = vmatprep.mubr.f32.mxu1 %v5465_v57  ;;  %v5554_v57 = vld [vmem:[%s10181_s3 + $0x350] sm:$0xff] }
 0x1ca   : > { %7183 = vmatprep.subr.bf16.mxu1 %v8456_v3 }
 0x1cc   : > { %2048 = vmatmul.mubr.f32.gmra.mrb[84].mxu1 %v5464_v16  ;;  %v5557_v16 = vld [vmem:[%s10181_s3 + $0x368] sm:$0xff] }
 0x1cd   : > { %7185 = vmatpush3.bf16.msra.mxu1 %v8292_v19  ;;  %2052 = vmatprep.mubr.f32.mxu1 %v5467_v18  ;;  %v5556_v18 = vld [vmem:[%s10181_s3 + $0x360] sm:$0xff] }
 0x1ce   : > { %7187 = vmatprep.subr.bf16.mxu1 %v8475_v35 }
 0x1d0   : > { %2053 = vmatmul.mubr.f32.gmra.mrb[86].mxu1 %v5466_v31  ;;  %v5559_v31 = vld [vmem:[%s10181_s3 + $0x378] sm:$0xff] }
 0x1d1   : > { %7189 = vmatpush3.bf16.msra.mxu1 %v8309_v4  ;;  %2057 = vmatprep.mubr.f32.mxu1 %v5469_v40  ;;  %v5558_v40 = vld [vmem:[%s10181_s3 + $0x370] sm:$0xff] }
 0x1d2   : > { %7191 = vmatprep.subr.bf16.mxu1 %v8488_v39 }
 0x1d4   : > { %2058 = vmatmul.mubr.f32.gmra.mrb[88].mxu1 %v5468_v60  ;;  %v5573_v60 = vld [vmem:[%s10181_s3 + $0x388] sm:$0xff] }
 0x1d5   : > { %7193 = vmatpush3.bf16.msra.mxu1 %v8326_v53  ;;  %2062 = vmatprep.mubr.f32.mxu1 %v5471_v20  ;;  %v5572_v20 = vld [vmem:[%s10181_s3 + $0x380] sm:$0xff] }
 0x1d6   : > { %7195 = vmatprep.subr.bf16.mxu1 %v8496_v7 }
 0x1d8   : > { %2063 = vmatmul.mubr.f32.gmra.mrb[90].mxu1 %v5470_v25 }
 0x1d9   : > { %7197 = vmatpush3.bf16.msra.mxu1 %v8349_v14  ;;  %2067 = vmatprep.mubr.f32.mxu1 %v5473_v32 }
 0x1da   : > { %7199 = vmatprep.subr.bf16.mxu1 %v8510_v12 }
 0x1dc   : > { %2068 = vmatmul.mubr.f32.gmra.mrb[92].mxu1 %v5472_v28 }
 0x1dd   : > { %7201 = vmatpush3.bf16.msra.mxu1 %v8379_v48  ;;  %2072 = vmatprep.mubr.f32.mxu1 %v5475_v61 }
 0x1de   : > { %7203 = vmatprep.subr.bf16.mxu1 %v8521_v24 }
 0x1e0   : > { %2073 = vmatmul.mubr.f32.gmra.mrb[94].mxu1 %v5474_v1 }
 0x1e1   : > { %7205 = vmatpush3.bf16.msra.mxu1 %v8401_v9  ;;  %2565 = vmatprep.mubr.f32.mxu1 %v5517_v33 }
 0x1e2   : > { %7215 = vmatprep.subr.bf16.mxu1 %v8424_v38 }
 0x1e4   : > { %2566 = vmatmul.mubr.f32.vlgmr.msra.gmra.mrb[96].mxu1 %v5516_v34 }
 0x1e5   : > { %7217 = vmatpush3.bf16.msra.mxu1 %v8252_v44  ;;  %2570 = vmatprep.mubr.f32.mxu1 %v5519_v56 }
 0x1e6   : > { %7219 = vmatprep.subr.bf16.mxu1 %v8431_v58 }
 0x1e8   : > { %2571 = vmatmul.mubr.f32.gmra.mrb[98].mxu1 %v5518_v50 }
 0x1e9   : > { %7221 = vmatpush3.bf16.msra.mxu1 %v8273_v0  ;;  %2575 = vmatprep.mubr.f32.mxu1 %v5521_v36 }
 0x1ea   : > { %7223 = vmatprep.subr.bf16.mxu1 %v8456_v3 }
 0x1ec   : > { %2576 = vmatmul.mubr.f32.gmra.mrb[100].mxu1 %v5520_v37 }
 0x1ed   : > { %7225 = vmatpush3.bf16.msra.mxu1 %v8292_v19  ;;  %2580 = vmatprep.mubr.f32.mxu1 %v5523_v41 }
 0x1ee   : > { %7227 = vmatprep.subr.bf16.mxu1 %v8475_v35 }
 0x1f0   : > { %2581 = vmatmul.mubr.f32.gmra.mrb[102].mxu1 %v5522_v2 }
 0x1f1   : > { %7229 = vmatpush3.bf16.msra.mxu1 %v8309_v4  ;;  %2585 = vmatprep.mubr.f32.mxu1 %v5525_v42 }
 0x1f2   : > { %7231 = vmatprep.subr.bf16.mxu1 %v8488_v39 }
 0x1f4   : > { %2586 = vmatmul.mubr.f32.gmra.mrb[104].mxu1 %v5524_v45 }
 0x1f5   : > { %7233 = vmatpush3.bf16.msra.mxu1 %v8326_v53  ;;  %2590 = vmatprep.mubr.f32.mxu1 %v5527_v17 }
 0x1f6   : > { %7235 = vmatprep.subr.bf16.mxu1 %v8496_v7 }
 0x1f8   : > { %2591 = vmatmul.mubr.f32.gmra.mrb[106].mxu1 %v5526_v10 }
 0x1f9   : > { %7237 = vmatpush3.bf16.msra.mxu1 %v8349_v14  ;;  %2595 = vmatprep.mubr.f32.mxu1 %v5529_v52 }
 0x1fa   : > { %7239 = vmatprep.subr.bf16.mxu1 %v8510_v12 }
 0x1fc   : > { %2596 = vmatmul.mubr.f32.gmra.mrb[108].mxu1 %v5528_v54 }
 0x1fd   : > { %7241 = vmatpush3.bf16.msra.mxu1 %v8379_v48  ;;  %2600 = vmatprep.mubr.f32.mxu1 %v5531_v59  ;;  %v1305_v59 = vld [vmem:[%s10183_s4 + $0x10] sm:$0xff] }
 0x1fe   : > { %7243 = vmatprep.subr.bf16.mxu1 %v8521_v24 }
 0x200   : > { %2601 = vmatmul.mubr.f32.gmra.mrb[110].mxu1 %v5530_v49  ;;  %v1306_v49 = vld [vmem:[%s10183_s4 + $0x18] sm:$0xff] }
 0x201   : > { %7245 = vmatpush3.bf16.msra.mxu1 %v8401_v9  ;;  %2829 = vmatprep.mubr.f32.mxu1 %v5545_v11 }
 0x202   : > { %7255 = vmatprep.subr.bf16.mxu1 %v8424_v38 }
 0x204   : > { %2830 = vmatmul.mubr.f32.vlgmr.msra.gmra.mrb[112].mxu1 %v5544_v55  ;;  %v5575_v55 = vld [vmem:[%s10181_s3 + $0x398] sm:$0xff] }
 0x205   : > { %7257 = vmatpush3.bf16.msra.mxu1 %v8252_v44  ;;  %2834 = vmatprep.mubr.f32.mxu1 %v5547_v62  ;;  %v5574_v62 = vld [vmem:[%s10181_s3 + $0x390] sm:$0xff] }
 0x206   : > { %7259 = vmatprep.subr.bf16.mxu1 %v8431_v58 }
 0x208   : > { %2835 = vmatmul.mubr.f32.gmra.mrb[114].mxu1 %v5546_v47  ;;  %v5577_v47 = vld [vmem:[%s10181_s3 + $0x3a8] sm:$0xff] }
 0x209   : > { %7261 = vmatpush3.bf16.msra.mxu1 %v8273_v0  ;;  %2839 = vmatprep.mubr.f32.mxu1 %v5549_v5 }
 0x20a   : > { %7263 = vmatprep.subr.bf16.mxu1 %v8456_v3 }
 0x20c   : > { %2840 = vmatmul.mubr.f32.gmra.mrb[116].mxu1 %v5548_v15 }
 0x20d   : > { %7265 = vmatpush3.bf16.msra.mxu1 %v8292_v19  ;;  %2844 = vmatprep.mubr.f32.mxu1 %v5551_v6  ;;  %v7050_v6 = vpack.c.bf16 %v1306_v49, %v1305_v59 }
 0x20e   : > { %7267 = vmatprep.subr.bf16.mxu1 %v8475_v35 }
 0x210   : > { %2845 = vmatmul.mubr.f32.gmra.mrb[118].mxu1 %v5550_v8  ;;  %v5448_v8 = vld [vmem:[%s10183_s4 + $0x40] sm:$0xff] }
 0x211   : > { %7269 = vmatpush3.bf16.msra.mxu1 %v8309_v4  ;;  %2849 = vmatprep.mubr.f32.mxu1 %v5553_v63  ;;  %v5449_v63 = vld [vmem:[%s10183_s4 + $0x48] sm:$0xff] }
 0x212   : > { %7271 = vmatprep.subr.bf16.mxu1 %v8488_v39 }
 0x214   : > { %2850 = vmatmul.mubr.f32.gmra.mrb[120].mxu1 %v5552_v30  ;;  %v5576_v30 = vld [vmem:[%s10181_s3 + $0x3a0] sm:$0xff] }
 0x215   : > { %7273 = vmatpush3.bf16.msra.mxu1 %v8326_v53  ;;  %2854 = vmatprep.mubr.f32.mxu1 %v5555_v13 }
 0x216   : > { %7275 = vmatprep.subr.bf16.mxu1 %v8496_v7 }
 0x218   : > { %2855 = vmatmul.mubr.f32.gmra.mrb[122].mxu1 %v5554_v57  ;;  %v5579_v57 = vld [vmem:[%s10181_s3 + $0x3b8] sm:$0xff] }
 0x219   : > { %7277 = vmatpush3.bf16.msra.mxu1 %v8349_v14  ;;  %2859 = vmatprep.mubr.f32.mxu1 %v5557_v16 }
 0x21a   : > { %7279 = vmatprep.subr.bf16.mxu1 %v8510_v12 }
 0x21c   : > { %2860 = vmatmul.mubr.f32.gmra.mrb[124].mxu1 %v5556_v18 }
 0x21d   : > { %7281 = vmatpush3.bf16.msra.mxu1 %v8379_v48  ;;  %2864 = vmatprep.mubr.f32.mxu1 %v5559_v31  ;;  %v8995_v31 = vpack.c.bf16 %v5449_v63, %v5448_v8  ;;  %v5476_v63 = vld [vmem:[%s10183_s4 + $0x60] sm:$0xff] }
 0x21e   : > { %7283 = vmatprep.subr.bf16.mxu1 %v8521_v24 }
 0x220   : > { %2865 = vmatmul.mubr.f32.gmra.mrb[126].mxu1 %v5558_v40  ;;  %v5578_v40 = vld [vmem:[%s10181_s3 + $0x3b0] sm:$0xff] }
 0x221   : > { %7285 = vmatpush3.bf16.msra.mxu1 %v8401_v9  ;;  %3093 = vmatprep.mubr.f32.mxu1 %v5573_v60 }
 0x222   : > { %7295 = vmatprep.subr.bf16.mxu1 %v8424_v38 }
 0x224   : > { %3094 = vmatmul.mubr.f32.vlgmr.msra.gmra.mrb[128].mxu1 %v5572_v20  ;;  %v5581_v20 = vld [vmem:[%s10181_s3 + $0x3c8] sm:$0xff] }
 0x225   : > { %7297 = vmatpush3.bf16.msra.mxu1 %v8252_v44  ;;  %3098 = vmatprep.mubr.f32.mxu1 %v5575_v55  ;;  %v5451_v55 = vld [vmem:[%s10183_s4 + $0x58] sm:$0xff] }
 0x226   : > { %7299 = vmatprep.subr.bf16.mxu1 %v8431_v58 }
 0x228   : > { %3099 = vmatmul.mubr.f32.gmra.mrb[130].mxu1 %v5574_v62  ;;  %v5600_v62 = vld [vmem:[%s10181_s3 + $0x400] sm:$0xff] }
 0x229   : > { %7301 = vmatpush3.bf16.msra.mxu1 %v8273_v0  ;;  %3103 = vmatprep.mubr.f32.mxu1 %v5577_v47 }
 0x22a   : > { %7303 = vmatprep.subr.bf16.mxu1 %v8456_v3 }
 0x22c   : > { %3104 = vmatmul.mubr.f32.gmra.mrb[132].mxu1 %v5576_v30  ;;  %v5477_v30 = vld [vmem:[%s10183_s4 + $0x68] sm:$0xff] }
 0x22d   : > { %7305 = vmatpush3.bf16.msra.mxu1 %v8292_v19  ;;  %3108 = vmatprep.mubr.f32.mxu1 %v5579_v57  ;;  %v5605_v57 = vld [vmem:[%s10181_s3 + $0x428] sm:$0xff] }
 0x22e   : > { %7307 = vmatprep.subr.bf16.mxu1 %v8475_v35 }
 0x230   : > { %3109 = vmatmul.mubr.f32.gmra.mrb[134].mxu1 %v5578_v40  ;;  %v7126_v40 = vpack.c.bf16 %v5477_v30, %v5476_v63 }
 0x231   : > { %7309 = vmatpush3.bf16.msra.mxu1 %v8309_v4  ;;  %3113 = vmatprep.mubr.f32.mxu1 %v5581_v20 }
 0x232   : > { %7311 = vmatprep.subr.bf16.mxu1 %v8488_v39 }
 0x235   : > { %7313 = vmatpush3.bf16.msra.mxu1 %v8326_v53 }
 0x236   : > { %7315 = vmatprep.subr.bf16.mxu1 %v8496_v7 }
 0x237   : > { %v5876_v21 = vpop.f32.mrb[32].mxu1 }
 0x238   : > { %v5877_v22 = vpop.f32.mrb[33].mxu1 }
 0x239   : > { %7317 = vmatpush3.bf16.msra.mxu1 %v8349_v14  ;;  %v8945_v23 = vadd.f32 %v5877_v22, %v5876_v21  ;;  %v5580_v22 = vld [vmem:[%s10181_s3 + $0x3c0] sm:$0xff] }
 0x23a   : > { %7319 = vmatprep.subr.bf16.mxu1 %v8510_v12  ;;  %3114 = vmatmul.mubr.f32.gmra.mrb[136].mxu1 %v5580_v22 }
 0x23b   : > { %v5879_v25 = vpop.f32.mrb[34].mxu1 }
 0x23c   : > { %v5880_v32 = vpop.f32.mrb[35].mxu1 }
 0x23d   : > { %7321 = vmatpush3.bf16.msra.mxu1 %v8379_v48  ;;  %v8949_v26 = vadd.f32 %v5880_v32, %v5879_v25  ;;  %v5583_v32 = vld [vmem:[%s10181_s3 + $0x3d8] sm:$0xff] }
 0x23e   : > { %7323 = vmatprep.subr.bf16.mxu1 %v8521_v24  ;;  %3118 = vmatprep.mubr.f32.mxu1 %v5583_v32  ;;  %v5479_v32 = vld [vmem:[%s10183_s4 + $0x78] sm:$0xff] }
 0x23f   : > { %v5882_v27 = vpop.f32.mrb[36].mxu1 }
 0x240   : > { %v5883_v28 = vpop.f32.mrb[37].mxu1 }
 0x241   : > { %7325 = vmatpush3.bf16.msra.mxu1 %v8401_v9  ;;  %v8953_v29 = vadd.f32 %v5883_v28, %v5882_v27 }
 0x243   : > { %v5885_v61 = vpop.f32.mrb[38].mxu1 }
 0x244   : > { %v5886_v1 = vpop.f32.mrb[39].mxu1 }
 0x245   : > { %v8955_v33 = vadd.f32 %v5886_v1, %v5885_v61  ;;  %v5582_v61 = vld [vmem:[%s10181_s3 + $0x3d0] sm:$0xff] }
 0x246   : > { %3119 = vmatmul.mubr.f32.gmra.mrb[138].mxu1 %v5582_v61 }
 0x247   : > { %v5888_v34 = vpop.f32.mrb[40].mxu1 }
 0x248   : > { %v5889_v56 = vpop.f32.mrb[41].mxu1 }
 0x249   : > { %v8957_v50 = vadd.f32 %v5889_v56, %v5888_v34  ;;  %v5585_v34 = vld [vmem:[%s10181_s3 + $0x3e8] sm:$0xff] }
 0x24a   : > { %3123 = vmatprep.mubr.f32.mxu1 %v5585_v34  ;;  %v5610_v34 = vld [vmem:[%s10181_s3 + $0x450] sm:$0xff] }
 0x24b   : > { %v5891_v36 = vpop.f32.mrb[42].mxu1 }
 0x24c   : > { %v5892_v37 = vpop.f32.mrb[43].mxu1 }
 0x24d   : > { %v8959_v41 = vadd.f32 %v5892_v37, %v5891_v36  ;;  %v5584_v37 = vld [vmem:[%s10181_s3 + $0x3e0] sm:$0xff] }
 0x24e   : > { %3124 = vmatmul.mubr.f32.gmra.mrb[140].mxu1 %v5584_v37 }
 0x24f   : > { %v5894_v2 = vpop.f32.mrb[44].mxu1 }
 0x250   : > { %v5895_v42 = vpop.f32.mrb[45].mxu1 }
 0x251   : > { %v8961_v51 = vadd.f32 %v5895_v42, %v5894_v2  ;;  %v5587_v42 = vld [vmem:[%s10181_s3 + $0x3f8] sm:$0xff] }
 0x252   : > { %3128 = vmatprep.mubr.f32.mxu1 %v5587_v42 }
 0x253   : > { %v5897_v43 = vpop.f32.mrb[46].mxu1 }
 0x254   : > { %v5898_v45 = vpop.f32.mrb[47].mxu1 }
 0x255   : > { %v8963_v17 = vadd.f32 %v5898_v45, %v5897_v43 }
 0x257   : > { %v5932_v10 = vpop.f32.mrb[48].mxu1 }
 0x258   : > { %v5933_v52 = vpop.f32.mrb[49].mxu1 }
 0x259   : > { %v5934_v54 = vadd.f32 %v5933_v52, %v5932_v10  ;;  %v5586_v10 = vld [vmem:[%s10181_s3 + $0x3f0] sm:$0xff] }
 0x25a   : > { %3129 = vmatmul.mubr.f32.gmra.mrb[142].mxu1 %v5586_v10 }
 0x25b   : > { %v5935_v11 = vpop.f32.mrb[50].mxu1  ;;  %6614 = vmatprep.mubr.msk.f32.mxu0 %vm1149_vm3, %v5934_v54  ;;  %v5601_v54 = vld [vmem:[%s10181_s3 + $0x408] sm:$0xff] }
 0x25c   : > { %v5936_v5 = vpop.f32.mrb[51].mxu1  ;;  %3357 = vmatprep.mubr.f32.mxu1 %v5601_v54 }
 0x25d   : > { %v5937_v15 = vadd.f32 %v5936_v5, %v5935_v11  ;;  %v5450_v11 = vld [vmem:[%s10183_s4 + $0x50] sm:$0xff]  ;;  %v5603_v5 = vld [vmem:[%s10181_s3 + $0x418] sm:$0xff] }
 0x25e   : > { %v7090_v8 = vpack.c.bf16 %v5451_v55, %v5450_v11  ;;  %3358 = vmatmul.mubr.f32.vlgmr.msra.gmra.mrb[144].mxu1 %v5600_v62 }
 0x25f   : > { %v5938_v13 = vpop.f32.mrb[52].mxu1  ;;  %6615 = vmatmul.mubr.msk.f32.vlgmr.msra.gmra.mrb[0].mxu0 %vm1149_vm3, %v5937_v15  ;;  %3362 = vmatprep.mubr.f32.mxu1 %v5603_v5 }
 0x260   : > { %v5939_v16 = vpop.f32.mrb[53].mxu1  ;;  %7049 = vmatpush3.bf16.msra.mxu0 %v8834_v46 }
 0x261   : > { %v5940_v18 = vadd.f32 %v5939_v16, %v5938_v13  ;;  %7051 = vmatprep.subr.bf16.mxu0 %v7050_v6  ;;  %v5602_v13 = vld [vmem:[%s10181_s3 + $0x410] sm:$0xff] }
 0x262   : > { %3363 = vmatmul.mubr.f32.gmra.mrb[146].mxu1 %v5602_v13 }
 0x263   : > { %v5941_v60 = vpop.f32.mrb[54].mxu1  ;;  %6617 = vmatprep.mubr.msk.f32.mxu0 %vm1149_vm3, %v5940_v18  ;;  %3367 = vmatprep.mubr.f32.mxu1 %v5605_v57 }
 0x264   : > { %v5942_v21 = vpop.f32.mrb[55].mxu1  ;;  %7053 = vmatpush3.bf16.msra.mxu0 %v7050_v6 }
 0x265   : > { %v5943_v46 = vadd.f32 %v5942_v21, %v5941_v60  ;;  %7087 = vmatprep.subr.bf16.mxu0 %v8995_v31  ;;  %v5606_v21 = vld [vmem:[%s10181_s3 + $0x430] sm:$0xff] }
 0x267   : > { %v5944_v25 = vpop.f32.mrb[56].mxu1  ;;  %6618 = vmatmul.mubr.msk.f32.gmra.mrb[2].mxu0 %vm1149_vm3, %v5943_v46  ;;  %v5609_v46 = vld [vmem:[%s10181_s3 + $0x448] sm:$0xff] }
 0x268   : > { %v5945_v27 = vpop.f32.mrb[57].mxu1 }
 0x269   : > { %v5946_v28 = vadd.f32 %v5945_v27, %v5944_v25  ;;  %v5478_v25 = vld [vmem:[%s10183_s4 + $0x70] sm:$0xff]  ;;  %v5611_v27 = vld [vmem:[%s10181_s3 + $0x458] sm:$0xff] }
 0x26a   : > { %v7130_v61 = vpack.c.bf16 %v5479_v32, %v5478_v25  ;;  %v5492_v25 = vld [vmem:[%s10181_s3 + $0x220] sm:$0xff] }
 0x26b   : > { %v5947_v1 = vpop.f32.mrb[58].mxu1  ;;  %6620 = vmatprep.mubr.msk.f32.mxu0 %vm1149_vm3, %v5946_v28 }
 0x26c   : > { %v5948_v56 = vpop.f32.mrb[59].mxu1 }
 0x26d   : > { %v5949_v36 = vadd.f32 %v5948_v56, %v5947_v1 }
 0x26f   : > { %v5950_v2 = vpop.f32.mrb[60].mxu1  ;;  %6621 = vmatmul.mubr.msk.f32.gmra.mrb[4].mxu0 %vm1149_vm3, %v5949_v36 }
 0x270   : > { %v5951_v43 = vpop.f32.mrb[61].mxu1 }
 0x271   : > { %v5952_v45 = vadd.f32 %v5951_v43, %v5950_v2  ;;  %v5612_v2 = vld [vmem:[%s10181_s3 + $0x460] sm:$0xff]  ;;  %v5615_v43 = vld [vmem:[%s10181_s3 + $0x478] sm:$0xff] }
 0x273   : > { %v5953_v52 = vpop.f32.mrb[62].mxu1  ;;  %6623 = vmatprep.mubr.msk.f32.mxu0 %vm1149_vm3, %v5952_v45 }
 0x274   : > { %v5954_v59 = vpop.f32.mrb[63].mxu1 }
 0x275   : > { %v5955_v49 = vadd.f32 %v5954_v59, %v5953_v52  ;;  %v5614_v52 = vld [vmem:[%s10181_s3 + $0x470] sm:$0xff] }
 0x277   : > { %6624 = vmatmul.mubr.msk.f32.gmra.mrb[6].mxu0 %vm1149_vm3, %v5955_v49  ;;  %v6012_v47 = vpop.f32.mrb[64].mxu1 }
 0x278   : > { %6634 = vmatprep.mubr.msk.f32.mxu0 %vm1149_vm3, %v8945_v23  ;;  %v6013_v15 = vpop.f32.mrb[65].mxu1 }
 0x279   : > { %v6014_v6 = vadd.f32 %v6013_v15, %v6012_v47 }
 0x27b   : > { %6635 = vmatmul.mubr.msk.f32.vlgmr.msra.gmra.mrb[0].mxu0 %vm1149_vm3, %v8949_v26  ;;  %v6015_v23 = vpop.f32.mrb[66].mxu1  ;;  %v5604_v26 = vld [vmem:[%s10181_s3 + $0x420] sm:$0xff] }
 0x27c   : > { %6637 = vmatprep.mubr.msk.f32.mxu0 %vm1149_vm3, %v8953_v29  ;;  %7089 = vmatpush3.bf16.msra.mxu0 %v8995_v31  ;;  %v6016_v16 = vpop.f32.mrb[67].mxu1  ;;  %v5607_v29 = vld [vmem:[%s10181_s3 + $0x438] sm:$0xff] }
 0x27d   : > { %7091 = vmatprep.subr.bf16.mxu0 %v7090_v8  ;;  %v6017_v18 = vadd.f32 %v6016_v16, %v6015_v23  ;;  %3368 = vmatmul.mubr.f32.gmra.mrb[148].mxu1 %v5604_v26 }
 0x27e   : > { %3372 = vmatprep.mubr.f32.mxu1 %v5607_v29 }
 0x27f   : > { %6638 = vmatmul.mubr.msk.f32.gmra.mrb[2].mxu0 %vm1149_vm3, %v8955_v33  ;;  %v6018_v60 = vpop.f32.mrb[68].mxu1 }
 0x280   : > { %6640 = vmatprep.mubr.msk.f32.mxu0 %vm1149_vm3, %v8957_v50  ;;  %7093 = vmatpush3.bf16.msra.mxu0 %v7090_v8  ;;  %v6019_v31 = vpop.f32.mrb[69].mxu1 }
 0x281   : > { %7127 = vmatprep.subr.bf16.mxu0 %v7126_v40  ;;  %v6020_v20 = vadd.f32 %v6019_v31, %v6018_v60  ;;  %3373 = vmatmul.mubr.f32.gmra.mrb[150].mxu1 %v5606_v21  ;;  %v5488_v31 = vld [vmem:[%s10181_s3 + $0x200] sm:$0xff]  ;;  %v5491_v21 = vld [vmem:[%s10181_s3 + $0x218] sm:$0xff] }
 0x282   : > { %3377 = vmatprep.mubr.f32.mxu1 %v5609_v46  ;;  %v5493_v46 = vld [vmem:[%s10181_s3 + $0x228] sm:$0xff] }
 0x283   : > { %6641 = vmatmul.mubr.msk.f32.gmra.mrb[4].mxu0 %vm1149_vm3, %v8959_v41  ;;  %v6021_v33 = vpop.f32.mrb[70].mxu1  ;;  %v5608_v41 = vld [vmem:[%s10181_s3 + $0x440] sm:$0xff] }
 0x284   : > { %6643 = vmatprep.mubr.msk.f32.mxu0 %vm1149_vm3, %v8961_v51  ;;  %v6022_v50 = vpop.f32.mrb[71].mxu1 }
 0x285   : > { %v6023_v22 = vadd.f32 %v6022_v50, %v6021_v33  ;;  %3378 = vmatmul.mubr.f32.gmra.mrb[152].mxu1 %v5608_v41  ;;  %v5490_v33 = vld [vmem:[%s10181_s3 + $0x210] sm:$0xff]  ;;  %v5495_v41 = vld [vmem:[%s10181_s3 + $0x238] sm:$0xff] }
 0x286   : > { %3382 = vmatprep.mubr.f32.mxu1 %v5611_v27  ;;  %v5494_v27 = vld [vmem:[%s10181_s3 + $0x230] sm:$0xff] }
 0x287   : > { %6644 = vmatmul.mubr.msk.f32.gmra.mrb[6].mxu0 %vm1149_vm3, %v8963_v17  ;;  %v6024_v51 = vpop.f32.mrb[72].mxu1  ;;  %v5613_v17 = vld [vmem:[%s10181_s3 + $0x468] sm:$0xff] }
 0x288   : > { %6654 = vmatprep.mubr.msk.f32.mxu0 %vm1149_vm3, %v6014_v6  ;;  %v6025_v28 = vpop.f32.mrb[73].mxu1 }
 0x289   : > { %v6026_v1 = vadd.f32 %v6025_v28, %v6024_v51  ;;  %3383 = vmatmul.mubr.f32.gmra.mrb[154].mxu1 %v5610_v34  ;;  %v5497_v28 = vld [vmem:[%s10181_s3 + $0x248] sm:$0xff]  ;;  %v5498_v34 = vld [vmem:[%s10181_s3 + $0x250] sm:$0xff] }
 0x28a   : > { %3387 = vmatprep.mubr.f32.mxu1 %v5613_v17  ;;  %v5500_v17 = vld [vmem:[%s10181_s3 + $0x260] sm:$0xff] }
 0x28b   : > { %6655 = vmatmul.mubr.msk.f32.vlgmr.msra.gmra.mrb[0].mxu0 %vm1149_vm3, %v6017_v18  ;;  %v6027_v56 = vpop.f32.mrb[74].mxu1 }
 0x28c   : > { %7129 = vmatpush3.bf16.msra.mxu0 %v7126_v40  ;;  %6657 = vmatprep.mubr.msk.f32.mxu0 %vm1149_vm3, %v6020_v20  ;;  %v6028_v36 = vpop.f32.mrb[75].mxu1 }
 0x28d   : > { %7131 = vmatprep.subr.bf16.mxu0 %v7130_v61  ;;  %v6029_v37 = vadd.f32 %v6028_v36, %v6027_v56  ;;  %3388 = vmatmul.mubr.f32.gmra.mrb[156].mxu1 %v5612_v2  ;;  %v5501_v56 = vld [vmem:[%s10181_s3 + $0x268] sm:$0xff]  ;;  %v5503_v36 = vld [vmem:[%s10181_s3 + $0x278] sm:$0xff] }
 0x28e   : > { %3392 = vmatprep.mubr.f32.mxu1 %v5615_v43 }
 0x28f   : > { %6658 = vmatmul.mubr.msk.f32.gmra.mrb[2].mxu0 %vm1149_vm3, %v6023_v22  ;;  %v6030_v42 = vpop.f32.mrb[76].mxu1 }
 0x290   : > { %7133 = vmatpush3.bf16.msra.mxu0 %v7130_v61  ;;  %v6031_v45 = vpop.f32.mrb[77].mxu1  ;;  %6660 = vmatprep.mubr.msk.f32.mxu0 %vm1149_vm3, %v6026_v1  ;;  %v5496_v61 = vld [vmem:[%s10181_s3 + $0x240] sm:$0xff]  ;;  %v5499_v1 = vld [vmem:[%s10181_s3 + $0x258] sm:$0xff] }
 0x291   : > { %7135 = vmatprep.subr.bf16.mxu0 %v8424_v38  ;;  %v6032_v10 = vadd.f32 %v6031_v45, %v6030_v42  ;;  %3393 = vmatmul.mubr.f32.gmra.mrb[158].mxu1 %v5614_v52 }
 0x293   : > { %v6033_v54 = vpop.f32.mrb[78].mxu1  ;;  %6661 = vmatmul.mubr.msk.f32.gmra.mrb[4].mxu0 %vm1149_vm3, %v6029_v37  ;;  %v5502_v37 = vld [vmem:[%s10181_s3 + $0x270] sm:$0xff] }
 0x294   : > { %v6034_v59 = vpop.f32.mrb[79].mxu1  ;;  %6663 = vmatprep.mubr.msk.f32.mxu0 %vm1149_vm3, %v6032_v10 }
 0x295   : > { %v6035_v49 = vadd.f32 %v6034_v59, %v6033_v54 }
 0x297   : > { %v6080_v11 = vpop.f32.mrb[80].mxu1  ;;  %6664 = vmatmul.mubr.msk.f32.gmra.mrb[6].mxu0 %vm1149_vm3, %v6035_v49 }
 0x298   : > { %v6081_v55 = vpop.f32.mrb[81].mxu1 }
 0x299   : > { %v6082_v38 = vadd.f32 %v6081_v55, %v6080_v11 }
 0x29b   : > { %v6083_v62 = vpop.f32.mrb[82].mxu1  ;;  %6674 = vmatprep.mubr.msk.f32.mxu0 %vm1149_vm3, %v6082_v38 }
 0x29c   : > { %v6084_v47 = vpop.f32.mrb[83].mxu1 }
 0x29d   : > { %v6085_v5 = vadd.f32 %v6084_v47, %v6083_v62 }
 0x29f   : > { %6675 = vmatmul.mubr.msk.f32.vlgmr.msra.gmra.mrb[0].mxu0 %vm1149_vm3, %v6085_v5  ;;  %v6086_v15 = vpop.f32.mrb[84].mxu1  ;;  %v5506_v5 = vld [vmem:[%s10183_s4 + $0x90] sm:$0xff] }
 0x2a0   : > { %7137 = vmatpush3.bf16.msra.mxu0 %v8252_v44  ;;  %v6087_v6 = vpop.f32.mrb[85].mxu1 }
 0x2a1   : > { %7139 = vmatprep.subr.bf16.mxu0 %v8431_v58  ;;  %v6088_v8 = vadd.f32 %v6087_v6, %v6086_v15  ;;  %v5507_v15 = vld [vmem:[%s10183_s4 + $0x98] sm:$0xff] }
 0x2a3   : > { %v6089_v63 = vpop.f32.mrb[86].mxu1  ;;  %6677 = vmatprep.mubr.msk.f32.mxu0 %vm1149_vm3, %v6088_v8  ;;  %v7170_v8 = vpack.c.bf16 %v5507_v15, %v5506_v5 }
 0x2a4   : > { %7141 = vmatpush3.bf16.msra.mxu0 %v8273_v0  ;;  %v6090_v30 = vpop.f32.mrb[87].mxu1 }
 0x2a5   : > { %7143 = vmatprep.subr.bf16.mxu0 %v8456_v3  ;;  %v6091_v13 = vadd.f32 %v6090_v30, %v6089_v63 }
 0x2a7   : > { %v6092_v23 = vpop.f32.mrb[88].mxu1  ;;  %6678 = vmatmul.mubr.msk.f32.gmra.mrb[2].mxu0 %vm1149_vm3, %v6091_v13 }
 0x2a8   : > { %7145 = vmatpush3.bf16.msra.mxu0 %v8292_v19  ;;  %v6093_v57 = vpop.f32.mrb[89].mxu1 }
 0x2a9   : > { %7147 = vmatprep.subr.bf16.mxu0 %v8475_v35  ;;  %v6094_v44 = vadd.f32 %v6093_v57, %v6092_v23 }
 0x2ab   : > { %v6095_v58 = vpop.f32.mrb[90].mxu1  ;;  %6680 = vmatprep.mubr.msk.f32.mxu0 %vm1149_vm3, %v6094_v44 }
 0x2ac   : > { %7149 = vmatpush3.bf16.msra.mxu0 %v8309_v4  ;;  %v6096_v16 = vpop.f32.mrb[91].mxu1 }
 0x2ad   : > { %7151 = vmatprep.subr.bf16.mxu0 %v8488_v39  ;;  %v6097_v0 = vadd.f32 %v6096_v16, %v6095_v58  ;;  %v5489_v39 = vld [vmem:[%s10181_s3 + $0x208] sm:$0xff]  ;;  %s5805_s3 = sshll.u32 %s8053_s22, 10 }
 0x2ae   : > { %s10019_s19 = scalar_lea.hbm %s10157_s13, %s5805_s3  ;;  %s7947_s3 = smov [#allocation4]  }
 0x2af   : > { %v6098_v3 = vpop.f32.mrb[92].mxu1  ;;  %6681 = vmatmul.mubr.msk.f32.gmra.mrb[4].mxu0 %vm1149_vm3, %v6097_v0 }
 0x2b0   : > { %7153 = vmatpush3.bf16.msra.mxu0 %v8326_v53  ;;  %v6099_v18 = vpop.f32.mrb[93].mxu1  ;;  %v5504_v53 = vld [vmem:[%s10183_s4 + $0x80] sm:$0xff] }
 0x2b1   : > { %7155 = vmatprep.subr.bf16.mxu0 %v8496_v7  ;;  %v6100_v19 = vadd.f32 %v6099_v18, %v6098_v3  ;;  %v5505_v7 = vld [vmem:[%s10183_s4 + $0x88] sm:$0xff] }
 0x2b2   : > { %v7166_v60 = vpack.c.bf16 %v5505_v7, %v5504_v53  ;;  %v5532_v7 = vld [vmem:[%s10183_s4 + $0xa0] sm:$0xff] }
 0x2b3   : > { %v6101_v35 = vpop.f32.mrb[94].mxu1  ;;  %6683 = vmatprep.mubr.msk.f32.mxu0 %vm1149_vm3, %v6100_v19 }
 0x2b4   : > { %7157 = vmatpush3.bf16.msra.mxu0 %v8349_v14  ;;  %v6102_v40 = vpop.f32.mrb[95].mxu1 }
 0x2b5   : > { %7159 = vmatprep.subr.bf16.mxu0 %v8510_v12  ;;  %v6103_v4 = vadd.f32 %v6102_v40, %v6101_v35 }
 0x2b7   : > { %6684 = vmatmul.mubr.msk.f32.gmra.mrb[6].mxu0 %vm1149_vm3, %v6103_v4  ;;  %v6216_v26 = vpop.f32.mrb[96].mxu1 }
 0x2b8   : > { %7161 = vmatpush3.bf16.msra.mxu0 %v8379_v48  ;;  %2301 = vmatprep.mubr.f32.mxu0 %v5489_v39  ;;  %v6217_v14 = vpop.f32.mrb[97].mxu1 }
 0x2b9   : > { %7163 = vmatprep.subr.bf16.mxu0 %v8521_v24  ;;  %v9154_v12 = vadd.f32 %v6217_v14, %v6216_v26  ;;  %v5533_v26 = vld [vmem:[%s10183_s4 + $0xa8] sm:$0xff] }
 0x2bb   : > { %v6219_v29 = vpop.f32.mrb[98].mxu1 }
 0x2bc   : > { %7165 = vmatpush3.bf16.msra.mxu0 %v8401_v9  ;;  %v6220_v20 = vpop.f32.mrb[99].mxu1 }
 0x2bd   : > { %v9163_v48 = vadd.f32 %v6220_v20, %v6219_v29  ;;  %7167 = vmatprep.subr.bf16.mxu0 %v7166_v60 }
 0x2bf   : > { %2302 = vmatmul.mubr.f32.vlgmr.msra.gmra.mrb[8].mxu0 %v5488_v31  ;;  %v6222_v24 = vpop.f32.mrb[100].mxu1 }
 0x2c0   : > { %2306 = vmatprep.mubr.f32.mxu0 %v5491_v21  ;;  %v6223_v9 = vpop.f32.mrb[101].mxu1  ;;  %7169 = vmatpush3.bf16.msra.mxu0 %v7166_v60  ;;  %v9242_v60 = vpack.c.bf16 %v5533_v26, %v5532_v7 }
 0x2c1   : > { %v9171_v50 = vadd.f32 %v6223_v9, %v6222_v24  ;;  %7171 = vmatprep.subr.bf16.mxu0 %v7170_v8 }
 0x2c3   : > { %2307 = vmatmul.mubr.f32.gmra.mrb[10].mxu0 %v5490_v33  ;;  %v6225_v22 = vpop.f32.mrb[102].mxu1 }
 0x2c4   : > { %2311 = vmatprep.mubr.f32.mxu0 %v5493_v46  ;;  %v6226_v32 = vpop.f32.mrb[103].mxu1  ;;  %7173 = vmatpush3.bf16.msra.mxu0 %v7170_v8 }
 0x2c5   : > { %v9179_v51 = vadd.f32 %v6226_v32, %v6225_v22  ;;  %7207 = vmatprep.subr.bf16.mxu0 %v9242_v60 }
 0x2c7   : > { %2312 = vmatmul.mubr.f32.gmra.mrb[12].mxu0 %v5492_v25  ;;  %v6228_v2 = vpop.f32.mrb[104].mxu1 }
 0x2c8   : > { %2316 = vmatprep.mubr.f32.mxu0 %v5495_v41  ;;  %v6229_v42 = vpop.f32.mrb[105].mxu1 }
 0x2c9   : > { %v9208_v43 = vadd.f32 %v6229_v42, %v6228_v2 }
 0x2cb   : > { %2317 = vmatmul.mubr.f32.gmra.mrb[14].mxu0 %v5494_v27  ;;  %v6231_v45 = vpop.f32.mrb[106].mxu1 }
 0x2cc   : > { %2321 = vmatprep.mubr.f32.mxu0 %v5497_v28  ;;  %v6232_v10 = vpop.f32.mrb[107].mxu1 }
 0x2cd   : > { %v9210_v52 = vadd.f32 %v6232_v10, %v6231_v45 }
 0x2cf   : > { %2322 = vmatmul.mubr.f32.gmra.mrb[16].mxu0 %v5496_v61  ;;  %v6234_v54 = vpop.f32.mrb[108].mxu1 }
 0x2d0   : > { %2326 = vmatprep.mubr.f32.mxu0 %v5499_v1  ;;  %v6235_v59 = vpop.f32.mrb[109].mxu1 }
 0x2d1   : > { %v9212_v49 = vadd.f32 %v6235_v59, %v6234_v54 }
 0x2d3   : > { %2327 = vmatmul.mubr.f32.gmra.mrb[18].mxu0 %v5498_v34  ;;  %v6237_v11 = vpop.f32.mrb[110].mxu1 }
 0x2d4   : > { %2331 = vmatprep.mubr.f32.mxu0 %v5501_v56  ;;  %v6238_v55 = vpop.f32.mrb[111].mxu1 }
 0x2d5   : > { %v9214_v38 = vadd.f32 %v6238_v55, %v6237_v11 }
 0x2d7   : > { %2332 = vmatmul.mubr.f32.gmra.mrb[20].mxu0 %v5500_v17  ;;  %v6284_v62 = vpop.f32.mrb[112].mxu1 }
 0x2d8   : > { %2336 = vmatprep.mubr.f32.mxu0 %v5503_v36  ;;  %v6285_v47 = vpop.f32.mrb[113].mxu1 }
 0x2d9   : > { %v9222_v6 = vadd.f32 %v6285_v47, %v6284_v62 }
 0x2db   : > { %2337 = vmatmul.mubr.f32.gmra.mrb[22].mxu0 %v5502_v37  ;;  %v6287_v63 = vpop.f32.mrb[114].mxu1 }
 0x2dc   : > { %v6288_v30 = vpop.f32.mrb[115].mxu1 }
 0x2dd   : > { %v9224_v13 = vadd.f32 %v6288_v30, %v6287_v63 }
 0x2df   : > { %v6290_v23 = vpop.f32.mrb[116].mxu1 }
 0x2e0   : > { %v6291_v57 = vpop.f32.mrb[117].mxu1 }
 0x2e1   : > { %v9226_v44 = vadd.f32 %v6291_v57, %v6290_v23 }
 0x2e3   : > { %v6293_v58 = vpop.f32.mrb[118].mxu1 }
 0x2e4   : > { %v6294_v16 = vpop.f32.mrb[119].mxu1 }
 0x2e5   : > { %v9228_v0 = vadd.f32 %v6294_v16, %v6293_v58 }
 0x2e7   : > { %v6296_v3 = vpop.f32.mrb[120].mxu1 }
 0x2e8   : > { %v6297_v18 = vpop.f32.mrb[121].mxu1 }
 0x2e9   : > { %v9230_v19 = vadd.f32 %v6297_v18, %v6296_v3 }
 0x2eb   : > { %v6299_v35 = vpop.f32.mrb[122].mxu1 }
 0x2ec   : > { %v6300_v40 = vpop.f32.mrb[123].mxu1 }
 0x2ed   : > { %v9232_v4 = vadd.f32 %v6300_v40, %v6299_v35 }
 0x2ef   : > { %v6302_v39 = vpop.f32.mrb[124].mxu1 }
 0x2f0   : > { %v6303_v53 = vpop.f32.mrb[125].mxu1 }
 0x2f1   : > { %v9240_v14 = vadd.f32 %v6303_v53, %v6302_v39 }
 0x2f3   : > { %v6305_v29 = vpop.f32.mrb[126].mxu1 }
 0x2f4   : > { %v6306_v31 = vpop.f32.mrb[127].mxu1 }
 0x2f5   : > { %v9245_v20 = vadd.f32 %v6306_v31, %v6305_v29 }
 0x2f7   : > { %v6352_v21 = vpop.f32.mrb[128].mxu1 }
 0x2f8   : > { %v6353_v24 = vpop.f32.mrb[129].mxu1 }
 0x2f9   : > { %v9247_v33 = vadd.f32 %v6353_v24, %v6352_v21 }
 0x2fb   : > { %v6355_v9 = vpop.f32.mrb[130].mxu1 }
 0x2fc   : > { %v6356_v46 = vpop.f32.mrb[131].mxu1 }
 0x2fd   : > { %v9249_v22 = vadd.f32 %v6356_v46, %v6355_v9 }
 0x2ff   : > { %v6358_v25 = vpop.f32.mrb[132].mxu1 }
 0x300   : > { %v6359_v32 = vpop.f32.mrb[133].mxu1 }
 0x301   : > { %v9251_v41 = vadd.f32 %v6359_v32, %v6358_v25  ;;  %v5534_v25 = vld [vmem:[%s10183_s4 + $0xb0] sm:$0xff]  ;;  %v5535_v32 = vld [vmem:[%s10183_s4 + $0xb8] sm:$0xff] }
 0x303   : > { %v6361_v27 = vpop.f32.mrb[134].mxu1 }
 0x304   : > { %v6362_v28 = vpop.f32.mrb[135].mxu1 }
 0x305   : > { %v9253_v61 = vadd.f32 %v6362_v28, %v6361_v27 }
 0x30d   : > { %v6364_v1 = vpop.f32.mrb[136].mxu1 }
 0x30e   : > { %v6365_v34 = vpop.f32.mrb[137].mxu1 }
 0x30f   : > { %v9255_v56 = vadd.f32 %v6365_v34, %v6364_v1  ;;  %v7210_v34 = vpack.c.bf16 %v5535_v32, %v5534_v25 }
 0x319   : > { %v6367_v17 = vpop.f32.mrb[138].mxu1 }
 0x31a   : > { %v6368_v36 = vpop.f32.mrb[139].mxu1 }
 0x31b   : > { %v9257_v37 = vadd.f32 %v6368_v36, %v6367_v17  ;;  %v5560_v17 = vld [vmem:[%s10183_s4 + $0xc0] sm:$0xff]  ;;  %v5561_v36 = vld [vmem:[%s10183_s4 + $0xc8] sm:$0xff] }
 0x321   : > { %v6370_v2 = vpop.f32.mrb[140].mxu1 }
 0x322   : > { %v6371_v42 = vpop.f32.mrb[141].mxu1 }
 0x323   : > { %v9259_v45 = vadd.f32 %v6371_v42, %v6370_v2 }
 0x32d   : > { %v6373_v10 = vpop.f32.mrb[142].mxu1 }
 0x32e   : > { %v6374_v54 = vpop.f32.mrb[143].mxu1 }
 0x32f   : > { %v9261_v59 = vadd.f32 %v6374_v54, %v6373_v10  ;;  %v7246_v54 = vpack.c.bf16 %v5561_v36, %v5560_v17 }
 0x331   : > { %v6420_v11 = vpop.f32.mrb[144].mxu1 }
 0x332   : > { %v6421_v55 = vpop.f32.mrb[145].mxu1 }
 0x333   : > { %v9263_v62 = vadd.f32 %v6421_v55, %v6420_v11 }
 0x335   : > { %v6423_v47 = vpop.f32.mrb[146].mxu1 }
 0x336   : > { %v6424_v5 = vpop.f32.mrb[147].mxu1 }
 0x337   : > { %v9265_v15 = vadd.f32 %v6424_v5, %v6423_v47 }
 0x350   : > { %v6426_v8 = vpop.f32.mrb[148].mxu1 }
 0x351   : > { %v6427_v63 = vpop.f32.mrb[149].mxu1 }
 0x352   : > { %v9267_v30 = vadd.f32 %v6427_v63, %v6426_v8 }
 0x354   : > { %v6429_v23 = vpop.f32.mrb[150].mxu1 }
 0x355   : > { %v6430_v57 = vpop.f32.mrb[151].mxu1 }
 0x356   : > { %v9269_v58 = vadd.f32 %v6430_v57, %v6429_v23 }
 0x358   : > { %v6432_v16 = vpop.f32.mrb[152].mxu1 }
 0x359   : > { %v6433_v3 = vpop.f32.mrb[153].mxu1 }
 0x35a   : > { %v9271_v18 = vadd.f32 %v6433_v3, %v6432_v16 }
 0x35c   : > { %v6435_v35 = vpop.f32.mrb[154].mxu1 }
 0x35d   : > { %v6436_v40 = vpop.f32.mrb[155].mxu1 }
 0x35e   : > { %v9273_v39 = vadd.f32 %v6436_v40, %v6435_v35 }
 0x360   : > { %v6438_v53 = vpop.f32.mrb[156].mxu1 }
 0x361   : > { %v6439_v7 = vpop.f32.mrb[157].mxu1 }
 0x362   : > { %v9275_v26 = vadd.f32 %v6439_v7, %v6438_v53 }
 0x364   : > { %v6441_v29 = vpop.f32.mrb[158].mxu1 }
 0x365   : > { %v6442_v31 = vpop.f32.mrb[159].mxu1 }
 0x366   : > { %v9277_v21 = vadd.f32 %v6442_v31, %v6441_v29  ;;  %v5562_v29 = vld [vmem:[%s10183_s4 + $0xd0] sm:$0xff]  ;;  %v5563_v31 = vld [vmem:[%s10183_s4 + $0xd8] sm:$0xff] }
 0x392   : > { %v6148_v24 = vpop.f32.mrb[8].mxu0 }
 0x393   : > { %v6149_v9 = vpop.f32.mrb[9].mxu0 }
 0x394   : > { %v6150_v46 = vadd.f32 %v6149_v9, %v6148_v24  ;;  %v7250_v24 = vpack.c.bf16 %v5563_v31, %v5562_v29  ;;  %v5588_v9 = vld [vmem:[%s10183_s4 + $0xe0] sm:$0xff] }
 0x396   : > { %v6151_v27 = vpop.f32.mrb[10].mxu0  ;;  %6694 = vmatprep.mubr.msk.f32.mxu0 %vm1149_vm3, %v6150_v46  ;;  %v5589_v46 = vld [vmem:[%s10183_s4 + $0xe8] sm:$0xff] }
 0x397   : > { %v6152_v28 = vpop.f32.mrb[11].mxu0  ;;  %v7286_v25 = vpack.c.bf16 %v5589_v46, %v5588_v9 }
 0x398   : > { %v6153_v1 = vadd.f32 %v6152_v28, %v6151_v27 }
 0x39a   : > { %v6154_v2 = vpop.f32.mrb[12].mxu0  ;;  %6695 = vmatmul.mubr.msk.f32.vlgmr.msra.gmra.mrb[0].mxu0 %vm1149_vm3, %v6153_v1 }
 0x39b   : > { %v6155_v42 = vpop.f32.mrb[13].mxu0  ;;  %7209 = vmatpush3.bf16.msra.mxu0 %v9242_v60 }
 0x39c   : > { %v6156_v10 = vadd.f32 %v6155_v42, %v6154_v2  ;;  %7211 = vmatprep.subr.bf16.mxu0 %v7210_v34 }
 0x39e   : > { %v6157_v11 = vpop.f32.mrb[14].mxu0  ;;  %6697 = vmatprep.mubr.msk.f32.mxu0 %vm1149_vm3, %v6156_v10 }
 0x39f   : > { %v6158_v55 = vpop.f32.mrb[15].mxu0  ;;  %7213 = vmatpush3.bf16.msra.mxu0 %v7210_v34 }
 0x3a0   : > { %v6159_v47 = vadd.f32 %v6158_v55, %v6157_v11  ;;  %7247 = vmatprep.subr.bf16.mxu0 %v7246_v54 }
 0x3a2   : > { %v6160_v5 = vpop.f32.mrb[16].mxu0  ;;  %6698 = vmatmul.mubr.msk.f32.gmra.mrb[2].mxu0 %vm1149_vm3, %v6159_v47 }
 0x3a3   : > { %v6161_v8 = vpop.f32.mrb[17].mxu0 }
 0x3a4   : > { %v6162_v63 = vadd.f32 %v6161_v8, %v6160_v5 }
 0x3a6   : > { %v6163_v23 = vpop.f32.mrb[18].mxu0  ;;  %6700 = vmatprep.mubr.msk.f32.mxu0 %vm1149_vm3, %v6162_v63 }
 0x3a7   : > { %v6164_v57 = vpop.f32.mrb[19].mxu0 }
 0x3a8   : > { %v6165_v60 = vadd.f32 %v6164_v57, %v6163_v23 }
 0x3aa   : > { %v6166_v16 = vpop.f32.mrb[20].mxu0  ;;  %6701 = vmatmul.mubr.msk.f32.gmra.mrb[4].mxu0 %vm1149_vm3, %v6165_v60 }
 0x3ab   : > { %v6167_v3 = vpop.f32.mrb[21].mxu0 }
 0x3ac   : > { %v6168_v35 = vadd.f32 %v6167_v3, %v6166_v16 }
 0x3ae   : > { %v6169_v40 = vpop.f32.mrb[22].mxu0  ;;  %6703 = vmatprep.mubr.msk.f32.mxu0 %vm1149_vm3, %v6168_v35 }
 0x3af   : > { %v6170_v53 = vpop.f32.mrb[23].mxu0 }
 0x3b0   : > { %v6171_v7 = vadd.f32 %v6170_v53, %v6169_v40 }
 0x3b2   : > { %6704 = vmatmul.mubr.msk.f32.gmra.mrb[6].mxu0 %vm1149_vm3, %v6171_v7 }
 0x3b3   : > { %6714 = vmatprep.mubr.msk.f32.mxu0 %vm1149_vm3, %v9154_v12  ;;  %v5590_v12 = vld [vmem:[%s10183_s4 + $0xf0] sm:$0xff] }
 0x3b6   : > { %6715 = vmatmul.mubr.msk.f32.vlgmr.msra.gmra.mrb[0].mxu0 %vm1149_vm3, %v9163_v48  ;;  %v5591_v48 = vld [vmem:[%s10183_s4 + $0xf8] sm:$0xff] }
 0x3b7   : > { %6717 = vmatprep.mubr.msk.f32.mxu0 %vm1149_vm3, %v9171_v50  ;;  %7249 = vmatpush3.bf16.msra.mxu0 %v7246_v54  ;;  %v7290_v50 = vpack.c.bf16 %v5591_v48, %v5590_v12 }
 0x3b8   : > { %7251 = vmatprep.subr.bf16.mxu0 %v7250_v24 }
 0x3ba   : > { %6718 = vmatmul.mubr.msk.f32.gmra.mrb[2].mxu0 %vm1149_vm3, %v9179_v51  ;;  %v5616_v51 = vld [vmem:[%s10183_s4 + $0x100] sm:$0xff] }
 0x3bb   : > { %6720 = vmatprep.mubr.msk.f32.mxu0 %vm1149_vm3, %v9208_v43  ;;  %7253 = vmatpush3.bf16.msra.mxu0 %v7250_v24  ;;  %v5617_v43 = vld [vmem:[%s10183_s4 + $0x108] sm:$0xff] }
 0x3bc   : > { %7287 = vmatprep.subr.bf16.mxu0 %v7286_v25 }
 0x3be   : > { %6721 = vmatmul.mubr.msk.f32.gmra.mrb[4].mxu0 %vm1149_vm3, %v9210_v52  ;;  %v7326_v52 = vpack.c.bf16 %v5617_v43, %v5616_v51 }
 0x3bf   : > { %6723 = vmatprep.mubr.msk.f32.mxu0 %vm1149_vm3, %v9212_v49  ;;  %v5618_v49 = vld [vmem:[%s10183_s4 + $0x110] sm:$0xff] }
 0x3c2   : > { %6724 = vmatmul.mubr.msk.f32.gmra.mrb[6].mxu0 %vm1149_vm3, %v9214_v38  ;;  %v5619_v38 = vld [vmem:[%s10183_s4 + $0x118] sm:$0xff]  ;;  %s5152_s4 = sshll.u32 %s9432_s1, 4  ;;  %s10023_s4 = int_to_ptr.vmem [resolvable:$true] %s5152_s4 }
 0x3c3   : > { %6734 = vmatprep.mubr.msk.f32.mxu0 %vm1149_vm3, %v9222_v6  ;;  %v7330_v6 = vpack.c.bf16 %v5619_v38, %v5618_v49 }
 0x3c6   : > { %6735 = vmatmul.mubr.msk.f32.vlgmr.msra.gmra.mrb[0].mxu0 %vm1149_vm3, %v9224_v13  ;;  %v3628_v13 = vld [vmem:[%s10184_s6] sm:$0xff] }
 0x3c7   : > { %6737 = vmatprep.mubr.msk.f32.mxu0 %vm1149_vm3, %v9226_v44  ;;  %7289 = vmatpush3.bf16.msra.mxu0 %v7286_v25  ;;  %v5643_v44 = vld [vmem:[%s10185_s7 + $0x40] sm:$0xff] }
 0x3c8   : > { %7291 = vmatprep.subr.bf16.mxu0 %v7290_v50 }
 0x3ca   : > { %6738 = vmatmul.mubr.msk.f32.gmra.mrb[2].mxu0 %vm1149_vm3, %v9228_v0  ;;  %v5644_v0 = vld [vmem:[%s10185_s7 + $0x48] sm:$0xff] }
 0x3cb   : > { %6740 = vmatprep.mubr.msk.f32.mxu0 %vm1149_vm3, %v9230_v19  ;;  %7293 = vmatpush3.bf16.msra.mxu0 %v7290_v50  ;;  %v5645_v19 = vld [vmem:[%s10185_s7 + $0x50] sm:$0xff] }
 0x3cc   : > { %7327 = vmatprep.subr.bf16.mxu0 %v7326_v52 }
 0x3ce   : > { %6741 = vmatmul.mubr.msk.f32.gmra.mrb[4].mxu0 %vm1149_vm3, %v9232_v4  ;;  %v7366_v4 = vpack.c.bf16 %v5644_v0, %v5643_v44 }
 0x3cf   : > { %6743 = vmatprep.mubr.msk.f32.mxu0 %vm1149_vm3, %v9240_v14  ;;  %v5646_v14 = vld [vmem:[%s10185_s7 + $0x58] sm:$0xff] }
 0x3d0   : > { %7367 = vmatprep.subr.bf16.mxu1 %v7366_v4 }
 0x3d1   : > { %7369 = vmatpush3.bf16.msra.mxu1 %v7366_v4 }
 0x3d2   : > { %6744 = vmatmul.mubr.msk.f32.gmra.mrb[6].mxu0 %vm1149_vm3, %v9245_v20  ;;  %v7370_v20 = vpack.c.bf16 %v5646_v14, %v5645_v19 }
 0x3d3   : > { %6754 = vmatprep.mubr.msk.f32.mxu0 %vm1149_vm3, %v9247_v33  ;;  %v5647_v33 = vld [vmem:[%s10185_s7 + $0x60] sm:$0xff] }
 0x3d4   : > { %7371 = vmatprep.subr.bf16.mxu1 %v7370_v20 }
 0x3d5   : > { %7373 = vmatpush3.bf16.msra.mxu1 %v7370_v20 }
 0x3d6   : > { %6755 = vmatmul.mubr.msk.f32.vlgmr.msra.gmra.mrb[0].mxu0 %vm1149_vm3, %v9249_v22  ;;  %v5648_v22 = vld [vmem:[%s10185_s7 + $0x68] sm:$0xff] }
 0x3d7   : > { %6757 = vmatprep.mubr.msk.f32.mxu0 %vm1149_vm3, %v9251_v41  ;;  %7329 = vmatpush3.bf16.msra.mxu0 %v7326_v52  ;;  %v7374_v41 = vpack.c.bf16 %v5648_v22, %v5647_v33 }
 0x3d8   : > { %7331 = vmatprep.subr.bf16.mxu0 %v7330_v6 }
 0x3d9   : > { %7375 = vmatprep.subr.bf16.mxu1 %v7374_v41 }
 0x3da   : > { %6758 = vmatmul.mubr.msk.f32.gmra.mrb[2].mxu0 %vm1149_vm3, %v9253_v61  ;;  %7377 = vmatpush3.bf16.msra.mxu1 %v7374_v41  ;;  %v5628_v61 = vld [vmem:[%s10186_s5] ss:$0 sm:$0xff]  ;;  %s10030_s5 = scalar_lea.sflag [#allocation5], %s5112_s20 }
 0x3db   : > { %6760 = vmatprep.mubr.msk.f32.mxu0 %vm1149_vm3, %v9255_v56  ;;  %7333 = vmatpush3.bf16.msra.mxu0 %v7330_v6 }
 0x3de   : > { %6761 = vmatmul.mubr.msk.f32.gmra.mrb[4].mxu0 %vm1149_vm3, %v9257_v37 }
 0x3df   : > { %6763 = vmatprep.mubr.msk.f32.mxu0 %vm1149_vm3, %v9259_v45 }
 0x3e2   : > { %6764 = vmatmul.mubr.msk.f32.gmra.mrb[6].mxu0 %vm1149_vm3, %v9261_v59 }
 0x3e3   : > { %6774 = vmatprep.mubr.msk.f32.mxu0 %vm1149_vm3, %v9263_v62 }
 0x3e6   : > { %6775 = vmatmul.mubr.msk.f32.vlgmr.msra.gmra.mrb[0].mxu0 %vm1149_vm3, %v9265_v15 }
 0x3e7   : > { %6777 = vmatprep.mubr.msk.f32.mxu0 %vm1149_vm3, %v9267_v30 }
 0x3ea   : > { %6778 = vmatmul.mubr.msk.f32.gmra.mrb[2].mxu0 %vm1149_vm3, %v9269_v58 }
 0x3eb   : > { %6780 = vmatprep.mubr.msk.f32.mxu0 %vm1149_vm3, %v9271_v18 }
 0x3ee   : > { %6781 = vmatmul.mubr.msk.f32.gmra.mrb[4].mxu0 %vm1149_vm3, %v9273_v39 }
 0x3ef   : > { %6783 = vmatprep.mubr.msk.f32.mxu0 %vm1149_vm3, %v9275_v26 }
 0x3f2   : > { %6784 = vmatmul.mubr.msk.f32.gmra.mrb[6].mxu0 %vm1149_vm3, %v9277_v21 }
 0x3f3   : > { %6802 = vmatprep.mubr.msk.f32.mxu0 %vm3619_vm5, %v3628_v13 }
 0x4b9   : > { %v6776_v56 = vpop.f32.mrb[0].mxu0 }
 0x4ba   : > { %v3548_v37 = vadd.f32 %v6776_v56, %v5628_v61  ;;  %v3493_v45 = vpop.f32.mrb[1].mxu0 }
 0x4bb   : > { %v3547_v59 = vadd.f32 %v5628_v61, %v3493_v45 }
 0x4bc   : > { %v3556_v62 = vmin.f32 %v3548_v37, 0.0  ;;  %vm3596_vm3 = vcmp.gt.f32.partialorder %v3548_v37, 0.0 }
 0x4bd   : > { %v3555_v15 = vmin.f32 %v3547_v59, 0.0  ;;  %v6779_v30 = vpop.f32.mrb[2].mxu0  ;;  %vm3595_vm6 = vcmp.gt.f32.partialorder %v3547_v59, 0.0 }
 0x4be   : > { %v3565_v58 = vmul.f32 1.442695, %v3556_v62  ;;  %v3550_v18 = vadd.f32 %v6779_v30, %v5628_v61  ;;  %v3503_v39 = vpop.f32.mrb[3].mxu0 }
 0x4bf   : > { %v3563_v26 = vmul.f32 1.442695, %v3555_v15  ;;  %v3549_v21 = vadd.f32 %v5628_v61, %v3503_v39 }
 0x4c0   : > { %7796 = vpow2.f32 %v3565_v58  ;;  %v3558_v32 = vmin.f32 %v3550_v18, 0.0  ;;  %vm3598_vm7 = vcmp.gt.f32.partialorder %v3550_v18, 0.0 }
 0x4c1   : > { %7798 = vpow2.f32 %v3563_v26  ;;  %v3557_v27 = vmin.f32 %v3549_v21, 0.0  ;;  %v6782_v28 = vpop.f32.mrb[4].mxu0  ;;  %vm3597_vm8 = vcmp.gt.f32.partialorder %v3549_v21, 0.0 }
 0x4c2   : > { %v3569_v1 = vmul.f32 1.442695, %v3558_v32  ;;  %v9419_v34 = vadd.f32 %v6782_v28, %v5628_v61  ;;  %v3513_v17 = vpop.f32.mrb[5].mxu0  ;;  %v3629_v32 = vld [vmem:[%s10184_s6 + $0x8] sm:$0xff]  ;;  %v5640_v28 = vld [vmem:[%s10184_s6 + $0x18] sm:$0xff] }
 0x4c3   : > { %v3567_v36 = vmul.f32 1.442695, %v3557_v27  ;;  %v9421_v2 = vadd.f32 %v5628_v61, %v3513_v17  ;;  %v5639_v27 = vld [vmem:[%s10184_s6 + $0x10] sm:$0xff] }
 0x4c4   : > { %7800 = vpow2.f32 %v3569_v1  ;;  %v3560_v42 = vmin.f32 %v9419_v34, 0.0  ;;  %vm3600_vm9 = vcmp.gt.f32.partialorder %v9419_v34, 0.0  ;;  %v5655_v1 = vld [vmem:[%s10184_s6 + $0x20] sm:$0xff]  ;;  %v5669_v17 = vld [vmem:[%s10184_s6 + $0x30] sm:$0xff] }
 0x4c5   : > { %7802 = vpow2.f32 %v3567_v36  ;;  %v3559_v10 = vmin.f32 %v9421_v2, 0.0  ;;  %v6785_v54 = vpop.f32.mrb[6].mxu0  ;;  %vm3599_vm10 = vcmp.gt.f32.partialorder %v9421_v2, 0.0  ;;  %v5670_v36 = vld [vmem:[%s10184_s6 + $0x38] sm:$0xff] }
 0x4c6   : > { %v3573_v11 = vmul.f32 1.442695, %v3560_v42  ;;  %v9425_v55 = vadd.f32 %v6785_v54, %v5628_v61  ;;  %v3523_v47 = vpop.f32.mrb[7].mxu0  ;;  %v5650_v42 = vld [vmem:[%s10185_s7 + $0x78] sm:$0xff]  ;;  %v3711_v54 = vld [vmem:[%s10185_s7] sm:$0xff] }
 0x4c7   : > { %v3571_v5 = vmul.f32 1.442695, %v3559_v10  ;;  %v9427_v8 = vadd.f32 %v5628_v61, %v3523_v47 }
 0x4c8   : > { %7804 = vpow2.f32 %v3573_v11  ;;  %v3562_v63 = vmin.f32 %v9425_v55, 0.0  ;;  %vm3602_vm11 = vcmp.gt.f32.partialorder %v9425_v55, 0.0  ;;  %v3712_v11 = vld [vmem:[%s10185_s7 + $0x8] sm:$0xff] }
 0x4c9   : > { %7806 = vpow2.f32 %v3571_v5  ;;  %v3561_v23 = vmin.f32 %v9427_v8, 0.0  ;;  %vm3601_vm12 = vcmp.gt.f32.partialorder %v9427_v8, 0.0 }
 0x4ca   : > { %v7797_v57 = vpop.eup %7796  ;;  %v3577_v60 = vmul.f32 1.442695, %v3562_v63  ;;  %v3714_v63 = vld [vmem:[%s10185_s7 + $0x18] sm:$0xff] }
 0x4cb   : > { %v7799_v16 = vpop.eup %7798  ;;  %v5630_v3 = vadd.f32 -1.0, %v7797_v57  ;;  %v3575_v35 = vmul.f32 1.442695, %v3561_v23 }
 0x4cc   : > { %v5629_v40 = vadd.f32 -1.0, %v7799_v16  ;;  %7808 = vpow2.f32 %v3577_v60  ;;  %v3715_v16 = vld [vmem:[%s10185_s7 + $0x20] sm:$0xff] }
 0x4cd   : > { %v3588_v53 = vmul.f32 1.6732632, %v5630_v3  ;;  %7810 = vpow2.f32 %v3575_v35  ;;  %v3716_v3 = vld [vmem:[%s10185_s7 + $0x28] sm:$0xff] }
 0x4ce   : > { %v7801_v7 = vpop.eup %7800  ;;  %v3587_v29 = vmul.f32 1.6732632, %v5629_v40  ;;  %v7390_v35 = vpack.c.bf16 %v3716_v3, %v3715_v16  ;;  %v3717_v40 = vld [vmem:[%s10185_s7 + $0x30] sm:$0xff]  ;;  %v5696_v16 = vld [vmem:[%s10154_s10 + $0x138] sm:$0xff]  ;;  %v5687_v3 = vld [vmem:[%s10153_s9 + $0x4] sm:$0xf] }
 0x4cf   : > { %v7803_v31 = vpop.eup %7802  ;;  %v3604_v24 = vsel %vm3596_vm3, %v3548_v37, %v3588_v53  ;;  %v5632_v9 = vadd.f32 -1.0, %v7801_v7  ;;  %v3718_v53 = vld [vmem:[%s10185_s7 + $0x38] sm:$0xff] }
 0x4d0   : > { %v3612_v46 = vmul.f32 1.050701, %v3604_v24  ;;  %v3603_v25 = vsel %vm3595_vm6, %v3547_v59, %v3587_v29  ;;  %v5631_v12 = vadd.f32 -1.0, %v7803_v31  ;;  %v7394_v7 = vpack.c.bf16 %v3718_v53, %v3717_v40  ;;  %v5659_v29 = vld [vmem:[%s10185_s7 + $0x80] sm:$0xff]  ;;  %v5660_v31 = vld [vmem:[%s10185_s7 + $0x88] sm:$0xff] }
 0x4d1   : > { %v3611_v48 = vmul.f32 1.050701, %v3603_v25  ;;  %v3590_v50 = vmul.f32 1.6732632, %v5632_v9  ;;  %v7414_v24 = vpack.c.bf16 %v5660_v31, %v5659_v29  ;;  %v5661_v9 = vld [vmem:[%s10185_s7 + $0x90] sm:$0xff]  ;;  %v5698_v31 = vld [vmem:[%s10154_s10 + $0x148] sm:$0xff] }
 0x4d2   : > { %v7805_v51 = vpop.eup %7804  ;;  %3621 = vst.msk [vmem:[%s9432_s1 + $0x8] sm:$0xff] %vm3619_vm5, %v3612_v46  ;;  %v3589_v43 = vmul.f32 1.6732632, %v5631_v12  ;;  %v5695_v29 = vld [vmem:[%s10154_s10 + $0x130] sm:$0xff] }
 0x4d3   : > { %v7807_v52 = vpop.eup %7806  ;;  %3620 = vst.msk [vmem:[%s9432_s1] sm:$0xff] %vm3619_vm5, %v3611_v48  ;;  %v9438_v49 = vpack.c.bf16 %v3612_v46, %v3611_v48  ;;  %v3606_v38 = vsel %vm3598_vm7, %v3550_v18, %v3590_v50  ;;  %v5634_v6 = vadd.f32 -1.0, %v7805_v51  ;;  %v5662_v46 = vld [vmem:[%s10185_s7 + $0x98] sm:$0xff]  ;;  %v5663_v50 = vld [vmem:[%s10185_s7 + $0xa0] sm:$0xff]  ;;  %v5664_v51 = vld [vmem:[%s10185_s7 + $0xa8] sm:$0xff] }
 0x4d4   : > { %v3614_v13 = vmul.f32 1.050701, %v3606_v38  ;;  %v3605_v44 = vsel %vm3597_vm8, %v3549_v21, %v3589_v43  ;;  %v5633_v0 = vadd.f32 -1.0, %v7807_v52  ;;  %v7418_v12 = vpack.c.bf16 %v5662_v46, %v5661_v9  ;;  %v5665_v52 = vld [vmem:[%s10185_s7 + $0xb0] sm:$0xff] }
 0x4d5   : > { %v3613_v19 = vmul.f32 1.050701, %v3605_v44  ;;  %v3592_v4 = vmul.f32 1.6732632, %v5634_v6  ;;  %7335 = vmatprep.subr.bf16.mxu0 %v9438_v49  ;;  %v7422_v43 = vpack.c.bf16 %v5664_v51, %v5663_v50  ;;  %v5673_v6 = vld [vmem:[%s10185_s7 + $0xc0] sm:$0xff]  ;;  %v5704_v50 = vld [vmem:[%s10154_s10 + $0x178] sm:$0xff] }
 0x4d6   : > { %v7809_v14 = vpop.eup %7808  ;;  %3623 = vst.msk [vmem:[%s9432_s1 + $0x18] sm:$0xff] %vm3619_vm5, %v3614_v13  ;;  %v3591_v20 = vmul.f32 1.6732632, %v5633_v0  ;;  %7337 = vmatpush3.bf16.msra.mxu0 %v9438_v49  ;;  %v5675_v0 = vld [vmem:[%s10185_s7 + $0xd0] sm:$0xff] }
 0x4d7   : > { %v7811_v33 = vpop.eup %7810  ;;  %3622 = vst.msk [vmem:[%s9432_s1 + $0x10] sm:$0xff] %vm3619_vm5, %v3613_v19  ;;  %v7338_v22 = vpack.c.bf16 %v3614_v13, %v3613_v19  ;;  %v3608_v41 = vsel %vm3600_vm9, %v9419_v34, %v3592_v4  ;;  %v5636_v61 = vadd.f32 -1.0, %v7809_v14  ;;  %v5656_v34 = vld [vmem:[%s10184_s6 + $0x28] sm:$0xff]  ;;  %v5676_v19 = vld [vmem:[%s10185_s7 + $0xd8] sm:$0xff]  ;;  %s7820_s6 = scalar_lea.vmem %s10023_s4, 1024 }
 0x4d8   : > { %v3616_v56 = vmul.f32 1.050701, %v3608_v41  ;;  %v3607_v37 = vsel %vm3599_vm10, %v9421_v2, %v3591_v20  ;;  %v5635_v45 = vadd.f32 -1.0, %v7811_v33  ;;  %v5649_v2 = vld [vmem:[%s10185_s7 + $0x70] sm:$0xff]  ;;  %v5674_v13 = vld [vmem:[%s10185_s7 + $0xc8] sm:$0xff]  ;;  %v7450_v14 = vpack.c.bf16 %v5676_v19, %v5675_v0  ;;  %v5677_v33 = vld [vmem:[%s10185_s7 + $0xe0] sm:$0xff]  ;;  %p7821_p11 = scmp.ne.s32.totalorder %s10023_s4, %s7820_s6 }
 0x4d9   : > { %v3615_v59 = vmul.f32 1.050701, %v3607_v37  ;;  %v3594_v62 = vmul.f32 1.6732632, %v5636_v61  ;;  %7339 = vmatprep.subr.bf16.mxu0 %v7338_v22  ;;  %v7378_v10 = vpack.c.bf16 %v5650_v42, %v5649_v2  ;;  %v7446_v44 = vpack.c.bf16 %v5674_v13, %v5673_v6  ;;  %v5679_v61 = vld [vmem:[%s10185_s7 + $0xf0] sm:$0xff]  ;;  %v5708_v6 = vld [vmem:[%s10154_s10 + $0x198] sm:$0xff] }
 0x4da   : > { %3625 = vst.msk [vmem:[%s9432_s1 + $0x28] sm:$0xff] %vm3619_vm5, %v3616_v56  ;;  %v3593_v15 = vmul.f32 1.6732632, %v5635_v45  ;;  %7341 = vmatpush3.bf16.msra.mxu0 %v7338_v22  ;;  %v7944_v45 = vmov 0.0|0.0   ;;  %v5705_v0 = vld [vmem:[%s10154_s10 + $0x180] sm:$0xff]  ;;  %v5707_v19 = vld [vmem:[%s10154_s10 + $0x190] sm:$0xff]  ;;  %p7822_p12 = pnand %p7821_p11, %p8072_p5 }
 0x4db   : > { %3624 = vst.msk [vmem:[%s9432_s1 + $0x20] sm:$0xff] %vm3619_vm5, %v3615_v59  ;;  %v7342_v30 = vpack.c.bf16 %v3616_v56, %v3615_v59  ;;  %v3610_v58 = vsel %vm3602_vm11, %v9425_v55, %v3594_v62  ;;  %7379 = vmatprep.subr.bf16.mxu1 %v7378_v10  ;;  %v7382_v55 = vpack.c.bf16 %v3712_v11, %v3711_v54  ;;  %v5680_v56 = vld [vmem:[%s10185_s7 + $0xf8] sm:$0xff]  ;;  %v7946_v59 = vmov 0.0   ;;  %v5683_v62 = vld [vmem:[%s10152_s8] ss:$0 sm:$0xff] }
 0x4dc   : > { %v3618_v18 = vmul.f32 1.050701, %v3610_v58  ;;  %v3609_v39 = vsel %vm3601_vm12, %v9427_v8, %v3593_v15  ;;  %7381 = vmatpush3.bf16.msra.mxu1 %v7378_v10  ;;  %v3713_v8 = vld [vmem:[%s10185_s7 + $0x10] sm:$0xff]  ;;  %v7458_v37 = vpack.c.bf16 %v5680_v56, %v5679_v61  ;;  %v5714_v61 = vld [vmem:[%s10154_s10 + $0x1c8] sm:$0xff]  ;;  %v5716_v56 = vld [vmem:[%s10154_s10 + $0x1d8] sm:$0xff]  ;;  %p7823_p13 = pneg %p7822_p12 }
 0x4dd   : > { %v3617_v26 = vmul.f32 1.050701, %v3609_v39  ;;  %7343 = vmatprep.subr.bf16.mxu0 %v7342_v30  ;;  %7383 = vmatprep.subr.bf16.mxu1 %v7382_v55  ;;  %v7386_v60 = vpack.c.bf16 %v3714_v63, %v3713_v8  ;;  %v5721_v8 = vld [vmem:[%s10153_s9 + $0x8] sm:$0xf]  ;;  %v5689_v63 = vld [vmem:[%s10154_s10 + $0x100] sm:$0xff] }
 0x4de   : > { %3627 = vst.msk [vmem:[%s9432_s1 + $0x38] sm:$0xff] %vm3619_vm5, %v3618_v18  ;;  %7345 = vmatpush3.bf16.msra.mxu0 %v7342_v30 }
 0x4df   : > { %3626 = vst.msk [vmem:[%s9432_s1 + $0x30] sm:$0xff] %vm3619_vm5, %v3617_v26  ;;  %v7346_v21 = vpack.c.bf16 %v3618_v18, %v3617_v26  ;;  %s7824_s1 = sshll.u32 %s7947_s3, 4  ;;  %s7825_s1 = int_to_ptr.vmem [resolvable:$false] %s7824_s1 }
 0x4e0   : > { %s7826_s27 = scalar_lea.vmem %s7825_s1, 2048  ;;  %p7827_p0 = scmp.lt.s32.totalorder %s10023_s4, %s7825_s1 }
 0x4e1   : > { %7347 = vmatprep.subr.bf16.mxu0 %v7346_v21  ;;  %p7828_p1 = scmp.lt.s32.totalorder %s7826_s27, %s7820_s6 }
 0x4e2   : > { %7349 = vmatpush3.bf16.msra.mxu0 %v7346_v21 }
 0x4e3   : > { %7351 = vmatprep.subr.bf16.mxu0 %v9438_v49  ;;  %p7829_p2 = por %p7828_p1, %p7827_p0 }
 0x4e5   : > { %6803 = vmatmul.mubr.msk.f32.vlgmr.msra.gmra.mrb[24].mxu0 %vm3619_vm5, %v3629_v32  ;;  %p7830_p3 = pnand %p7829_p2, %p7823_p13 }
 0x4e6   : > { %7353 = vmatpush3.bf16.msra.mxu0 %v9438_v49  ;;  %6821 = vmatprep.mubr.msk.f32.mxu0 %vm3619_vm5, %v5639_v27 }
 0x4e7   : > { %7355 = vmatprep.subr.bf16.mxu0 %v7338_v22 }
 0x4ea   : > { %7357 = vmatpush3.bf16.msra.mxu0 %v7338_v22 }
 0x4eb   : > { %7359 = vmatprep.subr.bf16.mxu0 %v7342_v30 }
 0x4ee   : > { %7361 = vmatpush3.bf16.msra.mxu0 %v7342_v30 }
 0x4ef   : > { %7363 = vmatprep.subr.bf16.mxu0 %v7346_v21 }
 0x4f2   : > { %7365 = vmatpush3.bf16.msra.mxu0 %v7346_v21 }
 0x4f3   : > { %7399 = vmatprep.subr.bf16.mxu0 %v9438_v49 }
 0x4f5   : > { %6822 = vmatmul.mubr.msk.f32.vlgmr.msra.gmra.mrb[26].mxu0 %vm3619_vm5, %v5640_v28 }
 0x4f6   : > { %7401 = vmatpush3.bf16.msra.mxu0 %v9438_v49  ;;  %6878 = vmatprep.mubr.msk.f32.mxu0 %vm3619_vm5, %v5655_v1 }
 0x4f7   : > { %7403 = vmatprep.subr.bf16.mxu0 %v7338_v22 }
 0x4fa   : > { %7405 = vmatpush3.bf16.msra.mxu0 %v7338_v22 }
 0x4fb   : > { %7407 = vmatprep.subr.bf16.mxu0 %v7342_v30 }
 0x4fe   : > { %7409 = vmatpush3.bf16.msra.mxu0 %v7342_v30 }
 0x4ff   : > { %7411 = vmatprep.subr.bf16.mxu0 %v7346_v21 }
 0x502   : > { %7413 = vmatpush3.bf16.msra.mxu0 %v7346_v21 }
 0x503   : > { %7431 = vmatprep.subr.bf16.mxu0 %v9438_v49 }
 0x505   : > { %6879 = vmatmul.mubr.msk.f32.vlgmr.msra.gmra.mrb[28].mxu0 %vm3619_vm5, %v5656_v34 }
 0x506   : > { %7433 = vmatpush3.bf16.msra.mxu0 %v9438_v49  ;;  %6916 = vmatprep.mubr.msk.f32.mxu0 %vm3619_vm5, %v5669_v17  ;;  %v5666_v49 = vld [vmem:[%s10185_s7 + $0xb8] sm:$0xff] }
 0x507   : > { %7435 = vmatprep.subr.bf16.mxu0 %v7338_v22  ;;  %v7426_v38 = vpack.c.bf16 %v5666_v49, %v5665_v52  ;;  %v5701_v52 = vld [vmem:[%s10154_s10 + $0x160] sm:$0xff]  ;;  %v5703_v49 = vld [vmem:[%s10154_s10 + $0x170] sm:$0xff] }
 0x508   : > { %v7482_v13 = vpack.c.bf16 %v5703_v49, %v5701_v52  ;;  %v4446_v52 = vld [vmem:[%s10154_s10 + $0x90] sm:$0xff]  ;;  %v4449_v49 = vld [vmem:[%s10154_s10 + $0xa8] sm:$0xff] }
 0x50a   : > { %7437 = vmatpush3.bf16.msra.mxu0 %v7338_v22  ;;  %v5678_v22 = vld [vmem:[%s10185_s7 + $0xe8] sm:$0xff] }
 0x50b   : > { %7439 = vmatprep.subr.bf16.mxu0 %v7342_v30  ;;  %v7454_v41 = vpack.c.bf16 %v5678_v22, %v5677_v33  ;;  %v5709_v22 = vld [vmem:[%s10154_s10 + $0x1a0] sm:$0xff] }
 0x50e   : > { %7441 = vmatpush3.bf16.msra.mxu0 %v7342_v30 }
 0x50f   : > { %7443 = vmatprep.subr.bf16.mxu0 %v7346_v21 }
 0x512   : > { %7445 = vmatpush3.bf16.msra.mxu0 %v7346_v21 }
 0x513   : > { %7462 = vmatprep.subr.bf16.mxu0 %v7944_v45 }
 0x515   : > { %6917 = vmatmul.mubr.msk.f32.vlgmr.msra.gmra.mrb[30].mxu0 %vm3619_vm5, %v5670_v36 }
 0x516   : > { %6942 = vmatprep.mubr.msk.f32.mxu0 %vm7945_vm13, %v7946_v59 }
 0x5b8   : > { %v6804_v47 = vpop.f32.mrb[24].mxu0 }
 0x5b9   : > { %v3702_v5 = vpop.f32.mrb[25].mxu0 }
 0x5c8   : > { %v6823_v23 = vpop.f32.mrb[26].mxu0 }
 0x5c9   : > { %v3794_v57 = vpop.f32.mrb[27].mxu0 }
 0x5ca   : > { %6840 = vmatprep.mubr.msk.f32.mxu1 %vm3619_vm5, %v3794_v57 }
 0x5cb   : > { %6841 = vmatmul.mubr.msk.f32.vlgmr.msra.gmra.mrb[160].mxu1 %vm3619_vm5, %v6823_v23  ;;  %v5691_v23 = vld [vmem:[%s10154_s10 + $0x110] sm:$0xff] }
 0x5cc   : > { %7385 = vmatpush3.bf16.msra.mxu1 %v7382_v55  ;;  %6859 = vmatprep.mubr.msk.f32.mxu1 %vm3619_vm5, %v3702_v5  ;;  %v5690_v55 = vld [vmem:[%s10154_s10 + $0x108] sm:$0xff]  ;;  %v4353_v5 = vld [vmem:[%s10153_s9] sm:$0xf]  ;;  %v7470_v40 = vpack.c.bf16 %v5691_v23, %v5689_v63 }
 0x5cd   : > { %7387 = vmatprep.subr.bf16.mxu1 %v7386_v60  ;;  %v4437_v23 = vld [vmem:[%s10154_s10 + $0x48] sm:$0xff] }
 0x5d0   : > { %7389 = vmatpush3.bf16.msra.mxu1 %v7386_v60  ;;  %v5694_v60 = vld [vmem:[%s10154_s10 + $0x128] sm:$0xff] }
 0x5d1   : > { %7391 = vmatprep.subr.bf16.mxu1 %v7390_v35  ;;  %v7472_v53 = vpack.c.bf16 %v5696_v16, %v5694_v60 }
 0x5d4   : > { %7393 = vmatpush3.bf16.msra.mxu1 %v7390_v35  ;;  %v5755_v35 = vld [vmem:[%s10153_s9 + $0xc] sm:$0xf] }
 0x5d5   : > { %7395 = vmatprep.subr.bf16.mxu1 %v7394_v7 }
 0x5d8   : > { %7397 = vmatpush3.bf16.msra.mxu1 %v7394_v7  ;;  %v6880_v25 = vpop.f32.mrb[28].mxu0  ;;  %v5693_v7 = vld [vmem:[%s10154_s10 + $0x120] sm:$0xff] }
 0x5d9   : > { %7415 = vmatprep.subr.bf16.mxu1 %v7414_v24  ;;  %v4049_v48 = vpop.f32.mrb[29].mxu0  ;;  %v7474_v9 = vpack.c.bf16 %v5695_v29, %v5693_v7  ;;  %v4438_v7 = vld [vmem:[%s10154_s10 + $0x50] sm:$0xff]  ;;  %v4441_v29 = vld [vmem:[%s10154_s10 + $0x68] sm:$0xff] }
 0x5db   : > { %6860 = vmatmul.mubr.msk.f32.vlgmr.msra.gmra.mrb[160].mxu1 %vm3619_vm5, %v6804_v47  ;;  %v5692_v47 = vld [vmem:[%s10154_s10 + $0x118] sm:$0xff] }
 0x5dc   : > { %7417 = vmatpush3.bf16.msra.mxu1 %v7414_v24  ;;  %6897 = vmatprep.mubr.msk.f32.mxu1 %vm3619_vm5, %v4049_v48  ;;  %v7468_v57 = vpack.c.bf16 %v5692_v47, %v5690_v55  ;;  %v5700_v24 = vld [vmem:[%s10154_s10 + $0x158] sm:$0xff]  ;;  %v5702_v48 = vld [vmem:[%s10154_s10 + $0x168] sm:$0xff] }
 0x5dd   : > { %7419 = vmatprep.subr.bf16.mxu1 %v7418_v12  ;;  %v7476_v46 = vpack.c.bf16 %v5700_v24, %v5698_v31  ;;  %v4443_v31 = vld [vmem:[%s10154_s10 + $0x78] sm:$0xff] }
 0x5e0   : > { %7421 = vmatpush3.bf16.msra.mxu1 %v7418_v12  ;;  %v5699_v12 = vld [vmem:[%s10154_s10 + $0x150] sm:$0xff] }
 0x5e1   : > { %7423 = vmatprep.subr.bf16.mxu1 %v7422_v43 }
 0x5e4   : > { %7425 = vmatpush3.bf16.msra.mxu1 %v7422_v43  ;;  %v7480_v43 = vpack.c.bf16 %v5704_v50, %v5702_v48  ;;  %v4447_v48 = vld [vmem:[%s10154_s10 + $0x98] sm:$0xff] }
 0x5e5   : > { %7427 = vmatprep.subr.bf16.mxu1 %v7426_v38 }
 0x5e8   : > { %7429 = vmatpush3.bf16.msra.mxu1 %v7426_v38  ;;  %v6918_v4 = vpop.f32.mrb[30].mxu0  ;;  %v5706_v38 = vld [vmem:[%s10154_s10 + $0x188] sm:$0xff] }
 0x5e9   : > { %7447 = vmatprep.subr.bf16.mxu1 %v7446_v44  ;;  %v4225_v20 = vpop.f32.mrb[31].mxu0 }
 0x5eb   : > { %6898 = vmatmul.mubr.msk.f32.vlgmr.msra.gmra.mrb[160].mxu1 %vm3619_vm5, %v6880_v25  ;;  %v5697_v25 = vld [vmem:[%s10154_s10 + $0x140] sm:$0xff] }
 0x5ec   : > { %7449 = vmatpush3.bf16.msra.mxu1 %v7446_v44  ;;  %6935 = vmatprep.mubr.msk.f32.mxu1 %vm3619_vm5, %v4225_v20  ;;  %v7478_v51 = vpack.c.bf16 %v5699_v12, %v5697_v25  ;;  %v7484_v44 = vpack.c.bf16 %v5708_v6, %v5706_v38  ;;  %v7486_v20 = vpack.c.bf16 %v5707_v19, %v5705_v0  ;;  %v4442_v25 = vld [vmem:[%s10154_s10 + $0x70] sm:$0xff]  ;;  %v4445_v12 = vld [vmem:[%s10154_s10 + $0x88] sm:$0xff]  ;;  %v4451_v38 = vld [vmem:[%s10154_s10 + $0xb8] sm:$0xff] }
 0x5ed   : > { %7451 = vmatprep.subr.bf16.mxu1 %v7450_v14  ;;  %v4450_v0 = vld [vmem:[%s10154_s10 + $0xb0] sm:$0xff]  ;;  %v4453_v19 = vld [vmem:[%s10154_s10 + $0xc8] sm:$0xff] }
 0x5f0   : > { %7453 = vmatpush3.bf16.msra.mxu1 %v7450_v14  ;;  %v5712_v14 = vld [vmem:[%s10154_s10 + $0x1b8] sm:$0xff] }
 0x5f1   : > { %7455 = vmatprep.subr.bf16.mxu1 %v7454_v41 }
 0x5f4   : > { %7457 = vmatpush3.bf16.msra.mxu1 %v7454_v41  ;;  %v5711_v41 = vld [vmem:[%s10154_s10 + $0x1b0] sm:$0xff] }
 0x5f5   : > { %7459 = vmatprep.subr.bf16.mxu1 %v7458_v37 }
 0x5f8   : > { %7461 = vmatpush3.bf16.msra.mxu1 %v7458_v37  ;;  %v7490_v37 = vpack.c.bf16 %v5711_v41, %v5709_v22  ;;  %v4454_v22 = vld [vmem:[%s10154_s10 + $0xd0] sm:$0xff]  ;;  %v4457_v41 = vld [vmem:[%s10154_s10 + $0xe8] sm:$0xff] }
 0x5f9   : > { %7532 = vmatprep.subr.bf16.mxu1 %v7944_v45 }
 0x5fb   : > { %6936 = vmatmul.mubr.msk.f32.vlgmr.msra.gmra.mrb[160].mxu1 %vm3619_vm5, %v6918_v4  ;;  %v5710_v4 = vld [vmem:[%s10154_s10 + $0x1a8] sm:$0xff] }
 0x5fc   : > { %6956 = vmatprep.mubr.msk.f32.mxu1 %vm7945_vm13, %v7946_v59  ;;  %v7488_v33 = vpack.c.bf16 %v5712_v14, %v5710_v4  ;;  %v4455_v4 = vld [vmem:[%s10154_s10 + $0xd8] sm:$0xff] }
 0x6ce   : > { %v6937_v15 = vpop.f32.mrb[160].mxu1 }
 0x6cf   : > { %v4334_v30 = vadd.f32 %v6937_v15, %v5683_v62  ;;  %v4315_v58 = vpop.f32.mrb[161].mxu1  ;;  %v5715_v15 = vld [vmem:[%s10154_s10 + $0x1d0] sm:$0xff] }
 0x6d0   : > { %v4333_v18 = vadd.f32 %v5683_v62, %v4315_v58  ;;  %v5713_v62 = vld [vmem:[%s10154_s10 + $0x1c0] sm:$0xff]  ;;  %v5720_v58 = vld [vmem:[%s10154_s10 + $0x1f8] sm:$0xff] }
 0x6d1   : > { %v4336_v39 = vmin.f32 %v4334_v30, 0.0  ;;  %vm4346_vm14 = vcmp.gt.f32.partialorder %v4334_v30, 0.0 }
 0x6d2   : > { %v4335_v26 = vmin.f32 %v4333_v18, 0.0  ;;  %vm4345_vm15 = vcmp.gt.f32.partialorder %v4333_v18, 0.0 }
 0x6d3   : > { %v4339_v21 = vmul.f32 1.442695, %v4336_v39 }
 0x6d4   : > { %v4337_v32 = vmul.f32 1.442695, %v4335_v26  ;;  %v5717_v26 = vld [vmem:[%s10154_s10 + $0x1e0] sm:$0xff] }
 0x6d5   : > { %7812 = vpow2.f32 %v4339_v21  ;;  %v5719_v21 = vld [vmem:[%s10154_s10 + $0x1f0] sm:$0xff] }
 0x6d6   : > { %7814 = vpow2.f32 %v4337_v32  ;;  %v7498_v32 = vpack.c.bf16 %v5719_v21, %v5717_v26  ;;  %v5725_v26 = vld [vmem:[%s10154_s10 + $0x210] sm:$0xff]  ;;  %v5728_v21 = vld [vmem:[%s10154_s10 + $0x228] sm:$0xff] }
 0x6df   : > { %v7813_v27 = vpop.eup %7812 }
 0x6e0   : > { %v7815_v28 = vpop.eup %7814  ;;  %v5685_v1 = vadd.f32 -1.0, %v7813_v27  ;;  %v4429_v27 = vld [vmem:[%s10154_s10 + $0x8] sm:$0xff] }
 0x6e1   : > { %v5684_v34 = vadd.f32 -1.0, %v7815_v28  ;;  %v4431_v28 = vld [vmem:[%s10154_s10 + $0x18] sm:$0xff] }
 0x6e2   : > { %v4344_v17 = vmul.f32 1.6732632, %v5685_v1  ;;  %v7500_v1 = vpack.c.bf16 %v4431_v28, %v4429_v27 }
 0x6e3   : > { %v4343_v36 = vmul.f32 1.6732632, %v5684_v34  ;;  %v4428_v34 = vld [vmem:[%s10154_s10] sm:$0xff] }
 0x6e4   : > { %v4348_v2 = vsel %vm4346_vm14, %v4334_v30, %v4344_v17  ;;  %v5718_v30 = vld [vmem:[%s10154_s10 + $0x1e8] sm:$0xff]  ;;  %v4430_v17 = vld [vmem:[%s10154_s10 + $0x10] sm:$0xff] }
 0x6e5   : > { %v4350_v42 = vmul.f32 1.050701, %v4348_v2  ;;  %v4347_v10 = vsel %vm4345_vm15, %v4333_v18, %v4343_v36  ;;  %v7494_v18 = vpack.c.bf16 %v5715_v15, %v5713_v62  ;;  %v7496_v39 = vpack.c.bf16 %v5720_v58, %v5718_v30  ;;  %v4433_v2 = vld [vmem:[%s10154_s10 + $0x28] sm:$0xff]  ;;  %v4458_v62 = vld [vmem:[%s10154_s10 + $0xf0] sm:$0xff]  ;;  %v5726_v30 = vld [vmem:[%s10154_s10 + $0x218] sm:$0xff] }
 0x6e6   : > { %v4349_v54 = vmul.f32 1.050701, %v4347_v10  ;;  %v7502_v55 = vpack.c.bf16 %v4430_v17, %v4428_v34  ;;  %v5724_v15 = vld [vmem:[%s10154_s10 + $0x208] sm:$0xff]  ;;  %v5729_v34 = vld [vmem:[%s10154_s10 + $0x230] sm:$0xff] }
 0x6e7   : > { %4352 = vst [vmem:[%s9590_s2 + $0x8] sm:$0xff] %v4350_v42  ;;  %v5732_v17 = vld [vmem:[%s10154_s10 + $0x248] sm:$0xff] }
 0x6e8   : > { %4351 = vst [vmem:[%s9590_s2] sm:$0xff] %v4349_v54  ;;  %v7463_v11 = vpack.c.bf16 %v4350_v42, %v4349_v54  ;;  %v4435_v42 = vld [vmem:[%s10154_s10 + $0x38] sm:$0xff]  ;;  %s10028_s2 = scalar_lea.hbm %s10156_s12, %s5804_s0 }
 0x6e9   : > { %v7504_v47 = vpack.c.bf16 %v4435_v42, %v4433_v2  ;;  %v5734_v2 = vld [vmem:[%s10154_s10 + $0x258] sm:$0xff] }
 0x6ea   : > { %7464 = vmatpush3.bf16.msra.mxu0 %v7463_v11  ;;  %7534 = vmatpush3.bf16.msra.mxu1 %v7463_v11 }
 0x6eb   : > { %7465 = vmatprep.subr.bf16.mxu0 %v7944_v45  ;;  %7567 = vmatprep.subr.bf16.mxu1 %v7944_v45  ;;  %v7492_v45 = vpack.c.bf16 %v5716_v56, %v5714_v61  ;;  %v4459_v61 = vld [vmem:[%s10154_s10 + $0xf8] sm:$0xff] }
 0x6ed   : > { %6943 = vmatmul.mubr.msk.f32.vlgmr.msra.gmra.mrb[32].mxu0 %vm4354_vm0, %v4353_v5  ;;  %6957 = vmatmul.mubr.msk.f32.vlgmr.msra.gmra.mrb[162].mxu1 %vm4354_vm0, %v5721_v8  ;;  %v4432_v5 = vld [vmem:[%s10154_s10 + $0x20] sm:$0xff]  ;;  %v4434_v8 = vld [vmem:[%s10154_s10 + $0x30] sm:$0xff] }
 0x6ee   : > { %7467 = vmatpush3.bf16.msra.mxu0 %v7463_v11  ;;  %7569 = vmatpush3.bf16.msra.mxu1 %v7463_v11 }
 0x6ef   : > { %6949 = vmatprep.mubr.msk.f32.mxu0 %vm7945_vm13, %v7946_v59  ;;  %6963 = vmatprep.mubr.msk.f32.mxu1 %vm7945_vm13, %v7946_v59 }
 0x6f0   : > { %7469 = vmatprep.subr.bf16.mxu0 %v7468_v57  ;;  %v4439_v57 = vld [vmem:[%s10154_s10 + $0x58] sm:$0xff] }
 0x6f1   : > { %6950 = vmatmul.mubr.msk.f32.vlgmr.msra.gmra.mrb[34].mxu0 %vm4354_vm0, %v5687_v3  ;;  %6964 = vmatmul.mubr.msk.f32.vlgmr.msra.gmra.mrb[164].mxu1 %vm4354_vm0, %v5755_v35  ;;  %v7506_v35 = vpack.c.bf16 %v4434_v8, %v4432_v5 }
 0x6f2   : > { %7471 = vmatpush1.bf16.msra.mxu0 %v7470_v40  ;;  %4632 = vmatprep.mubr.f32.mxu0 %v7946_v59  ;;  %v7508_v40 = vpack.c.bf16 %v4439_v57, %v4437_v23  ;;  %v5737_v23 = vld [vmem:[%s10154_s10 + $0x270] sm:$0xff]  ;;  %v5740_v57 = vld [vmem:[%s10154_s10 + $0x288] sm:$0xff] }
 0x6f3   : > { %7473 = vmatprep.subr.bf16.mxu0 %v7472_v53  ;;  %v4436_v53 = vld [vmem:[%s10154_s10 + $0x40] sm:$0xff] }
 0x6f4   : > { %v7510_v24 = vpack.c.bf16 %v4438_v7, %v4436_v53  ;;  %v5741_v53 = vld [vmem:[%s10154_s10 + $0x290] sm:$0xff]  ;;  %v5744_v7 = vld [vmem:[%s10154_s10 + $0x2a8] sm:$0xff] }
 0x6f6   : > { %7475 = vmatpush1.bf16.msra.mxu0 %v7474_v9  ;;  %v7512_v9 = vpack.c.bf16 %v4443_v31, %v4441_v29  ;;  %v5746_v29 = vld [vmem:[%s10154_s10 + $0x2b8] sm:$0xff] }
 0x6f7   : > { %7477 = vmatprep.subr.bf16.mxu0 %v7476_v46  ;;  %v4440_v46 = vld [vmem:[%s10154_s10 + $0x60] sm:$0xff] }
 0x6f8   : > { %v7514_v50 = vpack.c.bf16 %v4442_v25, %v4440_v46  ;;  %v5745_v46 = vld [vmem:[%s10154_s10 + $0x2b0] sm:$0xff]  ;;  %v5748_v25 = vld [vmem:[%s10154_s10 + $0x2c8] sm:$0xff] }
 0x6fa   : > { %7479 = vmatpush1.bf16.msra.mxu0 %v7478_v51  ;;  %v7516_v51 = vpack.c.bf16 %v4447_v48, %v4445_v12  ;;  %v5750_v12 = vld [vmem:[%s10154_s10 + $0x2d8] sm:$0xff] }
 0x6fb   : > { %7481 = vmatprep.subr.bf16.mxu0 %v7480_v43  ;;  %v4444_v43 = vld [vmem:[%s10154_s10 + $0x80] sm:$0xff] }
 0x6fc   : > { %v7518_v6 = vpack.c.bf16 %v4446_v52, %v4444_v43  ;;  %v5749_v43 = vld [vmem:[%s10154_s10 + $0x2d0] sm:$0xff]  ;;  %v5752_v52 = vld [vmem:[%s10154_s10 + $0x2e8] sm:$0xff] }
 0x6fe   : > { %7483 = vmatpush1.bf16.msra.mxu0 %v7482_v13  ;;  %v7520_v13 = vpack.c.bf16 %v4451_v38, %v4449_v49  ;;  %v5754_v49 = vld [vmem:[%s10154_s10 + $0x2f8] sm:$0xff] }
 0x6ff   : > { %7485 = vmatprep.subr.bf16.mxu0 %v7484_v44  ;;  %v4448_v44 = vld [vmem:[%s10154_s10 + $0xa0] sm:$0xff] }
 0x700   : > { %v7522_v14 = vpack.c.bf16 %v4450_v0, %v4448_v44  ;;  %v5753_v44 = vld [vmem:[%s10154_s10 + $0x2f0] sm:$0xff]  ;;  %v5758_v0 = vld [vmem:[%s10154_s10 + $0x308] sm:$0xff] }
 0x702   : > { %7487 = vmatpush1.bf16.msra.mxu0 %v7486_v20  ;;  %v7524_v20 = vpack.c.bf16 %v4455_v4, %v4453_v19  ;;  %v5760_v19 = vld [vmem:[%s10154_s10 + $0x318] sm:$0xff] }
 0x703   : > { %7489 = vmatprep.subr.bf16.mxu0 %v7488_v33  ;;  %v4452_v33 = vld [vmem:[%s10154_s10 + $0xc0] sm:$0xff] }
 0x704   : > { %v7526_v56 = vpack.c.bf16 %v4454_v22, %v4452_v33  ;;  %v5759_v33 = vld [vmem:[%s10154_s10 + $0x310] sm:$0xff]  ;;  %v5762_v22 = vld [vmem:[%s10154_s10 + $0x328] sm:$0xff] }
 0x706   : > { %7491 = vmatpush1.bf16.msra.mxu0 %v7490_v37  ;;  %v7528_v37 = vpack.c.bf16 %v4459_v61, %v4457_v41  ;;  %v5764_v41 = vld [vmem:[%s10154_s10 + $0x338] sm:$0xff] }
 0x707   : > { %7493 = vmatprep.subr.bf16.mxu0 %v7492_v45  ;;  %v4456_v45 = vld [vmem:[%s10154_s10 + $0xe0] sm:$0xff] }
 0x708   : > { %v7530_v58 = vpack.c.bf16 %v4458_v62, %v4456_v45  ;;  %v5763_v45 = vld [vmem:[%s10154_s10 + $0x330] sm:$0xff]  ;;  %v5766_v62 = vld [vmem:[%s10154_s10 + $0x348] sm:$0xff] }
 0x70a   : > { %7495 = vmatpush1.bf16.msra.mxu0 %v7494_v18  ;;  %v7535_v18 = vpack.c.bf16 %v5726_v30, %v5724_v15  ;;  %v5768_v15 = vld [vmem:[%s10154_s10 + $0x358] sm:$0xff] }
 0x70b   : > { %7497 = vmatprep.subr.bf16.mxu0 %v7496_v39  ;;  %v5723_v39 = vld [vmem:[%s10154_s10 + $0x200] sm:$0xff] }
 0x70c   : > { %v7537_v27 = vpack.c.bf16 %v5725_v26, %v5723_v39  ;;  %v5767_v39 = vld [vmem:[%s10154_s10 + $0x350] sm:$0xff]  ;;  %v5770_v26 = vld [vmem:[%s10154_s10 + $0x368] sm:$0xff] }
 0x70e   : > { %7499 = vmatpush1.bf16.msra.mxu0 %v7498_v32  ;;  %v5730_v32 = vld [vmem:[%s10154_s10 + $0x238] sm:$0xff] }
 0x70f   : > { %7501 = vmatprep.subr.bf16.mxu0 %v7500_v1  ;;  %v7539_v28 = vpack.c.bf16 %v5730_v32, %v5728_v21  ;;  %v5727_v1 = vld [vmem:[%s10154_s10 + $0x220] sm:$0xff] }
 0x710   : > { %v7541_v42 = vpack.c.bf16 %v5729_v34, %v5727_v1  ;;  %v5769_v32 = vld [vmem:[%s10154_s10 + $0x360] sm:$0xff]  ;;  %v5776_v1 = vld [vmem:[%s10154_s10 + $0x398] sm:$0xff] }
 0x7c0   : > { %v9723_v36 = vpop.f32.mrb[32].mxu0  ;;  %v9731_v10 = vpop.f32.mrb[162].mxu1 }
 0x7c1   : > { %v6944_v54 = vpop.f32.mrb[33].mxu0  ;;  %v6958_v11 = vpop.f32.mrb[163].mxu1 }
 0x7c2   : > { %v7543_v54 = vpack.c.bf16 %v5734_v2, %v5732_v17  ;;  %v5731_v11 = vld [vmem:[%s10154_s10 + $0x240] sm:$0xff] }
 0x7c3   : > { %v5773_v2 = vld [vmem:[%s10154_s10 + $0x380] sm:$0xff] }
 0x7c4   : > { %v4531_v63 = vpop.f32.mrb[34].mxu0  ;;  %v9745_v60 = vpop.f32.mrb[164].mxu1 }
 0x7c5   : > { %4633 = vmatmul.mubr.f32.vlgmr.msra.gmra.mrb[36].mxu0 %v4531_v63  ;;  %v6951_v16 = vpop.f32.mrb[35].mxu0  ;;  %v6965_v3 = vpop.f32.mrb[165].mxu1  ;;  %v5735_v63 = vld [vmem:[%s10154_s10 + $0x260] sm:$0xff] }
 0x7c6   : > { %7503 = vmatpush1.bf16.msra.mxu0 %v7502_v55  ;;  %4703 = vmatprep.mubr.f32.mxu0 %v7946_v59  ;;  %v5733_v55 = vld [vmem:[%s10154_s10 + $0x250] sm:$0xff]  ;;  %v5742_v16 = vld [vmem:[%s10154_s10 + $0x298] sm:$0xff]  ;;  %v7549_v3 = vpack.c.bf16 %v5737_v23, %v5735_v63 }
 0x7c7   : > { %7505 = vmatprep.subr.bf16.mxu0 %v7504_v47  ;;  %v5736_v47 = vld [vmem:[%s10154_s10 + $0x268] sm:$0xff]  ;;  %v7545_v5 = vpack.c.bf16 %v5733_v55, %v5731_v11  ;;  %v5780_v11 = vld [vmem:[%s10154_s10 + $0x3b8] sm:$0xff] }
 0x7c8   : > { %v5784_v63 = vld [vmem:[%s10154_s10 + $0x3d8] sm:$0xff] }
 0x7ca   : > { %7507 = vmatpush1.bf16.msra.mxu0 %v7506_v35  ;;  %v7551_v35 = vpack.c.bf16 %v5742_v16, %v5740_v57  ;;  %v5781_v16 = vld [vmem:[%s10154_s10 + $0x3c0] sm:$0xff] }
 0x7cb   : > { %7509 = vmatprep.subr.bf16.mxu0 %v7508_v40  ;;  %v5739_v40 = vld [vmem:[%s10154_s10 + $0x280] sm:$0xff] }
 0x7cc   : > { %v7553_v31 = vpack.c.bf16 %v5741_v53, %v5739_v40  ;;  %v5788_v40 = vld [vmem:[%s10154_s10 + $0x3f8] sm:$0xff] }
 0x7ce   : > { %7511 = vmatpush1.bf16.msra.mxu0 %v7510_v24  ;;  %v7555_v24 = vpack.c.bf16 %v5746_v29, %v5744_v7  ;;  %v5785_v29 = vld [vmem:[%s10154_s10 + $0x3e0] sm:$0xff] }
 0x7cf   : > { %7513 = vmatprep.subr.bf16.mxu0 %v7512_v9  ;;  %v5743_v9 = vld [vmem:[%s10154_s10 + $0x2a0] sm:$0xff] }
 0x7d0   : > { %v7557_v48 = vpack.c.bf16 %v5745_v46, %v5743_v9 }
 0x7d2   : > { %7515 = vmatpush1.bf16.msra.mxu0 %v7514_v50  ;;  %v7559_v50 = vpack.c.bf16 %v5750_v12, %v5748_v25 }
 0x7d3   : > { %7517 = vmatprep.subr.bf16.mxu0 %v7516_v51  ;;  %v5747_v51 = vld [vmem:[%s10154_s10 + $0x2c0] sm:$0xff] }
 0x7d4   : > { %v7561_v38 = vpack.c.bf16 %v5749_v43, %v5747_v51 }
 0x7d6   : > { %7519 = vmatpush1.bf16.msra.mxu0 %v7518_v6  ;;  %v7563_v6 = vpack.c.bf16 %v5754_v49, %v5752_v52 }
 0x7d7   : > { %7521 = vmatprep.subr.bf16.mxu0 %v7520_v13  ;;  %v5751_v13 = vld [vmem:[%s10154_s10 + $0x2e0] sm:$0xff] }
 0x7d8   : > { %v7565_v4 = vpack.c.bf16 %v5753_v44, %v5751_v13 }
 0x7da   : > { %7523 = vmatpush1.bf16.msra.mxu0 %v7522_v14  ;;  %v7570_v14 = vpack.c.bf16 %v5760_v19, %v5758_v0 }
 0x7db   : > { %7525 = vmatprep.subr.bf16.mxu0 %v7524_v20  ;;  %v5757_v20 = vld [vmem:[%s10154_s10 + $0x300] sm:$0xff] }
 0x7dc   : > { %v7572_v61 = vpack.c.bf16 %v5759_v33, %v5757_v20 }
 0x7de   : > { %7527 = vmatpush1.bf16.msra.mxu0 %v7526_v56  ;;  %v7574_v56 = vpack.c.bf16 %v5764_v41, %v5762_v22 }
 0x7df   : > { %7529 = vmatprep.subr.bf16.mxu0 %v7528_v37  ;;  %v5761_v37 = vld [vmem:[%s10154_s10 + $0x320] sm:$0xff] }
 0x7e0   : > { %v7576_v30 = vpack.c.bf16 %v5763_v45, %v5761_v37 }
 0x7e2   : > { %7531 = vmatpush1.bf16.msra.mxu0 %v7530_v58  ;;  %v7578_v58 = vpack.c.bf16 %v5768_v15, %v5766_v62 }
 0x7e3   : > { %7536 = vmatprep.subr.bf16.mxu0 %v7535_v18  ;;  %v5765_v18 = vld [vmem:[%s10154_s10 + $0x340] sm:$0xff] }
 0x7e5   : > { %4704 = vmatmul.mubr.f32.vlgmr.msra.gmra.mrb[36].mxu0 %v9723_v36  ;;  %v5738_v36 = vld [vmem:[%s10154_s10 + $0x278] sm:$0xff] }
 0x7e6   : > { %7538 = vmatpush1.bf16.msra.mxu0 %v7537_v27  ;;  %4882 = vmatprep.mubr.f32.mxu0 %v7946_v59  ;;  %v7547_v8 = vpack.c.bf16 %v5738_v36, %v5736_v47  ;;  %v5771_v27 = vld [vmem:[%s10154_s10 + $0x370] sm:$0xff]  ;;  %v5777_v36 = vld [vmem:[%s10154_s10 + $0x3a0] sm:$0xff] }
 0x7e7   : > { %7540 = vmatprep.subr.bf16.mxu0 %v7539_v28  ;;  %v5774_v28 = vld [vmem:[%s10154_s10 + $0x388] sm:$0xff]  ;;  %v7584_v34 = vpack.c.bf16 %v5771_v27, %v5769_v32 }
 0x7e8   : > { %v7586_v17 = vpack.c.bf16 %v5776_v1, %v5774_v28 }
 0x7ea   : > { %7542 = vmatpush1.bf16.msra.mxu0 %v7541_v42  ;;  %v5775_v42 = vld [vmem:[%s10154_s10 + $0x390] sm:$0xff] }
 0x7eb   : > { %7544 = vmatprep.subr.bf16.mxu0 %v7543_v54  ;;  %v5778_v54 = vld [vmem:[%s10154_s10 + $0x3a8] sm:$0xff]  ;;  %v7588_v55 = vpack.c.bf16 %v5775_v42, %v5773_v2 }
 0x7ec   : > { %v7590_v47 = vpack.c.bf16 %v5780_v11, %v5778_v54 }
 0x7ee   : > { %7546 = vmatpush1.bf16.msra.mxu0 %v7545_v5  ;;  %v5779_v5 = vld [vmem:[%s10154_s10 + $0x3b0] sm:$0xff] }
 0x7ef   : > { %7548 = vmatprep.subr.bf16.mxu0 %v7547_v8  ;;  %v5782_v8 = vld [vmem:[%s10154_s10 + $0x3c8] sm:$0xff]  ;;  %v7592_v23 = vpack.c.bf16 %v5779_v5, %v5777_v36 }
 0x7f0   : > { %v7594_v57 = vpack.c.bf16 %v5784_v63, %v5782_v8 }
 0x7f2   : > { %7550 = vmatpush1.bf16.msra.mxu0 %v7549_v3  ;;  %v5783_v3 = vld [vmem:[%s10154_s10 + $0x3d0] sm:$0xff] }
 0x7f3   : > { %7552 = vmatprep.subr.bf16.mxu0 %v7551_v35  ;;  %v5786_v35 = vld [vmem:[%s10154_s10 + $0x3e8] sm:$0xff]  ;;  %v7596_v53 = vpack.c.bf16 %v5783_v3, %v5781_v16 }
 0x7f4   : > { %v7598_v7 = vpack.c.bf16 %v5788_v40, %v5786_v35 }
 0x7f6   : > { %7554 = vmatpush1.bf16.msra.mxu0 %v7553_v31  ;;  %v5787_v31 = vld [vmem:[%s10154_s10 + $0x3f0] sm:$0xff] }
 0x7f7   : > { %7556 = vmatprep.subr.bf16.mxu0 %v7555_v24  ;;  %v7600_v24 = vpack.c.bf16 %v5787_v31, %v5785_v29 }
 0x7fa   : > { %7558 = vmatpush1.bf16.msra.mxu0 %v7557_v48 }
 0x7fb   : > { %7560 = vmatprep.subr.bf16.mxu0 %v7559_v50 }
 0x7fe   : > { %7562 = vmatpush1.bf16.msra.mxu0 %v7561_v38 }
 0x7ff   : > { %7564 = vmatprep.subr.bf16.mxu0 %v7563_v6 }
 0x802   : > { %7566 = vmatpush1.bf16.msra.mxu0 %v7565_v4 }
 0x803   : > { %7571 = vmatprep.subr.bf16.mxu0 %v7570_v14 }
 0x805   : > { %4883 = vmatmul.mubr.f32.vlgmr.msra.gmra.mrb[36].mxu0 %v9731_v10  ;;  %v5772_v10 = vld [vmem:[%s10154_s10 + $0x378] sm:$0xff] }
 0x806   : > { %7573 = vmatpush1.bf16.msra.mxu0 %v7572_v61  ;;  %5063 = vmatprep.mubr.f32.mxu0 %v7946_v59  ;;  %v7580_v59 = vpack.c.bf16 %v5767_v39, %v5765_v18  ;;  %v7582_v21 = vpack.c.bf16 %v5772_v10, %v5770_v26 }
 0x807   : > { %7575 = vmatprep.subr.bf16.mxu0 %v7574_v56 }
 0x80a   : > { %7577 = vmatpush1.bf16.msra.mxu0 %v7576_v30 }
 0x80b   : > { %7579 = vmatprep.subr.bf16.mxu0 %v7578_v58 }
 0x80e   : > { %7581 = vmatpush1.bf16.msra.mxu0 %v7580_v59 }
 0x80f   : > { %7583 = vmatprep.subr.bf16.mxu0 %v7582_v21 }
 0x812   : > { %7585 = vmatpush1.bf16.msra.mxu0 %v7584_v34 }
 0x813   : > { %7587 = vmatprep.subr.bf16.mxu0 %v7586_v17 }
 0x816   : > { %7589 = vmatpush1.bf16.msra.mxu0 %v7588_v55 }
 0x817   : > { %7591 = vmatprep.subr.bf16.mxu0 %v7590_v47 }
 0x81a   : > { %7593 = vmatpush1.bf16.msra.mxu0 %v7592_v23 }
 0x81b   : > { %7595 = vmatprep.subr.bf16.mxu0 %v7594_v57 }
 0x81e   : > { %7597 = vmatpush1.bf16.msra.mxu0 %v7596_v53 }
 0x81f   : > { %7599 = vmatprep.subr.bf16.mxu0 %v7598_v7 }
 0x822   : > { %7601 = vmatpush1.bf16.msra.mxu0 %v7600_v24 }
 0x825   : > { %5064 = vmatmul.mubr.f32.vlgmr.msra.gmra.mrb[36].mxu0 %v9745_v60 }
 0x826   : > { %7833 = shalt.err (!%p7830_p3)
}
 0x827   : > { %s7834_s20 = scalar_lea.hbm %s10019_s19, 1024  ;;  %s7838_s16 = scalar_lea.hbm %s10157_s13, 2048 }
 0x828   : > { %p7835_p4 = scmp.ne.s32.totalorder %s10019_s19, %s7834_s20  ;;  %p7839_p9 = scmp.lt.u32.totalorder %s10019_s19, %s10157_s13 }
 0x829   : > { %p7840_p10 = scmp.lt.u32.totalorder %s7838_s16, %s7834_s20  ;;  %p7842_p12 = scmp.lt.u32.totalorder %s7834_s20, %s10019_s19 }
 0x82a   : > { %p7836_p7 = pnand %p7835_p4, %p8072_p5 }
 0x82b   : > { %p7841_p11 = por %p7840_p10, %p7839_p9 }
 0x82c   : > { %p7837_p8 = pneg %p7836_p7 }
 0x82d   : > { %p7843_p13 = por %p7842_p12, %p7841_p11 }
 0x82f   : > { %p7844_p0 = pnand %p7843_p13, %p7837_p8 }
 0x831   : > { %7847 = shalt.err (!%p7844_p0)
}
 0x832   : > { %s7948_s6 = smov 128   ;;  %s7949_s1 = smov 8  }
 0x833   : > { %7679 = dma.vmem_to_hbm [thread:$0]  (%p8072_p5), %s10023_s4, 1024, %s10019_s19, %s10030_s5, %s7948_s6, %s7948_s6, %s7949_s1  }
 0x834   : > { %s5136_s27 = sshll.u32 %s8243_s25, 4  ;;  %s5806_s20 = sshll.u32 %s8053_s22, 8  ;;  %s10059_s27 = int_to_ptr.vmem [resolvable:$true] %s5136_s27 }
 0x835   : > { %s10064_s16 = scalar_lea.hbm %s10158_s14, %s5806_s20  ;;  %s5108_s23 = scalar_lea.sflag [#allocation3], %s8211_s17 }
 0x836   : > { %s7848_s3 = scalar_lea.vmem %s10059_s27, 4096  ;;  %s7950_s7 = smov [#allocation2]  }
 0x837   : > { %p7849_p1 = scmp.ne.s32.totalorder %s10059_s27, %s7848_s3  ;;  %s7852_s19 = sshll.u32 %s7950_s7, 4  ;;  %s7853_s19 = int_to_ptr.vmem [resolvable:$false] %s7852_s19 }
 0x838   : > { %s7854_s22 = scalar_lea.vmem %s7853_s19, 8192  ;;  %p7855_p4 = scmp.lt.s32.totalorder %s10059_s27, %s7853_s19 }
 0x839   : > { %p7850_p2 = pnand %p7849_p1, %p8072_p5  ;;  %p7856_p7 = scmp.lt.s32.totalorder %s7854_s22, %s7848_s3 }
 0x83b   : > { %p7851_p3 = pneg %p7850_p2  ;;  %p7857_p8 = por %p7856_p7, %p7855_p4 }
 0x83d   : > { %p7858_p9 = pnand %p7857_p8, %p7851_p3 }
 0x83f   : > { %7861 = shalt.err (!%p7858_p9)
}
 0x840   : > { %s7862_s25 = scalar_lea.hbm %s10028_s2, 4096  ;;  %s7866_s7 = scalar_lea.hbm %s10156_s12, 8192 }
 0x841   : > { %p7863_p10 = scmp.ne.s32.totalorder %s10028_s2, %s7862_s25  ;;  %p7867_p13 = scmp.lt.u32.totalorder %s10028_s2, %s10156_s12 }
 0x842   : > { %p7868_p0 = scmp.lt.u32.totalorder %s7866_s7, %s7862_s25  ;;  %p7870_p2 = scmp.lt.u32.totalorder %s7862_s25, %s10028_s2 }
 0x843   : > { %p7864_p11 = pnand %p7863_p10, %p8072_p5 }
 0x844   : > { %p7869_p1 = por %p7868_p0, %p7867_p13 }
 0x845   : > { %p7865_p12 = pneg %p7864_p11 }
 0x846   : > { %p7871_p3 = por %p7870_p2, %p7869_p1 }
 0x848   : > { %p7872_p4 = pnand %p7871_p3, %p7865_p12 }
 0x84a   : > { %7875 = shalt.err (!%p7872_p4)
}
 0x84b   : > { %7678 = dma.vmem_to_hbm [thread:$0]  (%p8072_p5), %s10059_s27, 4096, %s10028_s2, %s5108_s23, %s7948_s6, %s7948_s6, %s7949_s1  }
 0x84c   : > { %s7876_s3 = scalar_lea.vmem %s10012_s26, 256  ;;  %s7951_s19 = smov [#allocation6]  }
 0x84d   : > { %p7877_p7 = scmp.ne.s32.totalorder %s10012_s26, %s7876_s3  ;;  %s7880_s22 = sshll.u32 %s7951_s19, 4  ;;  %s7881_s22 = int_to_ptr.vmem [resolvable:$false] %s7880_s22 }
 0x84e   : > { %s7882_s25 = scalar_lea.vmem %s7881_s22, 512  ;;  %p7883_p10 = scmp.lt.s32.totalorder %s10012_s26, %s7881_s22 }
 0x84f   : > { %p7878_p8 = pnand %p7877_p7, %p8072_p5  ;;  %p7884_p11 = scmp.lt.s32.totalorder %s7882_s25, %s7876_s3 }
 0x851   : > { %p7879_p9 = pneg %p7878_p8  ;;  %p7885_p12 = por %p7884_p11, %p7883_p10 }
 0x853   : > { %p7886_p13 = pnand %p7885_p12, %p7879_p9 }
 0x855   : > { %7889 = shalt.err (!%p7886_p13)
}
 0x856   : > { %s7890_s17 = scalar_lea.hbm %s10064_s16, 256  ;;  %s7894_s23 = scalar_lea.hbm %s10158_s14, 512 }
 0x857   : > { %p7891_p0 = scmp.ne.s32.totalorder %s10064_s16, %s7890_s17  ;;  %p7895_p3 = scmp.lt.u32.totalorder %s10064_s16, %s10158_s14 }
 0x858   : > { %p7896_p4 = scmp.lt.u32.totalorder %s7894_s23, %s7890_s17  ;;  %p7898_p8 = scmp.lt.u32.totalorder %s7890_s17, %s10064_s16 }
 0x859   : > { %p7892_p1 = pnand %p7891_p0, %p8072_p5 }
 0x85a   : > { %p7897_p7 = por %p7896_p4, %p7895_p3 }
 0x85b   : > { %p7893_p2 = pneg %p7892_p1 }
 0x85c   : > { %p7899_p9 = por %p7898_p8, %p7897_p7 }
 0x85e   : > { %p7900_p10 = pnand %p7899_p9, %p7893_p2 }
 0x860   : > { %7903 = shalt.err (!%p7900_p10)
}
 0x861   : > { %7680 = dma.vmem_to_hbm [thread:$0]  (%p8072_p5), %s10012_s26, 256, %s10064_s16, %s10030_s5, %s7948_s6, %s7948_s6, %s7949_s1   ;;  %v5074_v60 = vlaneseq }
 0x862   : > { %v5072_v25 = vld [vmem:[%s10155_s11] sm:$0x3]  ;;  %s5803_s5 = sshll.u32 %s8096_s24, 3 }
 0x863   : > { %v5075_v9 = vshrl.u32 %v5074_v60, 7  ;;  %s522_s6 = scalar_lea.vmem %s10159_s15, %s5803_s5 }
 0x865   : > { %v5076_v46 = vsub.s32 0, %v5075_v9  ;;  %v5080_v12 = vsub.s32 1, %v5075_v9 }
 0x867   : > { %v5077_v48 = vrot.slane %v5072_v25, %v5076_v46  ;;  %v5081_v50 = vrot.slane %v5072_v25, %v5080_v12 }
 0x8f8   : > { %v5065_v51 = vpop.f32.mrb[36].mxu0 }
 0x8f9   : > { %v5084_v43 = vadd.f32 %v5077_v48, %v5065_v51  ;;  %v5067_v52 = vpop.f32.mrb[37].mxu0 }
 0x8fa   : > { %v5085_v49 = vadd.f32 %v5081_v50, %v5067_v52 }
 0x8fb   : > { %v5086_v38 = vmin.f32 %v5084_v43, 0.0  ;;  %vm5096_vm1 = vcmp.gt.f32.partialorder %v5084_v43, 0.0 }
 0x8fc   : > { %v5087_v6 = vmin.f32 %v5085_v49, 0.0  ;;  %vm5097_vm2 = vcmp.gt.f32.partialorder %v5085_v49, 0.0 }
 0x8fd   : > { %v5088_v13 = vmul.f32 1.442695, %v5086_v38 }
 0x8fe   : > { %v5090_v44 = vmul.f32 1.442695, %v5087_v6 }
 0x8ff   : > { %7816 = vpow2.f32 %v5088_v13 }
 0x900   : > { %7818 = vpow2.f32 %v5090_v44 }
 0x909   : > { %v7817_v0 = vpop.eup %7816 }
 0x90a   : > { %v7819_v19 = vpop.eup %7818  ;;  %v5789_v4 = vadd.f32 -1.0, %v7817_v0 }
 0x90b   : > { %v5790_v14 = vadd.f32 -1.0, %v7819_v19 }
 0x90c   : > { %v5094_v20 = vmul.f32 1.6732632, %v5789_v4 }
 0x90d   : > { %v5095_v33 = vmul.f32 1.6732632, %v5790_v14 }
 0x90e   : > { %v5098_v22 = vsel %vm5096_vm1, %v5084_v43, %v5094_v20 }
 0x90f   : > { %v5100_v41 = vmul.f32 1.050701, %v5098_v22  ;;  %v5099_v61 = vsel %vm5097_vm2, %v5085_v49, %v5095_v33 }
 0x910   : > { %v5101_v56 = vmul.f32 1.050701, %v5099_v61 }
 0x912   : > { %v5104_v37 = vcombine.low %v5100_v41, %v5101_v56 }
 0x914   : > { %5106 = vst [vmem:[%s522_s6] sm:$0xff] %v5104_v37 }
 0x915 PF: > { %p7694_p5 = scmp.ge.s32.totalorder %s7942_s21, 2  ;;  %s5186_s1 = sand.u32 1, %s7930_s18  }
 0x916   : > { %s5187_s16 = scalar_lea.sflag [#allocation3], %s5186_s1 }
 0x917   : > { %p7685_p11 = pnand %p7694_p5, %p8076_p6 }
 0x919   : > { %7921 = dma.done.wait (!%p7685_p11), %s5187_s16, 4096  }
 0x91a   : > { %7923 = vsyncadd (!%p7685_p11), %s5187_s16, 4294963200  ;;  %s10187_s24 = sadd.s32 4294967294, %s7942_s21  }
 0x91b   : > { %s5195_s0 = sand.u32 1, %s10187_s24  }
 0x91c   : > { %s5196_s3 = scalar_lea.sflag [#allocation5], %s5195_s0 }
 0x91d   : > { %7925 = dma.done.wait (!%p7685_p11), %s5196_s3, 1280  }
 0x91e   : > { %7927 = vsyncadd (!%p7685_p11), %s5196_s3, 4294966016  ;;  %s10188_s21 = sld [smem:[#allocation11_spill]]  ;;  %s10189_s18 = sld [smem:[#allocation9_spill]] }
 0x91f   : > { %s10190_s19 = sld [smem:[#allocation10_spill]]  ;;  %s10191_s20 = sld [smem:[#allocation12_spill]] }
 0x924   : > { %p29_p12 = scmp.ge.s32.totalorder %s10188_s21, 4  }
 0x926   :  { %31 = sbr.rel (!%p29_p12) target bundleno = 14 (0xe), region = 175 }
 0x92d   :  { %5218 = vsyncpa [#allocation3], 1 }
 0x92e   :  { %5220 = vsyncpa [#allocation3 + $0x1], 1 }
 0x92f   :  { %5221 = vsyncpa [#allocation5], 1 }
 0x930   :  { %5223 = vsyncpa [#allocation5 + $0x1], 1 }

</bundles_post_ra>
